<compile_context>
chip_gen: v7x
topology: tpu7x:2x2x1
jax: 0.10.0
libtpu: 0.0.40
codegen_flags: <defaults>
</compile_context>

<pallas_src>
import jax
import jax.numpy as jnp
from jax.experimental import pallas as pl
from jax.experimental.pallas import tpu as pltpu


def _round_up(x, m):
    return (x + m - 1) // m * m


_PADW = 8  # left/right W-pad of the conv3 staging buffer (sublane aligned, >= dilation)


# ---------------------------------------------------------------------------
# Fused ResNetBlock kernel (one grid step == one image).
# ---------------------------------------------------------------------------

def _make_block_kernel(Ho, Wo, d, cin_p, cred_p, cinc_p, need_proj):
    M = Ho * Wo
    f32 = jnp.float32

    def kernel(*refs):
        if need_proj:
            (x_ref, rw, rs, rb, cw, cs, cb, iw, isw, ib,
             pw, ps, pb, o_ref, pbuf) = refs
        else:
            (x_ref, rw, rs, rb, cw, cs, cb, iw, isw, ib,
             o_ref, pbuf) = refs

        # --- Stage 1: 1x1 reduce conv + BN + ReLU (single MXU pass, f32 acc).
        xs = x_ref[...].reshape(M, cin_p)
        f1 = jnp.dot(xs, rw[...], preferred_element_type=f32)
        f1 = jnp.maximum(f1 * rs[...] + rb[...], 0.0).astype(jnp.bfloat16)

        # --- Stage 2: 3x3 dilated conv + BN + ReLU (in-VMEM im2col).
        # Stage f1 into a zero-halo buffer; interior starts at column _PADW so
        # both stores below are sublane-tile aligned.  Zeroed every step (cheap;
        # must NOT be gated on program_id==0 because of v7x megacore splitting).
        pbuf[...] = jnp.zeros_like(pbuf)
        pbuf[d:d + Ho, _PADW:_PADW + Wo, :] = f1.reshape(Ho, Wo, cred_p)

        acc = None
        for kj in range(3):                       # kj outer: only 3 shifted reads
            w0 = _PADW + (kj - 1) * d
            xk = pbuf[:, w0:w0 + Wo, :]           # (Ho+2d, Wo, C) shifted slab
            for ki in range(3):                   # free leading-dim views
                tap = xk[ki * d:ki * d + Ho].reshape(M, cred_p)
                part = jnp.dot(tap, cw[ki, kj], preferred_element_type=f32)
                acc = part if acc is None else acc + part
        f2 = jnp.maximum(acc * cs[...] + cb[...], 0.0).astype(jnp.bfloat16)

        # --- Stage 3: 1x1 increase conv + BN, shortcut, residual add, ReLU.
        y = jnp.dot(f2, iw[...], preferred_element_type=f32)
        y = y * isw[...] + ib[...]
        if need_proj:
            sc = jnp.dot(x_ref[...].reshape(M, cin_p), pw[...],
                         preferred_element_type=f32)
            sc = sc * ps[...] + pb[...]
        else:
            sc = x_ref[...].reshape(M, cinc_p).astype(f32)   # identity shortcut
        y = jnp.maximum(y + sc, 0.0)
        o_ref[...] = y.reshape(Ho, Wo, cinc_p).astype(o_ref.dtype)

    return kernel


def _block_call(B, Ho, Wo, d, cin_p, cred_p, cinc_p, need_proj):
    assert d <= _PADW and Wo % 8 == 0
    Hp = Ho + 2 * d
    Wb = Wo + 2 * _PADW

    def vec(n):
        return pl.BlockSpec((1, n), lambda b: (0, 0))

    in_specs = [
        # Input viewed as (B, Ho, s, Wo, s*cin_p); picking block 0 along the two
        # "s" axes folds the stride-s subsampling into the DMA itself.
        pl.BlockSpec((None, Ho, None, Wo, cin_p), lambda b: (b, 0, 0, 0, 0)),
        pl.BlockSpec((cin_p, cred_p), lambda b: (0, 0)),           # reduce_w
        vec(cred_p), vec(cred_p),                                  # reduce s/b
        pl.BlockSpec((3, 3, cred_p, cred_p), lambda b: (0, 0, 0, 0)),  # conv3_w
        vec(cred_p), vec(cred_p),                                  # conv3 s/b
        pl.BlockSpec((cred_p, cinc_p), lambda b: (0, 0)),          # inc_w
        vec(cinc_p), vec(cinc_p),                                  # inc s/b
    ]
    if need_proj:
        in_specs += [pl.BlockSpec((cin_p, cinc_p), lambda b: (0, 0)),  # proj_w
                     vec(cinc_p), vec(cinc_p)]                         # proj s/b

    return pl.pallas_call(
        _make_block_kernel(Ho, Wo, d, cin_p, cred_p, cinc_p, need_proj),
        out_shape=jax.ShapeDtypeStruct((B, Ho, Wo, cinc_p), jnp.bfloat16),
        grid=(B,),
        in_specs=in_specs,
        out_specs=pl.BlockSpec((None, Ho, Wo, cinc_p), lambda b: (b, 0, 0, 0)),
        scratch_shapes=[pltpu.VMEM((Hp, Wb, cred_p), jnp.bfloat16)],
        compiler_params=pltpu.CompilerParams(
            dimension_semantics=("parallel",),   # B=2 -> both v7x TensorCores busy
            # Actual per-step footprint is ~4 MiB; cap well under v7x's 64 MiB.
            vmem_limit_bytes=32 * 1024 * 1024,
        ),
    )


# ---------------------------------------------------------------------------
# Parameters (eval-mode: BatchNorm folded into per-channel scale / shift).
# TODO(synk): training-mode BatchNorm (batch stats + running-stat updates) is
#             not implemented; only the eval-mode folded-BN forward is.
# ---------------------------------------------------------------------------

def _fold_bn(gamma, beta, mean, var, eps=1e-5):
    scale = gamma / jnp.sqrt(var + eps)
    shift = beta - mean * scale
    return scale, shift


def _pad2(a, rows, cols):
    return jnp.pad(a, ((0, rows - a.shape[0]), (0, cols - a.shape[1])))


def make_params(key, cfg):
    """Deterministic random parameters in reference (unpadded OIHW f32) and
    kernel (channel-padded, lane-aligned, bf16) form."""
    cin, cred, cinc = cfg["cin"], cfg["cred"], cfg["cinc"]
    cin_p, cred_p, cinc_p = (_round_up(c, 128) for c in (cin, cred, cinc))

    counter = [0]

    def nk():
        counter[0] += 1
        return jax.random.fold_in(key, counter[0])

    def conv_w(cout, cin_, k):
        return 0.05 * jax.random.normal(nk(), (cout, cin_, k, k), jnp.float32)

    def bn(cout):
        gamma = 0.5 + jax.random.uniform(nk(), (cout,), jnp.float32)
        beta = 0.1 * jax.random.normal(nk(), (cout,), jnp.float32)
        mean = 0.1 * jax.random.normal(nk(), (cout,), jnp.float32)
        var = 0.5 + jax.random.uniform(nk(), (cout,), jnp.float32)
        return _fold_bn(gamma, beta, mean, var)

    ref, ker = {}, {}

    def pack_1x1(name, cout, cin_, cout_p, cin_pp):
        w = conv_w(cout, cin_, 1)
        s, b = bn(cout)
        ref[name + "_w"], ref[name + "_s"], ref[name + "_b"] = w, s, b
        ker[name + "_w"] = _pad2(jnp.transpose(w[:, :, 0, 0]),
                                 cin_pp, cout_p).astype(jnp.bfloat16)
        ker[name + "_s"] = _pad2(s.reshape(1, -1), 1, cout_p)   # padded lanes = 0
        ker[name + "_b"] = _pad2(b.reshape(1, -1), 1, cout_p)   # padded lanes = 0

    # conv_1x1_reduce + BN + ReLU
    pack_1x1("reduce", cred, cin, cred_p, cin_p)

    # conv_3x3 (dilated) + BN + ReLU
    w = conv_w(cred, cred, 3)
    s, b = bn(cred)
    ref["conv3_w"], ref["conv3_s"], ref["conv3_b"] = w, s, b
    w2 = jnp.transpose(w, (2, 3, 1, 0))  # OIHW -> (kh, kw, cin, cout)
    w2 = jnp.pad(w2, ((0, 0), (0, 0), (0, cred_p - cred), (0, cred_p - cred)))
    ker["conv3_w"] = w2.astype(jnp.bfloat16)
    ker["conv3_s"] = _pad2(s.reshape(1, -1), 1, cred_p)
    ker["conv3_b"] = _pad2(b.reshape(1, -1), 1, cred_p)

    # conv_1x1_increase + BN (no ReLU; residual + final ReLU fused in kernel)
    pack_1x1("inc", cinc, cred, cinc_p, cred_p)

    # optional conv_1x1_proj + BN
    if cin != cinc:
        pack_1x1("proj", cinc, cin, cinc_p, cin_p)

    return ref, ker


# ---------------------------------------------------------------------------
# ResNetBlock forward (single fused Pallas kernel), jitted per configuration.
# ---------------------------------------------------------------------------

def make_forward(cfg):
    stride, dilation = cfg["stride"], cfg["dilation"]
    cinc = cfg["cinc"]
    need_proj = cfg["cin"] != cfg["cinc"]

    def fwd(p, x_nchw):
        B, C, H, W = x_nchw.shape
        cin_p = p["reduce_w"].shape[0]
        cred_p = p["reduce_w"].shape[1]
        cinc_p = p["inc_w"].shape[1]
        assert H % stride == 0 and W % stride == 0
        Ho, Wo = H // stride, W // stride

        x = jnp.transpose(x_nchw, (0, 2, 3, 1)).astype(jnp.bfloat16)
        if cin_p != C:
            x = jnp.pad(x, ((0, 0), (0, 0), (0, 0), (0, cin_p - C)))
        # Metadata-only reshape exposing the stride pattern to the block DMA.
        xv = x.reshape(B, Ho, stride, Wo, stride * cin_p)

        args = [xv,
                p["reduce_w"], p["reduce_s"], p["reduce_b"],
                p["conv3_w"], p["conv3_s"], p["conv3_b"],
                p["inc_w"], p["inc_s"], p["inc_b"]]
        if need_proj:
            args += [p["proj_w"], p["proj_s"], p["proj_b"]]

        out = _block_call(B, Ho, Wo, dilation, cin_p, cred_p, cinc_p,
                          need_proj)(*args)
        if cinc_p != cinc:
            out = out[..., :cinc]
        # Output transpose fused with the cast back to f32 (module dtype).
        return jnp.transpose(out, (0, 3, 1, 2)).astype(jnp.float32)

    return jax.jit(fwd)


# ---------------------------------------------------------------------------
# Pure-JAX reference (numerics matched: bf16 operands, f32 accumulation).
# ---------------------------------------------------------------------------

def ref_forward(rp, x_nchw, *, stride, dilation, need_proj):
    f32 = jnp.float32
    bf = lambda a: a.astype(jnp.bfloat16).astype(f32)

    def convbn(x, w, scale, shift, s, pad, dil, relu):
        y = jax.lax.conv_general_dilated(
            bf(x), bf(w), (s, s), ((pad, pad), (pad, pad)),
            rhs_dilation=(dil, dil),
            dimension_numbers=("NCHW", "OIHW", "NCHW"),
            precision=jax.lax.Precision.HIGHEST)
        y = y * scale[None, :, None, None] + shift[None, :, None, None]
        return jnp.maximum(y, 0.0) if relu else y

    x = x_nchw.astype(f32)
    fx = convbn(x, rp["reduce_w"], rp["reduce_s"], rp["reduce_b"],
                stride, 0, 1, True)
    fx = convbn(fx, rp["conv3_w"], rp["conv3_s"], rp["conv3_b"],
                1, dilation, dilation, True)
    fx = convbn(fx, rp["inc_w"], rp["inc_s"], rp["inc_b"], 1, 0, 1, False)
    if need_proj:
        sc = convbn(x, rp["proj_w"], rp["proj_s"], rp["proj_b"],
                    stride, 0, 1, False)
    else:
        sc = bf(x)[:, :, ::stride, ::stride]
    return jnp.maximum(fx + sc, 0.0)


# ---------------------------------------------------------------------------

if __name__ == "__main__":
    key = jax.random.PRNGKey(0)

    # ResNetBlock configurations as used inside ICNet (small spatial dims).
    configs = [
        dict(cin=64, cred=32, cinc=128, dilation=1, stride=1, B=2, H=16, W=16),
        dict(cin=128, cred=64, cinc=256, dilation=1, stride=2, B=2, H=16, W=16),
        dict(cin=256, cred=64, cinc=256, dilation=2, stride=1, B=2, H=16, W=16),
    ]

    for i, cfg in enumerate(configs):
        ref_params, ker_params = make_params(jax.random.fold_in(key, 100 + i), cfg)
        x = jax.random.normal(jax.random.fold_in(key, 200 + i),
                              (cfg["B"], cfg["cin"], cfg["H"], cfg["W"]),
                              jnp.float32)

        fwd = make_forward(cfg)
        out = jax.block_until_ready(fwd(ker_params, x))

        need_proj = cfg["cin"] != cfg["cinc"]
        ref = jax.block_until_ready(
            ref_forward(ref_params, x, stride=cfg["stride"],
                        dilation=cfg["dilation"], need_proj=need_proj))

        assert out.shape == ref.shape, (out.shape, ref.shape)
        assert bool(jnp.all(jnp.isfinite(out)))
        err = float(jnp.max(jnp.abs(out - ref)))
        tol = 1e-2 * (1.0 + float(jnp.max(jnp.abs(ref))))
        assert err <= tol, (err, tol)

    print("KERNEL_OK")
</pallas_src>

<mosaic_0001>
module attributes {stable_mosaic.version = 11 : i64} {
  func.func @kernel(%arg0: i32, %arg1: memref<1x16x1x16x128xbf16, #tpu.memory_space<vmem>>, %arg2: memref<128x128xbf16, #tpu.memory_space<vmem>>, %arg3: memref<1x128xf32, #tpu.memory_space<vmem>>, %arg4: memref<1x128xf32, #tpu.memory_space<vmem>>, %arg5: memref<3x3x128x128xbf16, #tpu.memory_space<vmem>>, %arg6: memref<1x128xf32, #tpu.memory_space<vmem>>, %arg7: memref<1x128xf32, #tpu.memory_space<vmem>>, %arg8: memref<128x128xbf16, #tpu.memory_space<vmem>>, %arg9: memref<1x128xf32, #tpu.memory_space<vmem>>, %arg10: memref<1x128xf32, #tpu.memory_space<vmem>>, %arg11: memref<128x128xbf16, #tpu.memory_space<vmem>>, %arg12: memref<1x128xf32, #tpu.memory_space<vmem>>, %arg13: memref<1x128xf32, #tpu.memory_space<vmem>>, %arg14: memref<1x16x16x128xbf16, #tpu.memory_space<vmem>>, %arg15: memref<18x32x128xbf16, #tpu.memory_space<vmem>>) attributes {dimension_semantics = [#tpu.dimension_semantics<parallel>], iteration_bounds = array<i64: 2>, scalar_prefetch = 0 : i64, scratch_operands = 1 : i64, tpu.core_type = #tpu.core_type<tc>, window_params = [{transform_indices = @transform_0, window_bounds = array<i64: 1, 16, 1, 16, 128>}, {pipeline_mode = #tpu.pipeline_mode<synchronous>, transform_indices = @transform_1, window_bounds = array<i64: 128, 128>}, {pipeline_mode = #tpu.pipeline_mode<synchronous>, transform_indices = @transform_2, window_bounds = array<i64: 1, 128>}, {pipeline_mode = #tpu.pipeline_mode<synchronous>, transform_indices = @transform_3, window_bounds = array<i64: 1, 128>}, {pipeline_mode = #tpu.pipeline_mode<synchronous>, transform_indices = @transform_4, window_bounds = array<i64: 3, 3, 128, 128>}, {pipeline_mode = #tpu.pipeline_mode<synchronous>, transform_indices = @transform_5, window_bounds = array<i64: 1, 128>}, {pipeline_mode = #tpu.pipeline_mode<synchronous>, transform_indices = @transform_6, window_bounds = array<i64: 1, 128>}, {pipeline_mode = #tpu.pipeline_mode<synchronous>, transform_indices = @transform_7, window_bounds = array<i64: 128, 128>}, {pipeline_mode = #tpu.pipeline_mode<synchronous>, transform_indices = @transform_8, window_bounds = array<i64: 1, 128>}, {pipeline_mode = #tpu.pipeline_mode<synchronous>, transform_indices = @transform_9, window_bounds = array<i64: 1, 128>}, {pipeline_mode = #tpu.pipeline_mode<synchronous>, transform_indices = @transform_10, window_bounds = array<i64: 128, 128>}, {pipeline_mode = #tpu.pipeline_mode<synchronous>, transform_indices = @transform_11, window_bounds = array<i64: 1, 128>}, {pipeline_mode = #tpu.pipeline_mode<synchronous>, transform_indices = @transform_12, window_bounds = array<i64: 1, 128>}, {transform_indices = @transform_13, window_bounds = array<i64: 1, 16, 16, 128>}]} {
    %c0 = arith.constant 0 : index
    %c0_0 = arith.constant 0 : index
    %c0_1 = arith.constant 0 : index
    %c0_2 = arith.constant 0 : index
    %c0_3 = arith.constant 0 : index
    %0 = vector.load %arg1[%c0, %c0_0, %c0_1, %c0_2, %c0_3] : memref<1x16x1x16x128xbf16, #tpu.memory_space<vmem>>, vector<1x16x1x16x128xbf16>
    %1 = vector.shape_cast %0 : vector<1x16x1x16x128xbf16> to vector<16x16x128xbf16>
    %2 = vector.shape_cast %1 : vector<16x16x128xbf16> to vector<256x128xbf16>
    %c0_4 = arith.constant 0 : index
    %c0_5 = arith.constant 0 : index
    %3 = vector.load %arg2[%c0_4, %c0_5] : memref<128x128xbf16, #tpu.memory_space<vmem>>, vector<128x128xbf16>
    %cst = arith.constant dense<0.000000e+00> : vector<256x128xf32>
    %4 = tpu.matmul %2, %3, %cst {dimension_numbers = #tpu.dot_dimension_numbers<[1], [0], [0], [1], [0, 0, 1, 1], [], []>} : vector<256x128xbf16>, vector<128x128xbf16>, vector<256x128xf32> -> vector<256x128xf32>
    %c0_6 = arith.constant 0 : index
    %c0_7 = arith.constant 0 : index
    %5 = vector.load %arg3[%c0_6, %c0_7] : memref<1x128xf32, #tpu.memory_space<vmem>>, vector<1x128xf32>
    %6 = vector.broadcast %5 : vector<1x128xf32> to vector<256x128xf32>
    %7 = arith.mulf %4, %6 : vector<256x128xf32>
    %c0_8 = arith.constant 0 : index
    %c0_9 = arith.constant 0 : index
    %8 = vector.load %arg4[%c0_8, %c0_9] : memref<1x128xf32, #tpu.memory_space<vmem>>, vector<1x128xf32>
    %9 = vector.broadcast %8 : vector<1x128xf32> to vector<256x128xf32>
    %10 = arith.addf %7, %9 : vector<256x128xf32>
    %cst_10 = arith.constant 0.000000e+00 : f32
    %11 = vector.broadcast %cst_10 : f32 to vector<256x128xf32>
    %12 = arith.maximumf %10, %11 : vector<256x128xf32>
    %13 = arith.truncf %12 : vector<256x128xf32> to vector<256x128xbf16>
    %cst_11 = arith.constant 0.000000e+00 : bf16
    %14 = vector.broadcast %cst_11 : bf16 to vector<18x32x128xbf16>
    %c0_12 = arith.constant 0 : index
    %c0_13 = arith.constant 0 : index
    %c0_14 = arith.constant 0 : index
    %15 = vector.load %arg15[%c0_12, %c0_13, %c0_14] : memref<18x32x128xbf16, #tpu.memory_space<vmem>>, vector<18x32x128xbf16>
    tpu.vector_store %arg15[%c0_12, %c0_13, %c0_14], %14 {strides = array<i32>} : memref<18x32x128xbf16, #tpu.memory_space<vmem>>, vector<18x32x128xbf16>,
    %16 = vector.shape_cast %13 : vector<256x128xbf16> to vector<16x16x128xbf16>
    %c1 = arith.constant 1 : index
    %c8 = arith.constant 8 : index
    %c0_15 = arith.constant 0 : index
    %17 = vector.load %arg15[%c1, %c8, %c0_15] : memref<18x32x128xbf16, #tpu.memory_space<vmem>>, vector<16x16x128xbf16>
    tpu.vector_store %arg15[%c1, %c8, %c0_15], %16 {strides = array<i32>} : memref<18x32x128xbf16, #tpu.memory_space<vmem>>, vector<16x16x128xbf16>,
    %c0_16 = arith.constant 0 : index
    %c7 = arith.constant 7 : index
    %c0_17 = arith.constant 0 : index
    %18 = vector.load %arg15[%c0_16, %c7, %c0_17] : memref<18x32x128xbf16, #tpu.memory_space<vmem>>, vector<18x16x128xbf16>
    %19 = vector.extract_strided_slice %18 {offsets = [0, 0, 0], sizes = [16, 16, 128], strides = [1, 1, 1]} : vector<18x16x128xbf16> to vector<16x16x128xbf16>
    %20 = vector.shape_cast %19 : vector<16x16x128xbf16> to vector<256x128xbf16>
    %c0_18 = arith.constant 0 : index
    %c0_19 = arith.constant 0 : index
    %c0_20 = arith.constant 0 : index
    %c0_21 = arith.constant 0 : index
    %21 = vector.load %arg5[%c0_18, %c0_19, %c0_20, %c0_21] : memref<3x3x128x128xbf16, #tpu.memory_space<vmem>>, vector<1x1x128x128xbf16>
    %22 = vector.shape_cast %21 : vector<1x1x128x128xbf16> to vector<128x128xbf16>
    %cst_22 = arith.constant dense<0.000000e+00> : vector<256x128xf32>
    %23 = tpu.matmul %20, %22, %cst_22 {dimension_numbers = #tpu.dot_dimension_numbers<[1], [0], [0], [1], [0, 0, 1, 1], [], []>} : vector<256x128xbf16>, vector<128x128xbf16>, vector<256x128xf32> -> vector<256x128xf32>
    %24 = vector.extract_strided_slice %18 {offsets = [1, 0, 0], sizes = [16, 16, 128], strides = [1, 1, 1]} : vector<18x16x128xbf16> to vector<16x16x128xbf16>
    %25 = vector.shape_cast %24 : vector<16x16x128xbf16> to vector<256x128xbf16>
    %c1_23 = arith.constant 1 : index
    %c0_24 = arith.constant 0 : index
    %c0_25 = arith.constant 0 : index
    %c0_26 = arith.constant 0 : index
    %26 = vector.load %arg5[%c1_23, %c0_24, %c0_25, %c0_26] : memref<3x3x128x128xbf16, #tpu.memory_space<vmem>>, vector<1x1x128x128xbf16>
    %27 = vector.shape_cast %26 : vector<1x1x128x128xbf16> to vector<128x128xbf16>
    %cst_27 = arith.constant dense<0.000000e+00> : vector<256x128xf32>
    %28 = tpu.matmul %25, %27, %cst_27 {dimension_numbers = #tpu.dot_dimension_numbers<[1], [0], [0], [1], [0, 0, 1, 1], [], []>} : vector<256x128xbf16>, vector<128x128xbf16>, vector<256x128xf32> -> vector<256x128xf32>
    %29 = arith.addf %23, %28 : vector<256x128xf32>
    %30 = vector.extract_strided_slice %18 {offsets = [2, 0, 0], sizes = [16, 16, 128], strides = [1, 1, 1]} : vector<18x16x128xbf16> to vector<16x16x128xbf16>
    %31 = vector.shape_cast %30 : vector<16x16x128xbf16> to vector<256x128xbf16>
    %c2 = arith.constant 2 : index
    %c0_28 = arith.constant 0 : index
    %c0_29 = arith.constant 0 : index
    %c0_30 = arith.constant 0 : index
    %32 = vector.load %arg5[%c2, %c0_28, %c0_29, %c0_30] : memref<3x3x128x128xbf16, #tpu.memory_space<vmem>>, vector<1x1x128x128xbf16>
    %33 = vector.shape_cast %32 : vector<1x1x128x128xbf16> to vector<128x128xbf16>
    %cst_31 = arith.constant dense<0.000000e+00> : vector<256x128xf32>
    %34 = tpu.matmul %31, %33, %cst_31 {dimension_numbers = #tpu.dot_dimension_numbers<[1], [0], [0], [1], [0, 0, 1, 1], [], []>} : vector<256x128xbf16>, vector<128x128xbf16>, vector<256x128xf32> -> vector<256x128xf32>
    %35 = arith.addf %29, %34 : vector<256x128xf32>
    %c0_32 = arith.constant 0 : index
    %c8_33 = arith.constant 8 : index
    %c0_34 = arith.constant 0 : index
    %36 = vector.load %arg15[%c0_32, %c8_33, %c0_34] : memref<18x32x128xbf16, #tpu.memory_space<vmem>>, vector<18x16x128xbf16>
    %37 = vector.extract_strided_slice %36 {offsets = [0, 0, 0], sizes = [16, 16, 128], strides = [1, 1, 1]} : vector<18x16x128xbf16> to vector<16x16x128xbf16>
    %38 = vector.shape_cast %37 : vector<16x16x128xbf16> to vector<256x128xbf16>
    %c0_35 = arith.constant 0 : index
    %c1_36 = arith.constant 1 : index
    %c0_37 = arith.constant 0 : index
    %c0_38 = arith.constant 0 : index
    %39 = vector.load %arg5[%c0_35, %c1_36, %c0_37, %c0_38] : memref<3x3x128x128xbf16, #tpu.memory_space<vmem>>, vector<1x1x128x128xbf16>
    %40 = vector.shape_cast %39 : vector<1x1x128x128xbf16> to vector<128x128xbf16>
    %cst_39 = arith.constant dense<0.000000e+00> : vector<256x128xf32>
    %41 = tpu.matmul %38, %40, %cst_39 {dimension_numbers = #tpu.dot_dimension_numbers<[1], [0], [0], [1], [0, 0, 1, 1], [], []>} : vector<256x128xbf16>, vector<128x128xbf16>, vector<256x128xf32> -> vector<256x128xf32>
    %42 = arith.addf %35, %41 : vector<256x128xf32>
    %43 = vector.extract_strided_slice %36 {offsets = [1, 0, 0], sizes = [16, 16, 128], strides = [1, 1, 1]} : vector<18x16x128xbf16> to vector<16x16x128xbf16>
    %44 = vector.shape_cast %43 : vector<16x16x128xbf16> to vector<256x128xbf16>
    %c1_40 = arith.constant 1 : index
    %c1_41 = arith.constant 1 : index
    %c0_42 = arith.constant 0 : index
    %c0_43 = arith.constant 0 : index
    %45 = vector.load %arg5[%c1_40, %c1_41, %c0_42, %c0_43] : memref<3x3x128x128xbf16, #tpu.memory_space<vmem>>, vector<1x1x128x128xbf16>
    %46 = vector.shape_cast %45 : vector<1x1x128x128xbf16> to vector<128x128xbf16>
    %cst_44 = arith.constant dense<0.000000e+00> : vector<256x128xf32>
    %47 = tpu.matmul %44, %46, %cst_44 {dimension_numbers = #tpu.dot_dimension_numbers<[1], [0], [0], [1], [0, 0, 1, 1], [], []>} : vector<256x128xbf16>, vector<128x128xbf16>, vector<256x128xf32> -> vector<256x128xf32>
    %48 = arith.addf %42, %47 : vector<256x128xf32>
    %49 = vector.extract_strided_slice %36 {offsets = [2, 0, 0], sizes = [16, 16, 128], strides = [1, 1, 1]} : vector<18x16x128xbf16> to vector<16x16x128xbf16>
    %50 = vector.shape_cast %49 : vector<16x16x128xbf16> to vector<256x128xbf16>
    %c2_45 = arith.constant 2 : index
    %c1_46 = arith.constant 1 : index
    %c0_47 = arith.constant 0 : index
    %c0_48 = arith.constant 0 : index
    %51 = vector.load %arg5[%c2_45, %c1_46, %c0_47, %c0_48] : memref<3x3x128x128xbf16, #tpu.memory_space<vmem>>, vector<1x1x128x128xbf16>
    %52 = vector.shape_cast %51 : vector<1x1x128x128xbf16> to vector<128x128xbf16>
    %cst_49 = arith.constant dense<0.000000e+00> : vector<256x128xf32>
    %53 = tpu.matmul %50, %52, %cst_49 {dimension_numbers = #tpu.dot_dimension_numbers<[1], [0], [0], [1], [0, 0, 1, 1], [], []>} : vector<256x128xbf16>, vector<128x128xbf16>, vector<256x128xf32> -> vector<256x128xf32>
    %54 = arith.addf %48, %53 : vector<256x128xf32>
    %c0_50 = arith.constant 0 : index
    %c9 = arith.constant 9 : index
    %c0_51 = arith.constant 0 : index
    %55 = vector.load %arg15[%c0_50, %c9, %c0_51] : memref<18x32x128xbf16, #tpu.memory_space<vmem>>, vector<18x16x128xbf16>
    %56 = vector.extract_strided_slice %55 {offsets = [0, 0, 0], sizes = [16, 16, 128], strides = [1, 1, 1]} : vector<18x16x128xbf16> to vector<16x16x128xbf16>
    %57 = vector.shape_cast %56 : vector<16x16x128xbf16> to vector<256x128xbf16>
    %c0_52 = arith.constant 0 : index
    %c2_53 = arith.constant 2 : index
    %c0_54 = arith.constant 0 : index
    %c0_55 = arith.constant 0 : index
    %58 = vector.load %arg5[%c0_52, %c2_53, %c0_54, %c0_55] : memref<3x3x128x128xbf16, #tpu.memory_space<vmem>>, vector<1x1x128x128xbf16>
    %59 = vector.shape_cast %58 : vector<1x1x128x128xbf16> to vector<128x128xbf16>
    %cst_56 = arith.constant dense<0.000000e+00> : vector<256x128xf32>
    %60 = tpu.matmul %57, %59, %cst_56 {dimension_numbers = #tpu.dot_dimension_numbers<[1], [0], [0], [1], [0, 0, 1, 1], [], []>} : vector<256x128xbf16>, vector<128x128xbf16>, vector<256x128xf32> -> vector<256x128xf32>
    %61 = arith.addf %54, %60 : vector<256x128xf32>
    %62 = vector.extract_strided_slice %55 {offsets = [1, 0, 0], sizes = [16, 16, 128], strides = [1, 1, 1]} : vector<18x16x128xbf16> to vector<16x16x128xbf16>
    %63 = vector.shape_cast %62 : vector<16x16x128xbf16> to vector<256x128xbf16>
    %c1_57 = arith.constant 1 : index
    %c2_58 = arith.constant 2 : index
    %c0_59 = arith.constant 0 : index
    %c0_60 = arith.constant 0 : index
    %64 = vector.load %arg5[%c1_57, %c2_58, %c0_59, %c0_60] : memref<3x3x128x128xbf16, #tpu.memory_space<vmem>>, vector<1x1x128x128xbf16>
    %65 = vector.shape_cast %64 : vector<1x1x128x128xbf16> to vector<128x128xbf16>
    %cst_61 = arith.constant dense<0.000000e+00> : vector<256x128xf32>
    %66 = tpu.matmul %63, %65, %cst_61 {dimension_numbers = #tpu.dot_dimension_numbers<[1], [0], [0], [1], [0, 0, 1, 1], [], []>} : vector<256x128xbf16>, vector<128x128xbf16>, vector<256x128xf32> -> vector<256x128xf32>
    %67 = arith.addf %61, %66 : vector<256x128xf32>
    %68 = vector.extract_strided_slice %55 {offsets = [2, 0, 0], sizes = [16, 16, 128], strides = [1, 1, 1]} : vector<18x16x128xbf16> to vector<16x16x128xbf16>
    %69 = vector.shape_cast %68 : vector<16x16x128xbf16> to vector<256x128xbf16>
    %c2_62 = arith.constant 2 : index
    %c2_63 = arith.constant 2 : index
    %c0_64 = arith.constant 0 : index
    %c0_65 = arith.constant 0 : index
    %70 = vector.load %arg5[%c2_62, %c2_63, %c0_64, %c0_65] : memref<3x3x128x128xbf16, #tpu.memory_space<vmem>>, vector<1x1x128x128xbf16>
    %71 = vector.shape_cast %70 : vector<1x1x128x128xbf16> to vector<128x128xbf16>
    %cst_66 = arith.constant dense<0.000000e+00> : vector<256x128xf32>
    %72 = tpu.matmul %69, %71, %cst_66 {dimension_numbers = #tpu.dot_dimension_numbers<[1], [0], [0], [1], [0, 0, 1, 1], [], []>} : vector<256x128xbf16>, vector<128x128xbf16>, vector<256x128xf32> -> vector<256x128xf32>
    %73 = arith.addf %67, %72 : vector<256x128xf32>
    %c0_67 = arith.constant 0 : index
    %c0_68 = arith.constant 0 : index
    %74 = vector.load %arg6[%c0_67, %c0_68] : memref<1x128xf32, #tpu.memory_space<vmem>>, vector<1x128xf32>
    %75 = vector.broadcast %74 : vector<1x128xf32> to vector<256x128xf32>
    %76 = arith.mulf %73, %75 : vector<256x128xf32>
    %c0_69 = arith.constant 0 : index
    %c0_70 = arith.constant 0 : index
    %77 = vector.load %arg7[%c0_69, %c0_70] : memref<1x128xf32, #tpu.memory_space<vmem>>, vector<1x128xf32>
    %78 = vector.broadcast %77 : vector<1x128xf32> to vector<256x128xf32>
    %79 = arith.addf %76, %78 : vector<256x128xf32>
    %cst_71 = arith.constant 0.000000e+00 : f32
    %80 = vector.broadcast %cst_71 : f32 to vector<256x128xf32>
    %81 = arith.maximumf %79, %80 : vector<256x128xf32>
    %82 = arith.truncf %81 : vector<256x128xf32> to vector<256x128xbf16>
    %c0_72 = arith.constant 0 : index
    %c0_73 = arith.constant 0 : index
    %83 = vector.load %arg8[%c0_72, %c0_73] : memref<128x128xbf16, #tpu.memory_space<vmem>>, vector<128x128xbf16>
    %cst_74 = arith.constant dense<0.000000e+00> : vector<256x128xf32>
    %84 = tpu.matmul %82, %83, %cst_74 {dimension_numbers = #tpu.dot_dimension_numbers<[1], [0], [0], [1], [0, 0, 1, 1], [], []>} : vector<256x128xbf16>, vector<128x128xbf16>, vector<256x128xf32> -> vector<256x128xf32>
    %c0_75 = arith.constant 0 : index
    %c0_76 = arith.constant 0 : index
    %85 = vector.load %arg9[%c0_75, %c0_76] : memref<1x128xf32, #tpu.memory_space<vmem>>, vector<1x128xf32>
    %86 = vector.broadcast %85 : vector<1x128xf32> to vector<256x128xf32>
    %87 = arith.mulf %84, %86 : vector<256x128xf32>
    %c0_77 = arith.constant 0 : index
    %c0_78 = arith.constant 0 : index
    %88 = vector.load %arg10[%c0_77, %c0_78] : memref<1x128xf32, #tpu.memory_space<vmem>>, vector<1x128xf32>
    %89 = vector.broadcast %88 : vector<1x128xf32> to vector<256x128xf32>
    %90 = arith.addf %87, %89 : vector<256x128xf32>
    %c0_79 = arith.constant 0 : index
    %c0_80 = arith.constant 0 : index
    %c0_81 = arith.constant 0 : index
    %c0_82 = arith.constant 0 : index
    %c0_83 = arith.constant 0 : index
    %91 = vector.load %arg1[%c0_79, %c0_80, %c0_81, %c0_82, %c0_83] : memref<1x16x1x16x128xbf16, #tpu.memory_space<vmem>>, vector<1x16x1x16x128xbf16>
    %92 = vector.shape_cast %91 : vector<1x16x1x16x128xbf16> to vector<16x16x128xbf16>
    %93 = vector.shape_cast %92 : vector<16x16x128xbf16> to vector<256x128xbf16>
    %c0_84 = arith.constant 0 : index
    %c0_85 = arith.constant 0 : index
    %94 = vector.load %arg11[%c0_84, %c0_85] : memref<128x128xbf16, #tpu.memory_space<vmem>>, vector<128x128xbf16>
    %cst_86 = arith.constant dense<0.000000e+00> : vector<256x128xf32>
    %95 = tpu.matmul %93, %94, %cst_86 {dimension_numbers = #tpu.dot_dimension_numbers<[1], [0], [0], [1], [0, 0, 1, 1], [], []>} : vector<256x128xbf16>, vector<128x128xbf16>, vector<256x128xf32> -> vector<256x128xf32>
    %c0_87 = arith.constant 0 : index
    %c0_88 = arith.constant 0 : index
    %96 = vector.load %arg12[%c0_87, %c0_88] : memref<1x128xf32, #tpu.memory_space<vmem>>, vector<1x128xf32>
    %97 = vector.broadcast %96 : vector<1x128xf32> to vector<256x128xf32>
    %98 = arith.mulf %95, %97 : vector<256x128xf32>
    %c0_89 = arith.constant 0 : index
    %c0_90 = arith.constant 0 : index
    %99 = vector.load %arg13[%c0_89, %c0_90] : memref<1x128xf32, #tpu.memory_space<vmem>>, vector<1x128xf32>
    %100 = vector.broadcast %99 : vector<1x128xf32> to vector<256x128xf32>
    %101 = arith.addf %98, %100 : vector<256x128xf32>
    %102 = arith.addf %90, %101 : vector<256x128xf32>
    %cst_91 = arith.constant 0.000000e+00 : f32
    %103 = vector.broadcast %cst_91 : f32 to vector<256x128xf32>
    %104 = arith.maximumf %102, %103 : vector<256x128xf32>
    %105 = vector.shape_cast %104 : vector<256x128xf32> to vector<16x16x128xf32>
    %106 = arith.truncf %105 : vector<16x16x128xf32> to vector<16x16x128xbf16>
    %c0_92 = arith.constant 0 : index
    %c0_93 = arith.constant 0 : index
    %c0_94 = arith.constant 0 : index
    %c0_95 = arith.constant 0 : index
    %107 = vector.load %arg14[%c0_92, %c0_93, %c0_94, %c0_95] : memref<1x16x16x128xbf16, #tpu.memory_space<vmem>>, vector<1x16x16x128xbf16>
    %108 = vector.shape_cast %107 : vector<1x16x16x128xbf16> to vector<16x16x128xbf16>
    %109 = vector.shape_cast %106 : vector<16x16x128xbf16> to vector<1x16x16x128xbf16>
    tpu.vector_store %arg14[%c0_92, %c0_93, %c0_94, %c0_95], %109 {strides = array<i32>} : memref<1x16x16x128xbf16, #tpu.memory_space<vmem>>, vector<1x16x16x128xbf16>,
    return
  }
  func.func @transform_0(%arg0: i32) -> (i32, i32, i32, i32, i32) {
    %c0_i32 = arith.constant 0 : i32
    %c0_i32_0 = arith.constant 0 : i32
    %c0_i32_1 = arith.constant 0 : i32
    %c0_i32_2 = arith.constant 0 : i32
    %c0_i32_3 = arith.constant 0 : i32
    return %arg0, %c0_i32, %c0_i32_0, %c0_i32_1, %c0_i32_2 : i32, i32, i32, i32, i32
  }
  func.func @transform_1(%arg0: i32) -> (i32, i32) {
    %c0_i32 = arith.constant 0 : i32
    %c0_i32_0 = arith.constant 0 : i32
    %c0_i32_1 = arith.constant 0 : i32
    return %c0_i32, %c0_i32_0 : i32, i32
  }
  func.func @transform_2(%arg0: i32) -> (i32, i32) {
    %c0_i32 = arith.constant 0 : i32
    %c0_i32_0 = arith.constant 0 : i32
    %c0_i32_1 = arith.constant 0 : i32
    return %c0_i32, %c0_i32_0 : i32, i32
  }
  func.func @transform_3(%arg0: i32) -> (i32, i32) {
    %c0_i32 = arith.constant 0 : i32
    %c0_i32_0 = arith.constant 0 : i32
    %c0_i32_1 = arith.constant 0 : i32
    return %c0_i32, %c0_i32_0 : i32, i32
  }
  func.func @transform_4(%arg0: i32) -> (i32, i32, i32, i32) {
    %c0_i32 = arith.constant 0 : i32
    %c0_i32_0 = arith.constant 0 : i32
    %c0_i32_1 = arith.constant 0 : i32
    %c0_i32_2 = arith.constant 0 : i32
    %c0_i32_3 = arith.constant 0 : i32
    return %c0_i32, %c0_i32_0, %c0_i32_1, %c0_i32_2 : i32, i32, i32, i32
  }
  func.func @transform_5(%arg0: i32) -> (i32, i32) {
    %c0_i32 = arith.constant 0 : i32
    %c0_i32_0 = arith.constant 0 : i32
    %c0_i32_1 = arith.constant 0 : i32
    return %c0_i32, %c0_i32_0 : i32, i32
  }
  func.func @transform_6(%arg0: i32) -> (i32, i32) {
    %c0_i32 = arith.constant 0 : i32
    %c0_i32_0 = arith.constant 0 : i32
    %c0_i32_1 = arith.constant 0 : i32
    return %c0_i32, %c0_i32_0 : i32, i32
  }
  func.func @transform_7(%arg0: i32) -> (i32, i32) {
    %c0_i32 = arith.constant 0 : i32
    %c0_i32_0 = arith.constant 0 : i32
    %c0_i32_1 = arith.constant 0 : i32
    return %c0_i32, %c0_i32_0 : i32, i32
  }
  func.func @transform_8(%arg0: i32) -> (i32, i32) {
    %c0_i32 = arith.constant 0 : i32
    %c0_i32_0 = arith.constant 0 : i32
    %c0_i32_1 = arith.constant 0 : i32
    return %c0_i32, %c0_i32_0 : i32, i32
  }
  func.func @transform_9(%arg0: i32) -> (i32, i32) {
    %c0_i32 = arith.constant 0 : i32
    %c0_i32_0 = arith.constant 0 : i32
    %c0_i32_1 = arith.constant 0 : i32
    return %c0_i32, %c0_i32_0 : i32, i32
  }
  func.func @transform_10(%arg0: i32) -> (i32, i32) {
    %c0_i32 = arith.constant 0 : i32
    %c0_i32_0 = arith.constant 0 : i32
    %c0_i32_1 = arith.constant 0 : i32
    return %c0_i32, %c0_i32_0 : i32, i32
  }
  func.func @transform_11(%arg0: i32) -> (i32, i32) {
    %c0_i32 = arith.constant 0 : i32
    %c0_i32_0 = arith.constant 0 : i32
    %c0_i32_1 = arith.constant 0 : i32
    return %c0_i32, %c0_i32_0 : i32, i32
  }
  func.func @transform_12(%arg0: i32) -> (i32, i32) {
    %c0_i32 = arith.constant 0 : i32
    %c0_i32_0 = arith.constant 0 : i32
    %c0_i32_1 = arith.constant 0 : i32
    return %c0_i32, %c0_i32_0 : i32, i32
  }
  func.func @transform_13(%arg0: i32) -> (i32, i32, i32, i32) {
    %c0_i32 = arith.constant 0 : i32
    %c0_i32_0 = arith.constant 0 : i32
    %c0_i32_1 = arith.constant 0 : i32
    %c0_i32_2 = arith.constant 0 : i32
    return %arg0, %c0_i32, %c0_i32_0, %c0_i32_1 : i32, i32, i32, i32
  }
}

</mosaic_0001>

<bundles_post_ra>
// kernel: fwd.1
= control target key start
LH: loop header
LB: loop body
LE: loop exit
PB: predicated region body
PF: predicated region fallthrough
CT: control target
= control target key end

     0   :  { %s7044_s25 = smov 0   ;;  %s8298_s0 = inlined_call_operand.vmem [shape: bf16[2,16,1,16,128], index: 0, kind: input, shape index: {}]   ;;  %s8299_s1 = inlined_call_operand.vmem [shape: bf16[128,128], index: 1, kind: input, shape index: {}]   ;;  %s8300_s2 = inlined_call_operand.vmem [shape: f32[1,128], index: 2, kind: input, shape index: {}]   ;;  %s8301_s3 = inlined_call_operand.vmem [shape: f32[1,128], index: 3, kind: input, shape index: {}]   ;;  %s8302_s4 = inlined_call_operand.vmem [shape: bf16[3,3,128,128], index: 4, kind: input, shape index: {}]   ;;  %s8303_s5 = inlined_call_operand.vmem [shape: f32[1,128], index: 5, kind: input, shape index: {}]   ;;  %s8304_s6 = inlined_call_operand.vmem [shape: f32[1,128], index: 6, kind: input, shape index: {}]   ;;  %s8305_s7 = inlined_call_operand.vmem [shape: bf16[128,128], index: 7, kind: input, shape index: {}]   ;;  %s8306_s8 = inlined_call_operand.vmem [shape: f32[1,128], index: 8, kind: input, shape index: {}]   ;;  %s8307_s9 = inlined_call_operand.vmem [shape: f32[1,128], index: 9, kind: input, shape index: {}]   ;;  %s8308_s10 = inlined_call_operand.vmem [shape: bf16[128,128], index: 10, kind: input, shape index: {}]   ;;  %s8309_s11 = inlined_call_operand.vmem [shape: f32[1,128], index: 11, kind: input, shape index: {}]   ;;  %s8310_s12 = inlined_call_operand.vmem [shape: f32[1,128], index: 12, kind: input, shape index: {}]   ;;  %s8311_s13 = inlined_call_operand.vmem [shape: bf16[2,16,16,128], index: 13, kind: output, shape index: {}]  }
   0x1 LB: > { %s5265_s26 = sadd.s32 4294967295, %s6971_s25   ;;  %p5269_p0 = scmp.ge.s32.totalorder %s6971_s25, 1  ;;  %s6971_s25 = sphi %s7044_s25, %s23_s25  }
   0x2   : > { %p387_p1 = scmp.lt.s32.totalorder %s6971_s25, 3 }
   0x4   : > { %p388_p2 = pnand %p5269_p0, %p387_p1 }
   0x5   : > { %v6830_v0 = vld [vmem:[%s8299_s1] sm:$0xff] (!%p388_p2)   ;;  %p431_p3 = scmp.lt.s32.totalorder (!%p388_p2), %s5265_s26, 1  ;;  %v6831_v1 = vld [vmem:[%s8299_s1 + $0x8] sm:$0xff] (!%p388_p2)   ;;  %v6832_v2 = vld [vmem:[%s8299_s1 + $0x10] sm:$0xff] (!%p388_p2)   ;;  %v6973_v33 = vmov (!%p388_p2), 0   ;;  %vm2158_vm0 = vcmask (!%p388_p2), 1043456  }
   0x6   : > { %391 = sbr.rel (%p388_p2) target bundleno = 1182 (0x49e), region = 72  ;;  %5989 = vmatprep.subr.bf16.mxu0 (!%p388_p2), %v6830_v0  ;;  %v6833_v3 = vld [vmem:[%s8299_s1 + $0x18] sm:$0xff] (!%p388_p2)   ;;  %v6834_v5 = vld [vmem:[%s8299_s1 + $0x20] sm:$0xff] (!%p388_p2)   ;;  %v6835_v6 = vld [vmem:[%s8299_s1 + $0x28] sm:$0xff] (!%p388_p2)   ;;  %925 = vst [vmem:[#allocation2 + $0x20] sm:$0xff] (!%p388_p2), %v6973_v33 }
   0x7   : > { %5990 = vmatpush3.bf16.msra.mxu0 (!%p388_p2), %v6830_v0  ;;  %v6836_v7 = vld [vmem:[%s8299_s1 + $0x30] sm:$0xff] (!%p388_p2)   ;;  %v6837_v8 = vld [vmem:[%s8299_s1 + $0x38] sm:$0xff] (!%p388_p2)   ;;  %v6854_v9 = vld [vmem:[%s8302_s4 + $0x40] sm:$0xff] (!%p388_p2)   ;;  %926 = vst [vmem:[#allocation2 + $0x28] sm:$0xff] (!%p388_p2), %v6973_v33  ;;  %vm1074_vm1 = vsmask.f32 (!%p388_p2), 4352 }
   0x8   : > { %5991 = vmatprep.subr.bf16.mxu0 (!%p388_p2), %v6831_v1  ;;  %v6855_v10 = vld [vmem:[%s8302_s4 + $0x48] sm:$0xff] (!%p388_p2)   ;;  %6181 = vmatprep.subr.bf16.mxu1 (!%p388_p2), %v6854_v9  ;;  %v6856_v11 = vld [vmem:[%s8302_s4 + $0xc0] sm:$0xff] (!%p388_p2)   ;;  %v6857_v27 = vld [vmem:[%s8302_s4 + $0x50] sm:$0xff] (!%p388_p2)   ;;  %921 = vst [vmem:[#allocation2] sm:$0xff] (!%p388_p2), %v6973_v33  ;;  %vm3027_vm2 = vsmask.f32 (!%p388_p2), 3328 }
   0x9   : > { %6182 = vmatpush3.bf16.msra.mxu1 (!%p388_p2), %v6854_v9  ;;  %v6858_v28 = vld [vmem:[%s8302_s4 + $0xc8] sm:$0xff] (!%p388_p2)   ;;  %v6859_v29 = vld [vmem:[%s8302_s4 + $0x58] sm:$0xff] (!%p388_p2)   ;;  %v6860_v30 = vld [vmem:[%s8302_s4 + $0xd0] sm:$0xff] (!%p388_p2)   ;;  %922 = vst [vmem:[#allocation2 + $0x8] sm:$0xff] (!%p388_p2), %v6973_v33 }
   0xa   : > { %6183 = vmatprep.subr.bf16.mxu1 (!%p388_p2), %v6855_v10  ;;  %v6861_v31 = vld [vmem:[%s8302_s4 + $0x60] sm:$0xff] (!%p388_p2)   ;;  %v6862_v32 = vld [vmem:[%s8302_s4 + $0xd8] sm:$0xff] (!%p388_p2)   ;;  %923 = vst [vmem:[#allocation2 + $0x10] sm:$0xff] (!%p388_p2), %v6973_v33  ;;  %924 = vst [vmem:[#allocation2 + $0x18] sm:$0xff] (!%p388_p2), %v6973_v33 }
   0xb   : > { %5992 = vmatpush3.bf16.msra.mxu0 (!%p388_p2), %v6831_v1  ;;  %927 = vst [vmem:[#allocation2 + $0x30] sm:$0xff] (!%p388_p2), %v6973_v33  ;;  %928 = vst [vmem:[#allocation2 + $0x38] sm:$0xff] (!%p388_p2), %v6973_v33  ;;  %v6863_v34 = vld [vmem:[%s8302_s4 + $0x68] sm:$0xff] (!%p388_p2)   ;;  %v6864_v35 = vld [vmem:[%s8302_s4 + $0xe0] sm:$0xff] (!%p388_p2)  }
   0xc   : > { %5993 = vmatprep.subr.bf16.mxu0 (!%p388_p2), %v6832_v2  ;;  %929 = vst [vmem:[#allocation2 + $0x40] sm:$0xff] (!%p388_p2), %v6973_v33  ;;  %930 = vst [vmem:[#allocation2 + $0x48] sm:$0xff] (!%p388_p2), %v6973_v33  ;;  %v6865_v36 = vld [vmem:[%s8302_s4 + $0x70] sm:$0xff] (!%p388_p2)   ;;  %v6866_v37 = vld [vmem:[%s8302_s4 + $0xe8] sm:$0xff] (!%p388_p2)  }
   0xd   : > { %s8317_s26 = smov (!%p431_p3, %s5265_s26), 1  ;;  %6184 = vmatpush3.bf16.msra.mxu1 %v6855_v10  ;;  %931 = vst [vmem:[#allocation2 + $0x50] sm:$0xff] %v6973_v33  ;;  %932 = vst [vmem:[#allocation2 + $0x58] sm:$0xff] %v6973_v33  ;;  %v6867_v38 = vld [vmem:[%s8302_s4 + $0x78] sm:$0xff]   ;;  %v6868_v39 = vld [vmem:[%s8302_s4 + $0xf0] sm:$0xff]  }
   0xe   : > { %s5572_s16 = sshll.u32 %s8317_s26, 7  ;;  %6185 = vmatprep.subr.bf16.mxu1 %v6857_v27  ;;  %933 = vst [vmem:[#allocation2 + $0x60] sm:$0xff] %v6973_v33  ;;  %934 = vst [vmem:[#allocation2 + $0x68] sm:$0xff] %v6973_v33  ;;  %v6870_v45 = vld [vmem:[%s8302_s4 + $0xf8] sm:$0xff]   ;;  %v7157_v46 = vld [vmem:[%s8302_s4 + $0x100] sm:$0xff]  }
   0xf   : > { %s7069_s19 = scalar_lea.vmem %s8298_s0, %s5572_s16  ;;  %5994 = vmatpush3.bf16.msra.mxu0 %v6832_v2  ;;  %935 = vst [vmem:[#allocation2 + $0x70] sm:$0xff] %v6973_v33  ;;  %936 = vst [vmem:[#allocation2 + $0x78] sm:$0xff] %v6973_v33  ;;  %v2108_v41 = vld [vmem:[#allocation2] sm:$0xf0]  ;;  %v7169_v48 = vld [vmem:[%s8300_s2] ss:$0 sm:$0xff]  ;;  %s8146_s30 = scalar_lea.vmem %s8311_s13, %s5572_s16 }
  0x10   : > { %v6838_v4 = vld [vmem:[%s7069_s19] sm:$0xff]   ;;  %5995 = vmatprep.subr.bf16.mxu0 %v6833_v3  ;;  %v6839_v12 = vld [vmem:[%s7069_s19 + $0x8] sm:$0xff]   ;;  %v6840_v13 = vld [vmem:[%s7069_s19 + $0x10] sm:$0xff]   ;;  %937 = vst [vmem:[#allocation2 + $0x80] sm:$0xff] %v6973_v33  ;;  %v2159_v42 = vrot.slane %v2108_v41, 4 }
  0x11   : > { %6005 = vmatprep.mubr.bf16.mxu0 %v6838_v4  ;;  %v6841_v14 = vld [vmem:[%s7069_s19 + $0x18] sm:$0xff]   ;;  %v6842_v15 = vld [vmem:[%s7069_s19 + $0x20] sm:$0xff]   ;;  %v6843_v16 = vld [vmem:[%s7069_s19 + $0x28] sm:$0xff]   ;;  %6186 = vmatpush3.bf16.msra.mxu1 %v6857_v27  ;;  %938 = vst [vmem:[#allocation2 + $0x88] sm:$0xff] %v6973_v33 }
  0x12   : > { %v6844_v17 = vld [vmem:[%s7069_s19 + $0x30] sm:$0xff]   ;;  %v6845_v18 = vld [vmem:[%s7069_s19 + $0x38] sm:$0xff]   ;;  %v6846_v19 = vld [vmem:[%s7069_s19 + $0x40] sm:$0xff]   ;;  %6187 = vmatprep.subr.bf16.mxu1 %v6859_v29  ;;  %939 = vst [vmem:[#allocation2 + $0x90] sm:$0xff] %v6973_v33 }
  0x13   : > { %5996 = vmatpush3.bf16.msra.mxu0 %v6833_v3  ;;  %v6847_v20 = vld [vmem:[%s7069_s19 + $0x48] sm:$0xff]   ;;  %v6848_v21 = vld [vmem:[%s7069_s19 + $0x50] sm:$0xff]   ;;  %v6849_v22 = vld [vmem:[%s7069_s19 + $0x58] sm:$0xff]   ;;  %940 = vst [vmem:[#allocation2 + $0x98] sm:$0xff] %v6973_v33 }
  0x14   : > { %5997 = vmatprep.subr.bf16.mxu0 %v6834_v5  ;;  %v6850_v23 = vld [vmem:[%s7069_s19 + $0x60] sm:$0xff]   ;;  %v6851_v24 = vld [vmem:[%s7069_s19 + $0x68] sm:$0xff]   ;;  %v6852_v25 = vld [vmem:[%s7069_s19 + $0x70] sm:$0xff]   ;;  %941 = vst [vmem:[#allocation2 + $0xa0] sm:$0xff] %v6973_v33 }
  0x15   : > { %v6853_v26 = vld [vmem:[%s7069_s19 + $0x78] sm:$0xff]   ;;  %6188 = vmatpush3.bf16.msra.mxu1 %v6859_v29  ;;  %942 = vst [vmem:[#allocation2 + $0xa8] sm:$0xff] %v6973_v33  ;;  %943 = vst [vmem:[#allocation2 + $0xb0] sm:$0xff] %v6973_v33  ;;  %v7147_v40 = vld [vmem:[#allocation2 + $0x8] sm:$0xf] }
  0x16   : > { %6189 = vmatprep.subr.bf16.mxu1 %v6861_v31  ;;  %944 = vst [vmem:[#allocation2 + $0xb8] sm:$0xff] %v6973_v33  ;;  %945 = vst [vmem:[#allocation2 + $0xc0] sm:$0xff] %v6973_v33  ;;  %v2160_v43 = vrot.slane %v7147_v40, 4  ;;  %v7163_v47 = vld [vmem:[%s8302_s4] sm:$0xff]  }
  0x17   : > { %5998 = vmatpush3.bf16.msra.mxu0 %v6834_v5  ;;  %946 = vst [vmem:[#allocation2 + $0xc8] sm:$0xff] %v6973_v33  ;;  %947 = vst [vmem:[#allocation2 + $0xd0] sm:$0xff] %v6973_v33  ;;  %v7174_v50 = vld [vmem:[%s8301_s3] ss:$0 sm:$0xff] }
  0x18   : > { %5999 = vmatprep.subr.bf16.mxu0 %v6835_v6  ;;  %948 = vst [vmem:[#allocation2 + $0xd8] sm:$0xff] %v6973_v33  ;;  %949 = vst [vmem:[#allocation2 + $0xe0] sm:$0xff] %v6973_v33  ;;  %v2161_v44 = vsel %vm2158_vm0, %v2159_v42, %v2160_v43 }
  0x19   : > { %950 = vst [vmem:[#allocation2 + $0xe8] sm:$0xff] %v6973_v33  ;;  %951 = vst [vmem:[#allocation2 + $0xf0] sm:$0xff] %v6973_v33  ;;  %6190 = vmatpush3.bf16.msra.mxu1 %v6861_v31  ;;  %6197 = vmatprep.mubr.bf16.mxu1 %v2161_v44 }
  0x1a   : > { %952 = vst [vmem:[#allocation2 + $0xf8] sm:$0xff] %v6973_v33  ;;  %953 = vst [vmem:[#allocation2 + $0x100] sm:$0xff] %v6973_v33  ;;  %6191 = vmatprep.subr.bf16.mxu1 %v6863_v34 }
  0x1b   : > { %6000 = vmatpush3.bf16.msra.mxu0 %v6835_v6  ;;  %954 = vst [vmem:[#allocation2 + $0x108] sm:$0xff] %v6973_v33  ;;  %955 = vst [vmem:[#allocation2 + $0x110] sm:$0xff] %v6973_v33 }
  0x1c   : > { %6001 = vmatprep.subr.bf16.mxu0 %v6836_v7  ;;  %956 = vst [vmem:[#allocation2 + $0x118] sm:$0xff] %v6973_v33  ;;  %v7196_v33 = vld [vmem:[#allocation2] sm:$0xf8] }
  0x1d   : > { %6192 = vmatpush3.bf16.msra.mxu1 %v6863_v34 }
  0x1e   : > { %6193 = vmatprep.subr.bf16.mxu1 %v6865_v36 }
  0x1f   : > { %6002 = vmatpush3.bf16.msra.mxu0 %v6836_v7 }
  0x20   : > { %6003 = vmatprep.subr.bf16.mxu0 %v6837_v8 }
  0x21   : > { %6194 = vmatpush3.bf16.msra.mxu1 %v6865_v36 }
  0x22   : > { %6195 = vmatprep.subr.bf16.mxu1 %v6867_v38 }
  0x23   : > { %6004 = vmatpush3.bf16.msra.mxu0 %v6837_v8 }
  0x24   : > { %6037 = vmatprep.subr.bf16.mxu0 %v6856_v11 }
  0x25   : > { %6196 = vmatpush3.bf16.msra.mxu1 %v6867_v38 }
  0x26   : > { %6006 = vmatmul.mubr.bf16.vlgmr.msra.gmra.mrb[0].mxu0 %v6839_v12  ;;  %6229 = vmatprep.subr.bf16.mxu1 %v7157_v46 }
  0x27   : > { %6009 = vmatprep.mubr.bf16.mxu0 %v6840_v13  ;;  %6038 = vmatpush3.bf16.msra.mxu0 %v6856_v11 }
  0x28   : > { %6039 = vmatprep.subr.bf16.mxu0 %v6858_v28 }
  0x2b   : > { %6040 = vmatpush3.bf16.msra.mxu0 %v6858_v28 }
  0x2c   : > { %6041 = vmatprep.subr.bf16.mxu0 %v6860_v30 }
  0x2e   : > { %6010 = vmatmul.mubr.bf16.gmra.mrb[4].mxu0 %v6841_v14 }
  0x2f   : > { %6013 = vmatprep.mubr.bf16.mxu0 %v6842_v15  ;;  %6042 = vmatpush3.bf16.msra.mxu0 %v6860_v30 }
  0x30   : > { %6043 = vmatprep.subr.bf16.mxu0 %v6862_v32 }
  0x33   : > { %6044 = vmatpush3.bf16.msra.mxu0 %v6862_v32 }
  0x34   : > { %6045 = vmatprep.subr.bf16.mxu0 %v6864_v35 }
  0x36   : > { %6014 = vmatmul.mubr.bf16.gmra.mrb[8].mxu0 %v6843_v16 }
  0x37   : > { %6017 = vmatprep.mubr.bf16.mxu0 %v6844_v17  ;;  %6046 = vmatpush3.bf16.msra.mxu0 %v6864_v35 }
  0x38   : > { %6047 = vmatprep.subr.bf16.mxu0 %v6866_v37 }
  0x3b   : > { %6048 = vmatpush3.bf16.msra.mxu0 %v6866_v37 }
  0x3c   : > { %6049 = vmatprep.subr.bf16.mxu0 %v6868_v39 }
  0x3e   : > { %6018 = vmatmul.mubr.bf16.gmra.mrb[12].mxu0 %v6845_v18 }
  0x3f   : > { %6021 = vmatprep.mubr.bf16.mxu0 %v6846_v19  ;;  %6050 = vmatpush3.bf16.msra.mxu0 %v6868_v39 }
  0x40   : > { %6051 = vmatprep.subr.bf16.mxu0 %v6870_v45 }
  0x43   : > { %6052 = vmatpush3.bf16.msra.mxu0 %v6870_v45 }
  0x44   : > { %6085 = vmatprep.subr.bf16.mxu0 %v7163_v47 }
  0x46   : > { %6022 = vmatmul.mubr.bf16.gmra.mrb[16].mxu0 %v6847_v20 }
  0x47   : > { %6025 = vmatprep.mubr.bf16.mxu0 %v6848_v21 }
  0x4e   : > { %6026 = vmatmul.mubr.bf16.gmra.mrb[20].mxu0 %v6849_v22 }
  0x4f   : > { %6029 = vmatprep.mubr.bf16.mxu0 %v6850_v23 }
  0x56   : > { %6030 = vmatmul.mubr.bf16.gmra.mrb[24].mxu0 %v6851_v24 }
  0x57   : > { %6033 = vmatprep.mubr.bf16.mxu0 %v6852_v25 }
  0x5e   : > { %6034 = vmatmul.mubr.bf16.gmra.mrb[28].mxu0 %v6853_v26 }
  0xf9   : > { %v6007_v49 = vpop.f32.mrb[0].mxu0 }
  0xfa   : > { %v804_v51 = vmul.f32 %v6007_v49, %v7169_v48  ;;  %v668_v52 = vpop.f32.mrb[1].mxu0 }
  0xfb   : > { %v802_v53 = vmul.f32 %v7169_v48, %v668_v52  ;;  %v6008_v54 = vpop.f32.mrb[2].mxu0 }
  0xfc   : > { %v843_v55 = vadd.f32 %v7174_v50, %v804_v51  ;;  %v805_v56 = vmul.f32 %v6008_v54, %v7169_v48  ;;  %v671_v57 = vpop.f32.mrb[3].mxu0 }
  0xfd   : > { %v841_v58 = vadd.f32 %v7174_v50, %v802_v53  ;;  %v803_v59 = vmul.f32 %v7169_v48, %v671_v57 }
  0xfe   : > { %v844_v60 = vadd.f32 %v7174_v50, %v805_v56  ;;  %v875_v62 = vmax.f32 %v843_v55, 0.0  ;;  %v6871_v56 = vld [vmem:[%s8302_s4 + $0x108] sm:$0xff]  }
  0xff   : > { %v842_v61 = vadd.f32 %v7174_v50, %v803_v59  ;;  %v873_v0 = vmax.f32 %v841_v58, 0.0 }
 0x100   : > { %v876_v63 = vmax.f32 %v844_v60, 0.0 }
 0x101   : > { %v874_v1 = vmax.f32 %v842_v61, 0.0  ;;  %v6011_v2 = vpop.f32.mrb[4].mxu0 }
 0x102   : > { %v906_v3 = vpack.c.bf16 %v876_v63, %v875_v62  ;;  %v808_v4 = vmul.f32 %v6011_v2, %v7169_v48  ;;  %v684_v5 = vpop.f32.mrb[5].mxu0 }
 0x103   : > { %v905_v6 = vpack.c.bf16 %v874_v1, %v873_v0  ;;  %v806_v7 = vmul.f32 %v7169_v48, %v684_v5  ;;  %v6012_v8 = vpop.f32.mrb[6].mxu0 }
 0x104   : > { %v974_v9 = vrot.slane %v906_v3, 4  ;;  %v847_v10 = vadd.f32 %v7174_v50, %v808_v4  ;;  %v809_v11 = vmul.f32 %v6012_v8, %v7169_v48  ;;  %v687_v12 = vpop.f32.mrb[7].mxu0 }
 0x105   : > { %v973_v13 = vrot.slane %v905_v6, 4  ;;  %v845_v14 = vadd.f32 %v7174_v50, %v806_v7  ;;  %v807_v15 = vmul.f32 %v7169_v48, %v687_v12 }
 0x106   : > { %1008 = vst [vmem:[#allocation2 + $0x28] ss:$-4 sps:$4 sm:$0xff] %v974_v9   ;;  %v848_v16 = vadd.f32 %v7174_v50, %v809_v11  ;;  %v879_v18 = vmax.f32 %v847_v10, 0.0 }
 0x107   : > { %1006 = vst [vmem:[#allocation2 + $0x18] ss:$-4 sps:$4 sm:$0xff] %v973_v13   ;;  %v846_v17 = vadd.f32 %v7174_v50, %v807_v15  ;;  %v877_v20 = vmax.f32 %v845_v14, 0.0  ;;  %v6872_v15 = vld [vmem:[%s8302_s4 + $0x110] sm:$0xff]  }
 0x108   : > { %v880_v19 = vmax.f32 %v848_v16, 0.0 }
 0x109   : > { %v878_v21 = vmax.f32 %v846_v17, 0.0  ;;  %v6015_v22 = vpop.f32.mrb[8].mxu0 }
 0x10a   : > { %v908_v23 = vpack.c.bf16 %v880_v19, %v879_v18  ;;  %v812_v24 = vmul.f32 %v6015_v22, %v7169_v48  ;;  %v700_v25 = vpop.f32.mrb[9].mxu0 }
 0x10b   : > { %v907_v26 = vpack.c.bf16 %v878_v21, %v877_v20  ;;  %v810_v27 = vmul.f32 %v7169_v48, %v700_v25  ;;  %v6016_v28 = vpop.f32.mrb[10].mxu0 }
 0x10c   : > { %v976_v29 = vrot.slane %v908_v23, 4  ;;  %v851_v30 = vadd.f32 %v7174_v50, %v812_v24  ;;  %v813_v31 = vmul.f32 %v6016_v28, %v7169_v48  ;;  %v703_v32 = vpop.f32.mrb[11].mxu0  ;;  %v6873_v28 = vld [vmem:[%s8302_s4 + $0x118] sm:$0xff]  }
 0x10d   : > { %v975_v34 = vrot.slane %v907_v26, 4  ;;  %v849_v35 = vadd.f32 %v7174_v50, %v810_v27  ;;  %v811_v36 = vmul.f32 %v7169_v48, %v703_v32  ;;  %v1043_v37 = vld [vmem:[#allocation2 + $0x28] sm:$0xf]  ;;  %v2110_v38 = vld [vmem:[#allocation2 + $0x20] sm:$0xf0] }
 0x10e   : > { %1012 = vst [vmem:[#allocation2 + $0x48] ss:$-4 sps:$4 sm:$0xff] %v976_v29   ;;  %v852_v39 = vadd.f32 %v7174_v50, %v813_v31  ;;  %v7201_v41 = vld [vmem:[#allocation2 + $0x18] sm:$0xf]  ;;  %v2109_v42 = vld [vmem:[#allocation2 + $0x10] sm:$0xf0] }
 0x10f   : > { %v1118_v43 = vshrl.u32 %v1043_v37, 16  ;;  %1010 = vst [vmem:[#allocation2 + $0x38] ss:$-4 sps:$4 sm:$0xff] %v975_v34   ;;  %v850_v45 = vadd.f32 %v7174_v50, %v811_v36  ;;  %v2162_v49 = vrot.slane %v2109_v42, 4  ;;  %v2163_v51 = vrot.slane %v7201_v41, 4 }
 0x110   : > { %v883_v53 = vmax.f32 %v851_v30, 0.0  ;;  %v881_v54 = vmax.f32 %v849_v35, 0.0  ;;  %v884_v55 = vmax.f32 %v852_v39, 0.0  ;;  %v1121_v61 = vshll.u32 %v1043_v37, 16  ;;  %v1040_v63 = vld [vmem:[#allocation2 + $0x10] sm:$0xf8] }
 0x111   : > { %v882_v58 = vmax.f32 %v850_v45, 0.0  ;;  %v6019_v59 = vpop.f32.mrb[12].mxu0  ;;  %v7212_v60 = vsel %vm2158_vm0, %v2162_v49, %v2163_v51  ;;  %v2165_v62 = vrot.slane %v2110_v38, 4  ;;  %v7216_v3 = vrot.slane %v1118_v43, 3  ;;  %v1042_v19 = vld [vmem:[#allocation2 + $0x20] sm:$0xf8] }
 0x112   : > { %v910_v0 = vpack.c.bf16 %v884_v55, %v883_v53  ;;  %v816_v1 = vmul.f32 %v6019_v59, %v7169_v48  ;;  %v716_v2 = vpop.f32.mrb[13].mxu0  ;;  %6198 = vmatmul.mubr.bf16.vlgmr.msra.gmra.mrb[0].mxu1 %v7212_v60  ;;  %v7221_v8 = vrot.slane %v1121_v61, 4  ;;  %v2166_v9 = vrot.slane %v1043_v37, 4 }
 0x113   : > { %v909_v5 = vpack.c.bf16 %v882_v58, %v881_v54  ;;  %v814_v6 = vmul.f32 %v7169_v48, %v716_v2  ;;  %6230 = vmatpush3.bf16.msra.mxu1 %v7157_v46  ;;  %v6020_v7 = vpop.f32.mrb[14].mxu0  ;;  %v1093_v14 = vshrl.u32 %v1040_v63, 16  ;;  %v1096_v23 = vshll.u32 %v1040_v63, 16 }
 0x114   : > { %v978_v10 = vrot.slane %v910_v0, 4  ;;  %v855_v11 = vadd.f32 %v7174_v50, %v816_v1  ;;  %v817_v12 = vmul.f32 %v6020_v7, %v7169_v48  ;;  %v719_v13 = vpop.f32.mrb[15].mxu0  ;;  %6231 = vmatprep.subr.bf16.mxu1 %v6871_v56  ;;  %v7230_v46 = vsel %vm2158_vm0, %v2165_v62, %v2166_v9  ;;  %v6874_v9 = vld [vmem:[%s8302_s4 + $0x120] sm:$0xff]  }
 0x115   : > { %v977_v16 = vrot.slane %v909_v5, 4  ;;  %v853_v17 = vadd.f32 %v7174_v50, %v814_v6  ;;  %v815_v18 = vmul.f32 %v7169_v48, %v719_v13  ;;  %6201 = vmatprep.mubr.bf16.mxu1 %v7230_v46  ;;  %v1095_v22 = vrot.slane %v1093_v14, 3  ;;  %v2112_v59 = vld [vmem:[#allocation2 + $0x40] sm:$0xf0]  ;;  %v7248_v1 = vld [vmem:[#allocation2 + $0x48] sm:$0xf] }
 0x116   : > { %1016 = vst [vmem:[#allocation2 + $0x68] ss:$-4 sps:$4 sm:$0xff] %v978_v10   ;;  %v887_v20 = vmax.f32 %v855_v11, 0.0  ;;  %v856_v21 = vadd.f32 %v7174_v50, %v817_v12  ;;  %v1101_v26 = vshrl.u32 %v7201_v41, 16  ;;  %v1104_v27 = vshll.u32 %v7201_v41, 16  ;;  %v6877_v10 = vld [vmem:[%s8302_s4 + $0x8] sm:$0xff]  }
 0x117   : > { %1014 = vst [vmem:[#allocation2 + $0x58] ss:$-4 sps:$4 sm:$0xff] %v977_v16   ;;  %v885_v24 = vmax.f32 %v853_v17, 0.0  ;;  %v854_v25 = vadd.f32 %v7174_v50, %v815_v18  ;;  %6232 = vmatpush3.bf16.msra.mxu1 %v6871_v56  ;;  %v1098_v30 = vrot.slane %v1096_v23, 4  ;;  %v1110_v31 = vshrl.u32 %v1042_v19, 16 }
 0x118   : > { %v888_v29 = vmax.f32 %v856_v21, 0.0  ;;  %v1113_v32 = vshll.u32 %v1042_v19, 16  ;;  %v7241_v34 = vld [vmem:[#allocation2 + $0x38] sm:$0xf]  ;;  %6233 = vmatprep.subr.bf16.mxu1 %v6872_v15  ;;  %v1103_v36 = vrot.slane %v1101_v26, 3  ;;  %v1106_v37 = vrot.slane %v1104_v27, 4 }
 0x119   : > { %v886_v35 = vmax.f32 %v854_v25, 0.0  ;;  %v1124_v38 = vor.u32 %v7221_v8, %v7216_v3  ;;  %v6023_v39 = vpop.f32.mrb[16].mxu0  ;;  %v2111_v41 = vld [vmem:[#allocation2 + $0x30] sm:$0xf0]  ;;  %v1099_v43 = vor.u32 %v1098_v30, %v1095_v22  ;;  %v1112_v45 = vrot.slane %v1110_v31, 3  ;;  %v6876_v30 = vld [vmem:[%s8302_s4 + $0x128] sm:$0xff]  }
 0x11a   : > { %v912_v42 = vpack.c.bf16 %v888_v29, %v887_v20  ;;  %v1115_v49 = vrot.slane %v1113_v32, 4  ;;  %v732_v51 = vpop.f32.mrb[17].mxu0  ;;  %v1107_v54 = vor.u32 %v1106_v37, %v1103_v36  ;;  %v820_v55 = vmul.f32 %v6023_v39, %v7169_v48  ;;  %v1044_v8 = vld [vmem:[#allocation2 + $0x30] sm:$0xf8] }
 0x11b   : > { %v911_v53 = vpack.c.bf16 %v886_v35, %v885_v24  ;;  %v818_v56 = vmul.f32 %v7169_v48, %v732_v51  ;;  %v6024_v58 = vpop.f32.mrb[18].mxu0  ;;  %6234 = vmatpush3.bf16.msra.mxu1 %v6872_v15  ;;  %v2168_v63 = vrot.slane %v2111_v41, 4  ;;  %v2169_v0 = vrot.slane %v7241_v34, 4  ;;  %v1046_v15 = vld [vmem:[#allocation2 + $0x40] sm:$0xf8] }
 0x11c   : > { %v980_v61 = vrot.slane %v912_v42, 4  ;;  %v1116_v62 = vor.u32 %v1115_v49, %v1112_v45  ;;  %v735_v2 = vpop.f32.mrb[19].mxu0  ;;  %6235 = vmatprep.subr.bf16.mxu1 %v6873_v28  ;;  %v7251_v5 = vsel %vm1074_vm1, %v1099_v43, %v1107_v54  ;;  %v859_v6 = vadd.f32 %v7174_v50, %v820_v55 }
 0x11d   : > { %v979_v3 = vrot.slane %v911_v53, 4  ;;  %v857_v7 = vadd.f32 %v7174_v50, %v818_v56  ;;  %6053 = vmatprep.mubr.bf16.mxu0 %v7251_v5  ;;  %v7266_v12 = vsel %vm2158_vm0, %v2168_v63, %v2169_v0  ;;  %v821_v13 = vmul.f32 %v6024_v58, %v7169_v48  ;;  %v7290_v51 = vld [vmem:[#allocation2 + $0x68] sm:$0xf] }
 0x11e   : > { %1020 = vst [vmem:[#allocation2 + $0x88] ss:$-4 sps:$4 sm:$0xff] %v980_v61   ;;  %v7263_v11 = vsel %vm1074_vm1, %v1116_v62, %v1124_v38  ;;  %v2171_v14 = vrot.slane %v2112_v59, 4  ;;  %v891_v16 = vmax.f32 %v859_v6, 0.0  ;;  %6202 = vmatmul.mubr.bf16.gmra.mrb[4].mxu1 %v7266_v12  ;;  %v2172_v18 = vrot.slane %v7248_v1, 4  ;;  %v6879_v62 = vld [vmem:[%s8302_s4 + $0x130] sm:$0xff]  }
 0x11f   : > { %1018 = vst [vmem:[#allocation2 + $0x78] ss:$-4 sps:$4 sm:$0xff] %v979_v3   ;;  %6054 = vmatmul.mubr.bf16.vlgmr.msra.gmra.mrb[32].mxu0 %v7263_v11  ;;  %v889_v17 = vmax.f32 %v857_v7, 0.0  ;;  %v819_v19 = vmul.f32 %v7169_v48, %v735_v2  ;;  %v860_v20 = vadd.f32 %v7174_v50, %v821_v13  ;;  %v1127_v21 = vshrl.u32 %v1044_v8, 16  ;;  %6236 = vmatpush3.bf16.msra.mxu1 %v6873_v28  ;;  %v6878_v28 = vld [vmem:[%s8302_s4 + $0x10] sm:$0xff]   ;;  %v6880_v6 = vld [vmem:[%s8302_s4 + $0x18] sm:$0xff]  }
 0x120   : > { %v1130_v22 = vshll.u32 %v1044_v8, 16  ;;  %v1135_v23 = vshrl.u32 %v7241_v34, 16  ;;  %6086 = vmatpush3.bf16.msra.mxu0 %v7163_v47  ;;  %v7277_v24 = vsel %vm2158_vm0, %v2171_v14, %v2172_v18  ;;  %v1138_v26 = vshll.u32 %v7241_v34, 16  ;;  %6237 = vmatprep.subr.bf16.mxu1 %v6874_v9  ;;  %v7293_v59 = vld [vmem:[#allocation2 + $0x58] sm:$0xf] }
 0x121   : > { %v858_v25 = vadd.f32 %v7174_v50, %v819_v19  ;;  %v1144_v27 = vshrl.u32 %v1046_v15, 16  ;;  %v6027_v29 = vpop.f32.mrb[20].mxu0  ;;  %6087 = vmatprep.subr.bf16.mxu0 %v6877_v10  ;;  %v892_v47 = vmax.f32 %v860_v20, 0.0  ;;  %6205 = vmatprep.mubr.bf16.mxu1 %v7277_v24  ;;  %v1129_v31 = vrot.slane %v1127_v21, 3  ;;  %v2113_v61 = vld [vmem:[#allocation2 + $0x50] sm:$0xf0] }
 0x122   : > { %v1132_v32 = vrot.slane %v1130_v22, 4  ;;  %v1137_v35 = vrot.slane %v1135_v23, 3  ;;  %v748_v36 = vpop.f32.mrb[21].mxu0  ;;  %v1140_v37 = vrot.slane %v1138_v26, 4  ;;  %v1147_v39 = vshll.u32 %v1046_v15, 16  ;;  %v6882_v18 = vld [vmem:[%s8302_s4 + $0x138] sm:$0xff]  }
 0x123   : > { %v890_v34 = vmax.f32 %v858_v25, 0.0  ;;  %v1146_v38 = vrot.slane %v1144_v27, 3  ;;  %v6028_v41 = vpop.f32.mrb[22].mxu0  ;;  %v914_v42 = vpack.c.bf16 %v892_v47, %v891_v16  ;;  %v1152_v45 = vshrl.u32 %v7248_v1, 16  ;;  %6238 = vmatpush3.bf16.msra.mxu1 %v6874_v9  ;;  %v2114_v3 = vld [vmem:[#allocation2 + $0x60] sm:$0xf0] }
 0x124   : > { %v1133_v43 = vor.u32 %v1132_v32, %v1129_v31  ;;  %v1155_v49 = vshll.u32 %v7248_v1, 16  ;;  %v751_v53 = vpop.f32.mrb[23].mxu0  ;;  %6088 = vmatpush3.bf16.msra.mxu0 %v6877_v10  ;;  %v1141_v55 = vor.u32 %v1140_v37, %v1137_v35  ;;  %v1149_v56 = vrot.slane %v1147_v39, 4  ;;  %6239 = vmatprep.subr.bf16.mxu1 %v6876_v30  ;;  %v1050_v23 = vld [vmem:[#allocation2 + $0x60] sm:$0xf8] }
 0x125   : > { %v913_v54 = vpack.c.bf16 %v890_v34, %v889_v17  ;;  %v824_v58 = vmul.f32 %v6027_v29, %v7169_v48  ;;  %6089 = vmatprep.subr.bf16.mxu0 %v6878_v28  ;;  %v982_v63 = vrot.slane %v914_v42, 4  ;;  %v1154_v0 = vrot.slane %v1152_v45, 3  ;;  %v1048_v17 = vld [vmem:[#allocation2 + $0x50] sm:$0xf8]  ;;  %v6881_v31 = vld [vmem:[%s8302_s4 + $0x20] sm:$0xff]  }
 0x126   : > { %v1157_v1 = vrot.slane %v1155_v49, 4  ;;  %v822_v2 = vmul.f32 %v7169_v48, %v748_v36  ;;  %v7303_v8 = vsel %vm1074_vm1, %v1133_v43, %v1141_v55  ;;  %v1150_v9 = vor.u32 %v1149_v56, %v1146_v38 }
 0x127   : > { %v981_v7 = vrot.slane %v913_v54, 4  ;;  %v863_v10 = vadd.f32 %v7174_v50, %v824_v58  ;;  %1024 = vst [vmem:[#allocation2 + $0xa8] ss:$-4 sps:$4 sm:$0xff] %v982_v63   ;;  %6057 = vmatprep.mubr.bf16.mxu0 %v7303_v8  ;;  %v2174_v15 = vrot.slane %v2113_v61, 4  ;;  %v2175_v16 = vrot.slane %v7293_v59, 4  ;;  %6240 = vmatpush3.bf16.msra.mxu1 %v6876_v30  ;;  %v7337_v54 = vld [vmem:[%s8302_s4 + $0x1c0] sm:$0xff]  }
 0x128   : > { %v1158_v13 = vor.u32 %v1157_v1, %v1154_v0  ;;  %v861_v14 = vadd.f32 %v7174_v50, %v822_v2  ;;  %v825_v20 = vmul.f32 %v6028_v41, %v7169_v48  ;;  %v2177_v21 = vrot.slane %v2114_v3, 4  ;;  %6090 = vmatpush3.bf16.msra.mxu0 %v6878_v28  ;;  %6241 = vmatprep.subr.bf16.mxu1 %v6879_v62  ;;  %v7343_v2 = vld [vmem:[#allocation2 + $0x88] sm:$0xf] }
 0x129   : > { %1022 = vst [vmem:[#allocation2 + $0x98] ss:$-4 sps:$4 sm:$0xff] %v981_v7   ;;  %v895_v19 = vmax.f32 %v863_v10, 0.0  ;;  %v2178_v22 = vrot.slane %v7290_v51, 4  ;;  %v6031_v25 = vpop.f32.mrb[24].mxu0  ;;  %v7318_v29 = vsel %vm2158_vm0, %v2174_v15, %v2175_v16  ;;  %v823_v30 = vmul.f32 %v7169_v48, %v751_v53  ;;  %6091 = vmatprep.subr.bf16.mxu0 %v6880_v6 }
 0x12a   : > { %v7315_v26 = vsel %vm1074_vm1, %v1150_v9, %v1158_v13  ;;  %v893_v27 = vmax.f32 %v861_v14, 0.0  ;;  %v764_v47 = vpop.f32.mrb[25].mxu0  ;;  %6206 = vmatmul.mubr.bf16.gmra.mrb[8].mxu1 %v7318_v29  ;;  %v864_v28 = vadd.f32 %v7174_v50, %v825_v20  ;;  %v1161_v35 = vshrl.u32 %v1048_v17, 16  ;;  %v1053_v10 = vld [vmem:[#allocation2 + $0x78] sm:$0xf] }
 0x12b   : > { %6058 = vmatmul.mubr.bf16.gmra.mrb[36].mxu0 %v7315_v26  ;;  %v7328_v32 = vsel %vm2158_vm0, %v2177_v21, %v2178_v22  ;;  %v1164_v36 = vshll.u32 %v1048_v17, 16  ;;  %v6032_v34 = vpop.f32.mrb[26].mxu0  ;;  %v862_v37 = vadd.f32 %v7174_v50, %v823_v30  ;;  %v1169_v38 = vshrl.u32 %v7293_v59, 16  ;;  %6242 = vmatpush3.bf16.msra.mxu1 %v6879_v62  ;;  %v7347_v13 = vld [vmem:[#allocation2 + $0x70] sm:$0xf0] }
 0x12c   : > { %6209 = vmatprep.mubr.bf16.mxu1 %v7328_v32  ;;  %v1172_v39 = vshll.u32 %v7293_v59, 16  ;;  %v1178_v41 = vshrl.u32 %v1050_v23, 16  ;;  %v767_v42 = vpop.f32.mrb[27].mxu0  ;;  %v896_v43 = vmax.f32 %v864_v28, 0.0  ;;  %v1163_v45 = vrot.slane %v1161_v35, 3  ;;  %6092 = vmatpush3.bf16.msra.mxu0 %v6880_v6  ;;  %v6883_v59 = vld [vmem:[%s8302_s4 + $0x28] sm:$0xff]  }
 0x12d   : > { %v1166_v49 = vrot.slane %v1164_v36, 4  ;;  %v1181_v53 = vshll.u32 %v1050_v23, 16  ;;  %6243 = vmatprep.subr.bf16.mxu1 %v6882_v18  ;;  %v894_v55 = vmax.f32 %v862_v37, 0.0  ;;  %v1171_v56 = vrot.slane %v1169_v38, 3  ;;  %6093 = vmatprep.subr.bf16.mxu0 %v6881_v31  ;;  %v1052_v28 = vld [vmem:[#allocation2 + $0x70] sm:$0xf8] }
 0x12e   : > { %v1174_v58 = vrot.slane %v1172_v39, 4  ;;  %v1180_v61 = vrot.slane %v1178_v41, 3  ;;  %v916_v62 = vpack.c.bf16 %v896_v43, %v895_v19  ;;  %v1186_v1 = vshrl.u32 %v7290_v51, 16  ;;  %v7350_v19 = vld [vmem:[#allocation2 + $0x80] sm:$0xf0] }
 0x12f   : > { %v1167_v63 = vor.u32 %v1166_v49, %v1163_v45  ;;  %v1183_v0 = vrot.slane %v1181_v53, 4  ;;  %v915_v3 = vpack.c.bf16 %v894_v55, %v893_v27  ;;  %v1189_v7 = vshll.u32 %v7290_v51, 16  ;;  %6244 = vmatpush3.bf16.msra.mxu1 %v6882_v18  ;;  %v1054_v53 = vld [vmem:[#allocation2 + $0x80] sm:$0xf8] }
 0x130   : > { %v1175_v6 = vor.u32 %v1174_v58, %v1171_v56  ;;  %v828_v9 = vmul.f32 %v6031_v25, %v7169_v48  ;;  %v984_v14 = vrot.slane %v916_v62, 4  ;;  %v1188_v16 = vrot.slane %v1186_v1, 3  ;;  %6094 = vmatpush3.bf16.msra.mxu0 %v6881_v31  ;;  %6277 = vmatprep.subr.bf16.mxu1 %v7337_v54  ;;  %v6884_v25 = vld [vmem:[%s8302_s4 + $0x30] sm:$0xff]   ;;  %v6886_v62 = vld [vmem:[%s8302_s4 + $0x38] sm:$0xff]  }
 0x131   : > { %v1184_v15 = vor.u32 %v1183_v0, %v1180_v61  ;;  %v826_v17 = vmul.f32 %v7169_v48, %v764_v47  ;;  %v7352_v20 = vpop.f32.mrb[28].mxu0  ;;  %v983_v21 = vrot.slane %v915_v3, 4  ;;  %v1191_v22 = vrot.slane %v1189_v7, 4  ;;  %6095 = vmatprep.subr.bf16.mxu0 %v6883_v59 }
 0x132   : > { %v7356_v51 = vsel %vm1074_vm1, %v1167_v63, %v1175_v6  ;;  %v867_v23 = vadd.f32 %v7174_v50, %v828_v9  ;;  %v780_v18 = vpop.f32.mrb[29].mxu0  ;;  %1028 = vst [vmem:[#allocation2 + $0xc8] ss:$-4 sps:$4 sm:$0xff] %v984_v14   ;;  %v2180_v30 = vrot.slane %v7347_v13, 4  ;;  %v2181_v47 = vrot.slane %v1053_v10, 4 }
 0x133   : > { %6061 = vmatprep.mubr.bf16.mxu0 %v7356_v51  ;;  %v865_v27 = vadd.f32 %v7174_v50, %v826_v17  ;;  %v829_v31 = vmul.f32 %v6032_v34, %v7169_v48  ;;  %v7366_v35 = vpop.f32.mrb[30].mxu0  ;;  %1026 = vst [vmem:[#allocation2 + $0xb8] ss:$-4 sps:$4 sm:$0xff] %v983_v21   ;;  %v1192_v36 = vor.u32 %v1191_v22, %v1188_v16  ;;  %v2183_v38 = vrot.slane %v7350_v19, 4 }
 0x134   : > { %v899_v37 = vmax.f32 %v867_v23, 0.0  ;;  %v2184_v39 = vrot.slane %v7343_v2, 4  ;;  %v7370_v41 = vpop.f32.mrb[31].mxu0  ;;  %v7373_v45 = vsel %vm2158_vm0, %v2180_v30, %v2181_v47  ;;  %v827_v34 = vmul.f32 %v7169_v48, %v767_v42  ;;  %6096 = vmatpush3.bf16.msra.mxu0 %v6883_v59 }
 0x135   : > { %v897_v43 = vmax.f32 %v865_v27, 0.0  ;;  %v868_v49 = vadd.f32 %v7174_v50, %v829_v31  ;;  %v7378_v55 = vsel %vm1074_vm1, %v1184_v15, %v1192_v36  ;;  %6210 = vmatmul.mubr.bf16.gmra.mrb[12].mxu1 %v7373_v45  ;;  %v1195_v58 = vshrl.u32 %v1052_v28, 16  ;;  %6097 = vmatprep.subr.bf16.mxu0 %v6884_v25  ;;  %v7391_v27 = vld [vmem:[#allocation2 + $0x90] sm:$0xf0]  ;;  %v1057_v36 = vld [vmem:[#allocation2 + $0x98] sm:$0xf] }
 0x136   : > { %v7382_v56 = vsel %vm2158_vm0, %v2183_v38, %v2184_v39  ;;  %v1198_v61 = vshll.u32 %v1052_v28, 16  ;;  %6062 = vmatmul.mubr.bf16.gmra.mrb[40].mxu0 %v7378_v55  ;;  %v866_v59 = vadd.f32 %v7174_v50, %v827_v34  ;;  %v1203_v63 = vshrl.u32 %v1053_v10, 16  ;;  %v7404_v34 = vld [vmem:[#allocation2 + $0xa0] sm:$0xf0] }
 0x137   : > { %v900_v42 = vmax.f32 %v868_v49, 0.0  ;;  %6213 = vmatprep.mubr.bf16.mxu1 %v7382_v56  ;;  %v1206_v0 = vshll.u32 %v1053_v10, 16  ;;  %v1197_v1 = vrot.slane %v1195_v58, 3  ;;  %v1212_v6 = vshrl.u32 %v1054_v53, 16  ;;  %v7396_v10 = vld [vmem:[%s8302_s4 + $0x180] sm:$0xff]  }
 0x138   : > { %v1200_v3 = vrot.slane %v1198_v61, 4  ;;  %v1215_v7 = vshll.u32 %v1054_v53, 16  ;;  %v898_v14 = vmax.f32 %v866_v59, 0.0  ;;  %v1205_v15 = vrot.slane %v1203_v63, 3  ;;  %6098 = vmatpush3.bf16.msra.mxu0 %v6884_v25  ;;  %v7402_v49 = vld [vmem:[#allocation2 + $0xa8] sm:$0xf] }
 0x139   : > { %v918_v9 = vpack.c.bf16 %v900_v42, %v899_v37  ;;  %v1208_v16 = vrot.slane %v1206_v0, 4  ;;  %v1214_v21 = vrot.slane %v1212_v6, 3  ;;  %v1220_v23 = vshrl.u32 %v7343_v2, 16  ;;  %6099 = vmatprep.subr.bf16.mxu0 %v6886_v62  ;;  %v1056_v59 = vld [vmem:[#allocation2 + $0x90] sm:$0xf8] }
 0x13a   : > { %v1201_v17 = vor.u32 %v1200_v3, %v1197_v1  ;;  %v1217_v22 = vrot.slane %v1215_v7, 4  ;;  %v917_v47 = vpack.c.bf16 %v898_v14, %v897_v43  ;;  %v1223_v28 = vshll.u32 %v7343_v2, 16 }
 0x13b   : > { %v986_v30 = vrot.slane %v918_v9, 4  ;;  %v1209_v31 = vor.u32 %v1208_v16, %v1205_v15  ;;  %v1222_v37 = vrot.slane %v1220_v23, 3  ;;  %v832_v38 = vmul.f32 %v7352_v20, %v7169_v48 }
 0x13c   : > { %v1218_v25 = vor.u32 %v1217_v22, %v1214_v21  ;;  %v830_v39 = vmul.f32 %v7169_v48, %v780_v18  ;;  %v985_v53 = vrot.slane %v917_v47, 4  ;;  %v1225_v43 = vrot.slane %v1223_v28, 4  ;;  %6100 = vmatpush3.bf16.msra.mxu0 %v6886_v62  ;;  %v1061_v28 = vld [vmem:[#allocation2 + $0xb8] sm:$0xf] }
 0x13d   : > { %1032 = vst [vmem:[#allocation2 + $0xe8] ss:$-4 sps:$4 sm:$0xff] %v986_v30   ;;  %v7407_v58 = vsel %vm1074_vm1, %v1201_v17, %v1209_v31  ;;  %v2186_v2 = vrot.slane %v7391_v27, 4  ;;  %v871_v61 = vadd.f32 %v7174_v50, %v832_v38  ;;  %v2187_v18 = vrot.slane %v1057_v36, 4  ;;  %6133 = vmatprep.subr.bf16.mxu0 %v7396_v10 }
 0x13e   : > { %6065 = vmatprep.mubr.bf16.mxu0 %v7407_v58  ;;  %v869_v20 = vadd.f32 %v7174_v50, %v830_v39  ;;  %v833_v42 = vmul.f32 %v7366_v35, %v7169_v48  ;;  %1030 = vst [vmem:[#allocation2 + $0xd8] ss:$-4 sps:$4 sm:$0xff] %v985_v53   ;;  %v1226_v63 = vor.u32 %v1225_v43, %v1222_v37  ;;  %v2189_v0 = vrot.slane %v7404_v34, 4  ;;  %v1058_v35 = vld [vmem:[#allocation2 + $0xa0] sm:$0xf8] }
 0x13f   : > { %v2190_v1 = vrot.slane %v7402_v49, 4  ;;  %v831_v62 = vmul.f32 %v7169_v48, %v7370_v41  ;;  %v903_v3 = vmax.f32 %v871_v61, 0.0  ;;  %v7421_v7 = vsel %vm2158_vm0, %v2186_v2, %v2187_v18  ;;  %v7434_v53 = vld [vmem:[#allocation2 + $0xb0] sm:$0xf0] }
 0x140   : > { %v901_v6 = vmax.f32 %v869_v20, 0.0  ;;  %v872_v9 = vadd.f32 %v7174_v50, %v833_v42  ;;  %v7425_v14 = vsel %vm1074_vm1, %v1218_v25, %v1226_v63  ;;  %6214 = vmatmul.mubr.bf16.gmra.mrb[16].mxu1 %v7421_v7  ;;  %v1229_v17 = vshrl.u32 %v1056_v59, 16  ;;  %v7437_v20 = vld [vmem:[#allocation2 + $0xc0] sm:$0xf0]  ;;  %v1063_v63 = vld [vmem:[#allocation2 + $0xc8] sm:$0xf] }
 0x141   : > { %v7429_v15 = vsel %vm2158_vm0, %v2189_v0, %v2190_v1  ;;  %v870_v16 = vadd.f32 %v7174_v50, %v831_v62  ;;  %6066 = vmatmul.mubr.bf16.gmra.mrb[44].mxu0 %v7425_v14  ;;  %v1232_v41 = vshll.u32 %v1056_v59, 16  ;;  %v1237_v21 = vshrl.u32 %v1057_v36, 16  ;;  %v1060_v0 = vld [vmem:[#allocation2 + $0xb0] sm:$0xf8] }
 0x142   : > { %v904_v48 = vmax.f32 %v872_v9, 0.0  ;;  %6217 = vmatprep.mubr.bf16.mxu1 %v7429_v15  ;;  %v1240_v22 = vshll.u32 %v1057_v36, 16  ;;  %v1231_v30 = vrot.slane %v1229_v17, 3  ;;  %v1246_v47 = vshrl.u32 %v1058_v35, 16 }
 0x143   : > { %v902_v23 = vmax.f32 %v870_v16, 0.0  ;;  %v1249_v31 = vshll.u32 %v1058_v35, 16  ;;  %v1234_v37 = vrot.slane %v1232_v41, 4  ;;  %v1239_v38 = vrot.slane %v1237_v21, 3  ;;  %v1062_v35 = vld [vmem:[#allocation2 + $0xc0] sm:$0xf8] }
 0x144   : > { %v920_v25 = vpack.c.bf16 %v904_v48, %v903_v3  ;;  %v1242_v39 = vrot.slane %v1240_v22, 4  ;;  %v1248_v43 = vrot.slane %v1246_v47, 3  ;;  %v1254_v61 = vshrl.u32 %v7402_v49, 16 }
 0x145   : > { %v919_v50 = vpack.c.bf16 %v902_v23, %v901_v6  ;;  %v1251_v2 = vrot.slane %v1249_v31, 4  ;;  %v1235_v36 = vor.u32 %v1234_v37, %v1231_v30  ;;  %v1257_v59 = vshll.u32 %v7402_v49, 16  ;;  %v1067_v37 = vld [vmem:[#allocation2 + $0xe8] sm:$0xf] }
 0x146   : > { %v988_v18 = vrot.slane %v920_v25, 4  ;;  %v1243_v42 = vor.u32 %v1242_v39, %v1239_v38  ;;  %v1256_v3 = vrot.slane %v1254_v61, 3  ;;  %v2192_v9 = vrot.slane %v7434_v53, 4  ;;  %v7449_v25 = vld [vmem:[#allocation2 + $0xd0] sm:$0xf0] }
 0x147   : > { %v987_v1 = vrot.slane %v919_v50, 4  ;;  %v1252_v62 = vor.u32 %v1251_v2, %v1248_v43  ;;  %v1259_v16 = vrot.slane %v1257_v59, 4  ;;  %v2193_v17 = vrot.slane %v1061_v28, 4  ;;  %v7451_v38 = vld [vmem:[#allocation2 + $0xe0] sm:$0xf0] }
 0x148   : > { %1036 = vst [vmem:[#allocation2 + $0x108] ss:$-4 sps:$4 sm:$0xff] %v988_v18   ;;  %v7442_v6 = vsel %vm1074_vm1, %v1235_v36, %v1243_v42  ;;  %v2195_v48 = vrot.slane %v7437_v20, 4  ;;  %v2196_v49 = vrot.slane %v1063_v63, 4  ;;  %v1263_v41 = vshrl.u32 %v1060_v0, 16 }
 0x149   : > { %1034 = vst [vmem:[#allocation2 + $0xf8] ss:$-4 sps:$4 sm:$0xff] %v987_v1   ;;  %6069 = vmatprep.mubr.bf16.mxu0 %v7442_v6  ;;  %v1266_v21 = vshll.u32 %v1060_v0, 16  ;;  %v1271_v22 = vshrl.u32 %v1061_v28, 16  ;;  %v1260_v23 = vor.u32 %v1259_v16, %v1256_v3  ;;  %v7447_v30 = vsel %vm2158_vm0, %v2192_v9, %v2193_v17  ;;  %v1065_v61 = vld [vmem:[#allocation2 + $0xd8] sm:$0xf] }
 0x14a   : > { %v1274_v47 = vshll.u32 %v1061_v28, 16  ;;  %v1280_v31 = vshrl.u32 %v1062_v35, 16  ;;  %6218 = vmatmul.mubr.bf16.gmra.mrb[20].mxu1 %v7447_v30  ;;  %v7455_v39 = vsel %vm2158_vm0, %v2195_v48, %v2196_v49  ;;  %v1265_v50 = vrot.slane %v1263_v41, 3  ;;  %v1064_v59 = vld [vmem:[#allocation2 + $0xd0] sm:$0xf8] }
 0x14b   : > { %v1268_v43 = vrot.slane %v1266_v21, 4  ;;  %v1273_v2 = vrot.slane %v1271_v22, 3  ;;  %v7458_v18 = vsel %vm1074_vm1, %v1252_v62, %v1260_v23  ;;  %6221 = vmatprep.mubr.bf16.mxu1 %v7455_v39  ;;  %v1283_v42 = vshll.u32 %v1062_v35, 16  ;;  %v1066_v23 = vld [vmem:[#allocation2 + $0xe0] sm:$0xf8] }
 0x14c   : > { %v1276_v28 = vrot.slane %v1274_v47, 4  ;;  %v1282_v36 = vrot.slane %v1280_v31, 3  ;;  %6070 = vmatmul.mubr.bf16.gmra.mrb[48].mxu0 %v7458_v18  ;;  %v1288_v1 = vshrl.u32 %v1063_v63, 16  ;;  %v1291_v3 = vshll.u32 %v1063_v63, 16 }
 0x14d   : > { %v1269_v0 = vor.u32 %v1268_v43, %v1265_v50  ;;  %v2198_v9 = vrot.slane %v7449_v25, 4  ;;  %v1285_v17 = vrot.slane %v1283_v42, 4  ;;  %v2199_v48 = vrot.slane %v1065_v61, 4 }
 0x14e   : > { %v1277_v16 = vor.u32 %v1276_v28, %v1273_v2  ;;  %v2201_v49 = vrot.slane %v7451_v38, 4  ;;  %v1290_v62 = vrot.slane %v1288_v1, 3  ;;  %v1293_v41 = vrot.slane %v1291_v3, 4 }
 0x14f   : > { %v2202_v21 = vrot.slane %v1067_v37, 4  ;;  %v1297_v22 = vshrl.u32 %v1064_v59, 16  ;;  %v1286_v47 = vor.u32 %v1285_v17, %v1282_v36  ;;  %v7468_v31 = vsel %vm2158_vm0, %v2198_v9, %v2199_v48 }
 0x150   : > { %v7465_v35 = vsel %vm1074_vm1, %v1269_v0, %v1277_v16  ;;  %v1300_v63 = vshll.u32 %v1064_v59, 16  ;;  %v1294_v50 = vor.u32 %v1293_v41, %v1290_v62  ;;  %v1305_v28 = vshrl.u32 %v1065_v61, 16  ;;  %v1069_v42 = vld [vmem:[#allocation2 + $0xf8] sm:$0xf]  ;;  %v7474_v0 = vld [vmem:[#allocation2 + $0xf0] sm:$0xf0] }
 0x151   : > { %6073 = vmatprep.mubr.bf16.mxu0 %v7465_v35  ;;  %v7472_v43 = vsel %vm2158_vm0, %v2201_v49, %v2202_v21  ;;  %v1299_v2 = vrot.slane %v1297_v22, 3  ;;  %v1308_v3 = vshll.u32 %v1065_v61, 16  ;;  %v1314_v4 = vshrl.u32 %v1066_v23, 16  ;;  %v1068_v17 = vld [vmem:[#allocation2 + $0xf0] sm:$0xf8] }
 0x152   : > { %v1302_v1 = vrot.slane %v1300_v63, 4  ;;  %v1317_v57 = vshll.u32 %v1066_v23, 16  ;;  %v7477_v36 = vsel %vm1074_vm1, %v1286_v47, %v1294_v50  ;;  %6222 = vmatmul.mubr.bf16.gmra.mrb[24].mxu1 %v7468_v31  ;;  %v1307_v59 = vrot.slane %v1305_v28, 3  ;;  %v1070_v47 = vld [vmem:[#allocation2 + $0x100] sm:$0xf8] }
 0x153   : > { %v1322_v9 = vshrl.u32 %v1067_v37, 16  ;;  %v1325_v16 = vshll.u32 %v1067_v37, 16  ;;  %6225 = vmatprep.mubr.bf16.mxu1 %v7472_v43  ;;  %v1310_v49 = vrot.slane %v1308_v3, 4  ;;  %v1316_v62 = vrot.slane %v1314_v4, 3  ;;  %v7486_v4 = vld [vmem:[#allocation2 + $0x108] sm:$0xf] }
 0x154   : > { %v1303_v48 = vor.u32 %v1302_v1, %v1299_v2  ;;  %v1319_v41 = vrot.slane %v1317_v57, 4  ;;  %6074 = vmatmul.mubr.bf16.gmra.mrb[52].mxu0 %v7477_v36  ;;  %v2204_v22 = vrot.slane %v7474_v0, 4  ;;  %v2205_v23 = vrot.slane %v1069_v42, 4 }
 0x155   : > { %v1324_v61 = vrot.slane %v1322_v9, 3  ;;  %v1327_v21 = vrot.slane %v1325_v16, 4  ;;  %v1311_v63 = vor.u32 %v1310_v49, %v1307_v59  ;;  %v1331_v28 = vshrl.u32 %v1068_v17, 16 }
 0x156   : > { %v1320_v50 = vor.u32 %v1319_v41, %v1316_v62  ;;  %v1334_v52 = vshll.u32 %v1068_v17, 16  ;;  %v7484_v44 = vsel %vm2158_vm0, %v2204_v22, %v2205_v23  ;;  %v1339_v2 = vshrl.u32 %v1069_v42, 16 }
 0x157   : > { %v1328_v37 = vor.u32 %v1327_v21, %v1324_v61  ;;  %v1342_v1 = vshll.u32 %v1069_v42, 16  ;;  %v7489_v57 = vsel %vm1074_vm1, %v1303_v48, %v1311_v63  ;;  %v1333_v3 = vrot.slane %v1331_v28, 3 }
 0x158   : > { %v1336_v9 = vrot.slane %v1334_v52, 4  ;;  %v1380_v16 = vshrl.u32 %v1070_v47, 16  ;;  %6077 = vmatprep.mubr.bf16.mxu0 %v7489_v57  ;;  %v1341_v59 = vrot.slane %v1339_v2, 3  ;;  %v1383_v62 = vshll.u32 %v1070_v47, 16 }
 0x159   : > { %v1344_v49 = vrot.slane %v1342_v1, 4  ;;  %v8312_v17 = vshrl.u32 %v7147_v40, 16  ;;  %v1388_v21 = vshrl.u32 %v7486_v4, 16  ;;  %v1391_v42 = vshll.u32 %v7486_v4, 16 }
 0x15a   : > { %v1337_v61 = vor.u32 %v1336_v9, %v1333_v3  ;;  %v8313_v22 = vshll.u32 %v7147_v40, 16  ;;  %v7499_v23 = vsel %vm1074_vm1, %v1320_v50, %v1328_v37  ;;  %6226 = vmatmul.mubr.bf16.gmra.mrb[28].mxu1 %v7484_v44  ;;  %v8314_v63 = vshrl.u32 %v7196_v33, 16 }
 0x15b   : > { %v1086_v41 = vrot.slane %v8312_v17, 3  ;;  %v1345_v52 = vor.u32 %v1344_v49, %v1341_v59  ;;  %v8315_v28 = vshll.u32 %v7196_v33, 16  ;;  %6245 = vmatprep.mubr.bf16.mxu1 %v7212_v60  ;;  %v1382_v1 = vrot.slane %v1380_v16, 3  ;;  %v6887_v33 = vld [vmem:[%s8302_s4 + $0x1c8] sm:$0xff]  }
 0x15c   : > { %v1089_v48 = vrot.slane %v8313_v22, 4  ;;  %v1078_v47 = vrot.slane %v8314_v63, 3  ;;  %v1385_v3 = vrot.slane %v1383_v62, 4  ;;  %v1390_v9 = vrot.slane %v1388_v21, 3  ;;  %6078 = vmatmul.mubr.bf16.gmra.mrb[56].mxu0 %v7499_v23  ;;  %v6888_v62 = vld [vmem:[%s8302_s4 + $0x1d0] sm:$0xff]   ;;  %v6897_v22 = vld [vmem:[%s8302_s4 + $0x1a0] sm:$0xff]  }
 0x15d   : > { %v1081_v2 = vrot.slane %v8315_v28, 4  ;;  %v1393_v17 = vrot.slane %v1391_v42, 4  ;;  %v7509_v40 = vsel %vm1074_vm1, %v1337_v61, %v1345_v52  ;;  %v6890_v61 = vld [vmem:[%s8302_s4 + $0x1e0] sm:$0xff]   ;;  %v6894_v21 = vld [vmem:[%s8302_s4 + $0x190] sm:$0xff]   ;;  %v6896_v42 = vld [vmem:[%s8302_s4 + $0x198] sm:$0xff]  }
 0x15e   : > { %6081 = vmatprep.mubr.bf16.mxu0 %v7509_v40  ;;  %v1090_v37 = vor.u32 %v1089_v48, %v1086_v41  ;;  %v1386_v59 = vor.u32 %v1385_v3, %v1382_v1  ;;  %v6889_v41 = vld [vmem:[%s8302_s4 + $0x1d8] sm:$0xff]   ;;  %v6899_v52 = vld [vmem:[%s8302_s4 + $0x1a8] sm:$0xff]   ;;  %v6901_v63 = vld [vmem:[%s8302_s4 + $0x80] sm:$0xff]   ;;  %v2484_v3 = vrot.slane %v7486_v4, 4 }
 0x15f   : > { %v1082_v50 = vor.u32 %v1081_v2, %v1078_v47  ;;  %v1394_v49 = vor.u32 %v1393_v17, %v1390_v9  ;;  %v6898_v48 = vld [vmem:[%s8302_s4 + $0x1f8] sm:$0xff]   ;;  %v6900_v47 = vld [vmem:[%s8302_s4 + $0x1b0] sm:$0xff]   ;;  %v7587_v2 = vld [vmem:[#allocation2 + $0x100] sm:$0xf0] }
 0x160   : > { %v6902_v28 = vld [vmem:[%s8302_s4 + $0x1b8] sm:$0xff]   ;;  %v2483_v1 = vrot.slane %v7587_v2, 4  ;;  %v6903_v17 = vld [vmem:[%s8302_s4 + $0x88] sm:$0xff]  }
 0x161   : > { %v1091_v60 = vsel %vm1074_vm1, %v1082_v50, %v1090_v37  ;;  %v7518_v16 = vsel %vm1074_vm1, %v1386_v59, %v1394_v49  ;;  %v6905_v4 = vld [vmem:[%s8302_s4 + $0x98] sm:$0xff]  }
 0x162   : > { %6246 = vmatmul.mubr.bf16.vlgmr.msra.gmra.mrb[0].mxu1 %v7230_v46  ;;  %v7595_v9 = vsel %vm2158_vm0, %v2483_v1, %v2484_v3 }
 0x163   : > { %6278 = vmatpush3.bf16.msra.mxu1 %v7337_v54  ;;  %6249 = vmatprep.mubr.bf16.mxu1 %v7266_v12  ;;  %v6893_v54 = vld [vmem:[%s8302_s4 + $0x188] sm:$0xff]  }
 0x164   : > { %6082 = vmatmul.mubr.bf16.gmra.mrb[60].mxu0 %v7518_v16  ;;  %6279 = vmatprep.subr.bf16.mxu1 %v6887_v33 }
 0x165   : > { %6101 = vmatprep.mubr.bf16.mxu0 %v1091_v60 }
 0x167   : > { %6280 = vmatpush3.bf16.msra.mxu1 %v6887_v33 }
 0x168   : > { %6281 = vmatprep.subr.bf16.mxu1 %v6888_v62 }
 0x16a   : > { %6250 = vmatmul.mubr.bf16.gmra.mrb[4].mxu1 %v7277_v24 }
 0x16b   : > { %6253 = vmatprep.mubr.bf16.mxu1 %v7318_v29  ;;  %6282 = vmatpush3.bf16.msra.mxu1 %v6888_v62 }
 0x16c   : > { %6102 = vmatmul.mubr.bf16.vlgmr.msra.gmra.mrb[32].mxu0 %v7251_v5  ;;  %6283 = vmatprep.subr.bf16.mxu1 %v6889_v41  ;;  %v6892_v5 = vld [vmem:[%s8302_s4 + $0x1e8] sm:$0xff]  }
 0x16d   : > { %6105 = vmatprep.mubr.bf16.mxu0 %v7263_v11  ;;  %6134 = vmatpush3.bf16.msra.mxu0 %v7396_v10  ;;  %v6895_v10 = vld [vmem:[%s8302_s4 + $0x1f0] sm:$0xff]  }
 0x16e   : > { %6135 = vmatprep.subr.bf16.mxu0 %v6893_v54 }
 0x16f   : > { %6284 = vmatpush3.bf16.msra.mxu1 %v6889_v41  ;;  %v3011_v41 = vld [vmem:[#allocation2 + $0x28] sm:$0x1f] }
 0x170   : > { %6285 = vmatprep.subr.bf16.mxu1 %v6890_v61 }
 0x171   : > { %6136 = vmatpush3.bf16.msra.mxu0 %v6893_v54 }
 0x172   : > { %6254 = vmatmul.mubr.bf16.gmra.mrb[8].mxu1 %v7328_v32  ;;  %6137 = vmatprep.subr.bf16.mxu0 %v6894_v21 }
 0x173   : > { %6257 = vmatprep.mubr.bf16.mxu1 %v7373_v45  ;;  %6286 = vmatpush3.bf16.msra.mxu1 %v6890_v61 }
 0x174   : > { %6106 = vmatmul.mubr.bf16.gmra.mrb[36].mxu0 %v7303_v8  ;;  %6287 = vmatprep.subr.bf16.mxu1 %v6892_v5 }
 0x175   : > { %6109 = vmatprep.mubr.bf16.mxu0 %v7315_v26  ;;  %6138 = vmatpush3.bf16.msra.mxu0 %v6894_v21 }
 0x176   : > { %6139 = vmatprep.subr.bf16.mxu0 %v6896_v42 }
 0x177   : > { %6288 = vmatpush3.bf16.msra.mxu1 %v6892_v5 }
 0x178   : > { %6289 = vmatprep.subr.bf16.mxu1 %v6895_v10 }
 0x179   : > { %6140 = vmatpush3.bf16.msra.mxu0 %v6896_v42 }
 0x17a   : > { %6258 = vmatmul.mubr.bf16.gmra.mrb[12].mxu1 %v7382_v56  ;;  %6141 = vmatprep.subr.bf16.mxu0 %v6897_v22 }
 0x17b   : > { %6261 = vmatprep.mubr.bf16.mxu1 %v7421_v7  ;;  %6290 = vmatpush3.bf16.msra.mxu1 %v6895_v10 }
 0x17c   : > { %6110 = vmatmul.mubr.bf16.gmra.mrb[40].mxu0 %v7356_v51  ;;  %6291 = vmatprep.subr.bf16.mxu1 %v6898_v48 }
 0x17d   : > { %6113 = vmatprep.mubr.bf16.mxu0 %v7378_v55  ;;  %6142 = vmatpush3.bf16.msra.mxu0 %v6897_v22  ;;  %v6960_v22 = vld [vmem:[#allocation2 + $0x20] sm:$0xf0] }
 0x17e   : > { %6143 = vmatprep.subr.bf16.mxu0 %v6899_v52 }
 0x17f   : > { %6292 = vmatpush3.bf16.msra.mxu1 %v6898_v48  ;;  %v3063_v48 = vshrl.u32 %v6960_v22, 16 }
 0x180   : > { %6325 = vmatprep.subr.bf16.mxu1 %v6901_v63 }
 0x181   : > { %6144 = vmatpush3.bf16.msra.mxu0 %v6899_v52  ;;  %v3066_v52 = vshll.u32 %v6960_v22, 16 }
 0x182   : > { %6262 = vmatmul.mubr.bf16.gmra.mrb[16].mxu1 %v7429_v15  ;;  %6145 = vmatprep.subr.bf16.mxu0 %v6900_v47 }
 0x183   : > { %6265 = vmatprep.mubr.bf16.mxu1 %v7447_v30 }
 0x184   : > { %6114 = vmatmul.mubr.bf16.gmra.mrb[44].mxu0 %v7407_v58 }
 0x185   : > { %6117 = vmatprep.mubr.bf16.mxu0 %v7425_v14  ;;  %6146 = vmatpush3.bf16.msra.mxu0 %v6900_v47  ;;  %v3074_v47 = vshll.u32 %v3011_v41, 16 }
 0x186   : > { %6147 = vmatprep.subr.bf16.mxu0 %v6902_v28 }
 0x189   : > { %6148 = vmatpush3.bf16.msra.mxu0 %v6902_v28 }
 0x18a   : > { %6266 = vmatmul.mubr.bf16.gmra.mrb[20].mxu1 %v7455_v39 }
 0x18b   : > { %6269 = vmatprep.mubr.bf16.mxu1 %v7468_v31 }
 0x18c   : > { %6118 = vmatmul.mubr.bf16.gmra.mrb[48].mxu0 %v7442_v6 }
 0x18d   : > { %6121 = vmatprep.mubr.bf16.mxu0 %v7458_v18 }
 0x192   : > { %6270 = vmatmul.mubr.bf16.gmra.mrb[24].mxu1 %v7472_v43 }
 0x193   : > { %6273 = vmatprep.mubr.bf16.mxu1 %v7484_v44 }
 0x194   : > { %6122 = vmatmul.mubr.bf16.gmra.mrb[52].mxu0 %v7465_v35 }
 0x195   : > { %6125 = vmatprep.mubr.bf16.mxu0 %v7477_v36 }
 0x19a   : > { %6274 = vmatmul.mubr.bf16.gmra.mrb[28].mxu1 %v7595_v9 }
 0x19b   : > { %6293 = vmatprep.mubr.bf16.mxu1 %v7230_v46  ;;  %v6904_v46 = vld [vmem:[%s8302_s4 + $0x90] sm:$0xff]  }
 0x19c   : > { %6126 = vmatmul.mubr.bf16.gmra.mrb[56].mxu0 %v7489_v57 }
 0x19d   : > { %6129 = vmatprep.mubr.bf16.mxu0 %v7499_v23 }
 0x1a2   : > { %6294 = vmatmul.mubr.bf16.vlgmr.msra.gmra.mrb[0].mxu1 %v7266_v12  ;;  %v6906_v12 = vld [vmem:[%s8302_s4 + $0xa0] sm:$0xff]  }
 0x1a3   : > { %6326 = vmatpush3.bf16.msra.mxu1 %v6901_v63  ;;  %6297 = vmatprep.mubr.bf16.mxu1 %v7277_v24  ;;  %v6908_v24 = vld [vmem:[%s8302_s4 + $0xb0] sm:$0xff]   ;;  %v3071_v63 = vshrl.u32 %v3011_v41, 16 }
 0x1a4   : > { %6130 = vmatmul.mubr.bf16.gmra.mrb[60].mxu0 %v7509_v40  ;;  %6327 = vmatprep.subr.bf16.mxu1 %v6903_v17 }
 0x1a5   : > { %6149 = vmatprep.mubr.bf16.mxu0 %v7263_v11  ;;  %v6907_v11 = vld [vmem:[%s8302_s4 + $0xa8] sm:$0xff]  }
 0x1a7   : > { %6328 = vmatpush3.bf16.msra.mxu1 %v6903_v17  ;;  %v3012_v17 = vld [vmem:[#allocation2 + $0x38] sm:$0x1f] }
 0x1a8   : > { %6329 = vmatprep.subr.bf16.mxu1 %v6904_v46 }
 0x1aa   : > { %6298 = vmatmul.mubr.bf16.gmra.mrb[4].mxu1 %v7318_v29  ;;  %v3009_v29 = vld [vmem:[#allocation2 + $0x8] sm:$0x1f] }
 0x1ab   : > { %6301 = vmatprep.mubr.bf16.mxu1 %v7328_v32  ;;  %6330 = vmatpush3.bf16.msra.mxu1 %v6904_v46  ;;  %v6958_v32 = vld [vmem:[#allocation2] sm:$0xf0]  ;;  %v3065_v46 = vrot.slane %v3063_v48, 4 }
 0x1ac   : > { %6150 = vmatmul.mubr.bf16.vlgmr.msra.gmra.mrb[32].mxu0 %v7303_v8  ;;  %6331 = vmatprep.subr.bf16.mxu1 %v6905_v4  ;;  %v6909_v8 = vld [vmem:[%s8302_s4 + $0xb8] sm:$0xff]  }
 0x1ad   : > { %6153 = vmatprep.mubr.bf16.mxu0 %v7315_v26  ;;  %v7640_v26 = vld [vmem:[%s8302_s4 + $0x140] sm:$0xff]  }
 0x1af   : > { %6332 = vmatpush3.bf16.msra.mxu1 %v6905_v4  ;;  %v3068_v4 = vrot.slane %v3066_v52, 5 }
 0x1b0   : > { %6333 = vmatprep.subr.bf16.mxu1 %v6906_v12 }
 0x1b2   : > { %6302 = vmatmul.mubr.bf16.gmra.mrb[8].mxu1 %v7373_v45  ;;  %v3032_v45 = vshll.u32 %v6958_v32, 16 }
 0x1b3   : > { %6305 = vmatprep.mubr.bf16.mxu1 %v7382_v56  ;;  %6334 = vmatpush3.bf16.msra.mxu1 %v6906_v12  ;;  %v3040_v56 = vshll.u32 %v3009_v29, 16  ;;  %v3076_v12 = vrot.slane %v3074_v47, 5  ;;  %v6964_v47 = vld [vmem:[#allocation2 + $0x60] sm:$0xf0] }
 0x1b4   : > { %6154 = vmatmul.mubr.bf16.gmra.mrb[36].mxu0 %v7356_v51  ;;  %6335 = vmatprep.subr.bf16.mxu1 %v6907_v11  ;;  %v3029_v51 = vshrl.u32 %v6958_v32, 16 }
 0x1b5   : > { %6157 = vmatprep.mubr.bf16.mxu0 %v7378_v55  ;;  %v3037_v55 = vshrl.u32 %v3009_v29, 16  ;;  %v3042_v50 = vrot.slane %v3040_v56, 5  ;;  %v3088_v56 = vshrl.u32 %v3012_v17, 16 }
 0x1b7   : > { %6336 = vmatpush3.bf16.msra.mxu1 %v6907_v11  ;;  %v3013_v11 = vld [vmem:[#allocation2 + $0x48] sm:$0x1f] }
 0x1b8   : > { %6337 = vmatprep.subr.bf16.mxu1 %v6908_v24 }
 0x1ba   : > { %6306 = vmatmul.mubr.bf16.gmra.mrb[12].mxu1 %v7421_v7  ;;  %v7652_v7 = vld [vmem:[#allocation2 + $0x110] sm:$0xf0] }
 0x1bb   : > { %6309 = vmatprep.mubr.bf16.mxu1 %v7429_v15  ;;  %6338 = vmatpush3.bf16.msra.mxu1 %v6908_v24  ;;  %v6959_v15 = vld [vmem:[#allocation2 + $0x10] sm:$0xf0] }
 0x1bc   : > { %6158 = vmatmul.mubr.bf16.gmra.mrb[40].mxu0 %v7407_v58  ;;  %6339 = vmatprep.subr.bf16.mxu1 %v6909_v8  ;;  %v1073_v58 = vld [vmem:[#allocation2 + $0x118] sm:$0xf] }
 0x1bd   : > { %6161 = vmatprep.mubr.bf16.mxu0 %v7425_v14  ;;  %v3010_v14 = vld [vmem:[#allocation2 + $0x18] sm:$0x1f]  ;;  %v2748_v37 = vrot.slane %v1073_v58, 4  ;;  %v1841_v60 = vshrl.u32 %v1073_v58, 16  ;;  %v1844_v62 = vshll.u32 %v1073_v58, 16  ;;  %v3091_v58 = vshll.u32 %v3012_v17, 16 }
 0x1be   : > { %v3054_v59 = vshrl.u32 %v3010_v14, 16  ;;  %v3057_v49 = vshll.u32 %v3010_v14, 16  ;;  %v6962_v14 = vld [vmem:[#allocation2 + $0x40] sm:$0xf0] }
 0x1bf   : > { %6340 = vmatpush3.bf16.msra.mxu1 %v6909_v8  ;;  %v1843_v3 = vrot.slane %v1841_v60, 3 }
 0x1c0   : > { %6373 = vmatprep.subr.bf16.mxu1 %v7640_v26  ;;  %v3056_v10 = vrot.slane %v3054_v59, 4 }
 0x1c2   : > { %6310 = vmatmul.mubr.bf16.gmra.mrb[16].mxu1 %v7447_v30  ;;  %v3049_v30 = vshll.u32 %v6959_v15, 16 }
 0x1c3   : > { %6313 = vmatprep.mubr.bf16.mxu1 %v7455_v39  ;;  %v1072_v39 = vld [vmem:[#allocation2 + $0x110] sm:$0xf8] }
 0x1c4   : > { %6162 = vmatmul.mubr.bf16.gmra.mrb[44].mxu0 %v7442_v6  ;;  %v3046_v6 = vshrl.u32 %v6959_v15, 16  ;;  %v1836_v33 = vshll.u32 %v1072_v39, 16  ;;  %v3051_v5 = vrot.slane %v3049_v30, 5  ;;  %v3097_v15 = vshrl.u32 %v6962_v14, 16 }
 0x1c5   : > { %6165 = vmatprep.mubr.bf16.mxu0 %v7458_v18  ;;  %v3031_v18 = vrot.slane %v3029_v51, 4  ;;  %v6961_v51 = vld [vmem:[#allocation2 + $0x30] sm:$0xf0]  ;;  %v3105_v30 = vshrl.u32 %v3013_v11, 16 }
 0x1c6   : > { %v3048_v54 = vrot.slane %v3046_v6, 4  ;;  %v1838_v1 = vrot.slane %v1836_v33, 4  ;;  %v3100_v6 = vshll.u32 %v6962_v14, 16 }
 0x1c7   : > { %v3107_v60 = vrot.slane %v3105_v30, 4  ;;  %v3165_v30 = vshrl.u32 %v7350_v19, 16 }
 0x1c8   : > { %v3052_v29 = vor.u32 %v3051_v5, %v3048_v54  ;;  %v3102_v33 = vrot.slane %v3100_v6, 5  ;;  %v6963_v54 = vld [vmem:[#allocation2 + $0x50] sm:$0xf0]  ;;  %v6914_v6 = vld [vmem:[%s8302_s4 + $0x160] sm:$0xff]  }
 0x1ca   : > { %6314 = vmatmul.mubr.bf16.gmra.mrb[20].mxu1 %v7468_v31  ;;  %v3034_v31 = vrot.slane %v3032_v45, 5  ;;  %v3080_v45 = vshrl.u32 %v6961_v51, 16 }
 0x1cb   : > { %6317 = vmatprep.mubr.bf16.mxu1 %v7472_v43  ;;  %v3039_v43 = vrot.slane %v3037_v55, 4  ;;  %v3083_v55 = vshll.u32 %v6961_v51, 16  ;;  %v3017_v51 = vld [vmem:[#allocation2 + $0x88] sm:$0x1f] }
 0x1cc   : > { %6166 = vmatmul.mubr.bf16.gmra.mrb[48].mxu0 %v7465_v35  ;;  %v2747_v35 = vrot.slane %v7652_v7, 4  ;;  %v3035_v61 = vor.u32 %v3034_v31, %v3031_v18  ;;  %v3069_v18 = vor.u32 %v3068_v4, %v3065_v46  ;;  %v6913_v4 = vld [vmem:[%s8302_s4 + $0x158] sm:$0xff]  }
 0x1cd   : > { %6169 = vmatprep.mubr.bf16.mxu0 %v7477_v36  ;;  %v1833_v36 = vshrl.u32 %v1072_v39, 16  ;;  %v3043_v21 = vor.u32 %v3042_v50, %v3039_v43  ;;  %v3108_v39 = vshll.u32 %v3013_v11, 16  ;;  %v3085_v59 = vrot.slane %v3083_v55, 5  ;;  %v3016_v11 = vld [vmem:[#allocation2 + $0x78] sm:$0x1f] }
 0x1ce   : > { %v2749_v42 = vsel %vm2158_vm0, %v2747_v35, %v2748_v37  ;;  %v6911_v35 = vld [vmem:[%s8302_s4 + $0x148] sm:$0xff]   ;;  %v3082_v37 = vrot.slane %v3080_v45, 4  ;;  %v3156_v14 = vshrl.u32 %v3016_v11, 16 }
 0x1cf   : > { %v1835_v28 = vrot.slane %v1833_v36, 3  ;;  %v3099_v36 = vrot.slane %v3097_v15, 4  ;;  %v3159_v15 = vshll.u32 %v3016_v11, 16  ;;  %v3020_v11 = vld [vmem:[#allocation2 + $0xb8] sm:$0x1f] }
 0x1d0   : > { %v3086_v22 = vor.u32 %v3085_v59, %v3082_v37  ;;  %v3018_v37 = vld [vmem:[#allocation2 + $0x98] sm:$0x1f] }
 0x1d1   : > { %v1839_v24 = vor.u32 %v1838_v1, %v1835_v28  ;;  %v3103_v52 = vor.u32 %v3102_v33, %v3099_v36  ;;  %v3134_v28 = vshll.u32 %v6964_v47, 16  ;;  %v6915_v36 = vld [vmem:[%s8302_s4 + $0x168] sm:$0xff]   ;;  %v3167_v33 = vrot.slane %v3165_v30, 4 }
 0x1d2   : > { %6318 = vmatmul.mubr.bf16.gmra.mrb[24].mxu1 %v7484_v44  ;;  %v3059_v44 = vrot.slane %v3057_v49, 5  ;;  %v3093_v49 = vrot.slane %v3091_v58, 5  ;;  %v3151_v58 = vshll.u32 %v7347_v13, 16  ;;  %v3236_v30 = vshll.u32 %v7437_v20, 16 }
 0x1d3   : > { %6321 = vmatprep.mubr.bf16.mxu1 %v7595_v9  ;;  %v1846_v9 = vrot.slane %v1844_v62, 4  ;;  %v3110_v62 = vrot.slane %v3108_v39, 5  ;;  %v3168_v39 = vshll.u32 %v7350_v19, 16 }
 0x1d4   : > { %6170 = vmatmul.mubr.bf16.gmra.mrb[52].mxu0 %v7489_v57  ;;  %v3044_v57 = vsel %vm3027_vm2, %v3035_v61, %v3043_v21  ;;  %v3060_v32 = vor.u32 %v3059_v44, %v3056_v10  ;;  %v3114_v61 = vshrl.u32 %v6963_v54, 16  ;;  %v3117_v21 = vshll.u32 %v6963_v54, 16  ;;  %v3015_v10 = vld [vmem:[#allocation2 + $0x68] sm:$0x1f]  ;;  %v6912_v44 = vld [vmem:[%s8302_s4 + $0x150] sm:$0xff]  }
 0x1d5   : > { %6173 = vmatprep.mubr.bf16.mxu0 %v7499_v23  ;;  %v3073_v23 = vrot.slane %v3071_v63, 4  ;;  %v1847_v8 = vor.u32 %v1846_v9, %v1843_v3  ;;  %v3111_v63 = vor.u32 %v3110_v62, %v3107_v60  ;;  %v3139_v1 = vshrl.u32 %v3015_v10, 16 }
 0x1d6   : > { %v7665_v50 = vsel %vm3027_vm2, %v3052_v29, %v3060_v32  ;;  %v3142_v3 = vshll.u32 %v3015_v10, 16  ;;  %v3116_v9 = vrot.slane %v3114_v61, 4  ;;  %v3153_v59 = vrot.slane %v3151_v58, 5  ;;  %v3019_v10 = vld [vmem:[#allocation2 + $0xa8] sm:$0x1f] }
 0x1d7   : > { %v3077_v31 = vor.u32 %v3076_v12, %v3073_v23  ;;  %v1848_v43 = vsel %vm1074_vm1, %v1839_v24, %v1847_v8  ;;  %v7686_v12 = vsel %vm3027_vm2, %v3103_v52, %v3111_v63  ;;  %v3136_v8 = vrot.slane %v3134_v28, 5 }
 0x1d8   : > { %v3141_v29 = vrot.slane %v3139_v1, 4  ;;  %v3144_v32 = vrot.slane %v3142_v3, 5  ;;  %v3170_v19 = vrot.slane %v3168_v39, 5  ;;  %v3182_v61 = vshrl.u32 %v7391_v27, 16 }
 0x1d9   : > { %v7672_v41 = vsel %vm3027_vm2, %v3069_v18, %v3077_v31  ;;  %v3173_v18 = vshrl.u32 %v3017_v51, 16  ;;  %v3176_v31 = vshll.u32 %v3017_v51, 16  ;;  %v3207_v28 = vshrl.u32 %v3019_v10, 16 }
 0x1da   : > { %6322 = vmatmul.mubr.bf16.gmra.mrb[28].mxu1 %v2749_v42  ;;  %v3171_v52 = vor.u32 %v3170_v19, %v3167_v33  ;;  %v3210_v1 = vshll.u32 %v3019_v10, 16  ;;  %v3224_v58 = vshrl.u32 %v3020_v11, 16  ;;  %v3022_v19 = vld [vmem:[#allocation2 + $0xd8] sm:$0x1f] }
 0x1db   : > { %6341 = vmatprep.mubr.bf16.mxu1 %v3044_v57  ;;  %v3119_v57 = vrot.slane %v3117_v21, 5  ;;  %v3175_v60 = vrot.slane %v3173_v18, 4  ;;  %v3178_v62 = vrot.slane %v3176_v31, 5  ;;  %v3185_v21 = vshll.u32 %v7391_v27, 16 }
 0x1dc   : > { %6174 = vmatmul.mubr.bf16.gmra.mrb[56].mxu0 %v7509_v40  ;;  %v3014_v40 = vld [vmem:[#allocation2 + $0x58] sm:$0x1f]  ;;  %v3184_v27 = vrot.slane %v3182_v61, 4  ;;  %v3253_v61 = vshll.u32 %v7449_v25, 16 }
 0x1dd   : > { %6177 = vmatprep.mubr.bf16.mxu0 %v7518_v16  ;;  %v3090_v16 = vrot.slane %v3088_v56, 4  ;;  %v3122_v5 = vshrl.u32 %v3014_v40, 16  ;;  %v3125_v42 = vshll.u32 %v3014_v40, 16  ;;  %v3120_v45 = vor.u32 %v3119_v57, %v3116_v9 }
 0x1de   : > { %v3148_v56 = vshrl.u32 %v7347_v13, 16  ;;  %v3145_v40 = vor.u32 %v3144_v32, %v3141_v29  ;;  %v3179_v63 = vor.u32 %v3178_v62, %v3175_v60  ;;  %v3187_v3 = vrot.slane %v3185_v21, 5  ;;  %v3021_v32 = vld [vmem:[#allocation2 + $0xc8] sm:$0x1f] }
 0x1df   : > { %v3094_v48 = vor.u32 %v3093_v49, %v3090_v16  ;;  %v3124_v17 = vrot.slane %v3122_v5, 4  ;;  %v3127_v46 = vrot.slane %v3125_v42, 5  ;;  %v3158_v16 = vrot.slane %v3156_v14, 4  ;;  %v3023_v60 = vld [vmem:[#allocation2 + $0xe8] sm:$0x1f] }
 0x1e0   : > { %v3150_v13 = vrot.slane %v3148_v56, 4  ;;  %v3161_v49 = vrot.slane %v3159_v15, 5  ;;  %v3190_v5 = vshrl.u32 %v3018_v37, 16  ;;  %v3193_v42 = vshll.u32 %v3018_v37, 16  ;;  %v7731_v15 = vld [vmem:[%s8302_s4 + $0x200] sm:$0xff]  }
 0x1e1   : > { %v7683_v23 = vsel %vm3027_vm2, %v3086_v22, %v3094_v48  ;;  %v3128_v55 = vor.u32 %v3127_v46, %v3124_v17  ;;  %v6917_v17 = vld [vmem:[%s8302_s4 + $0x178] sm:$0xff]   ;;  %v3212_v29 = vrot.slane %v3210_v1, 5  ;;  %v3188_v51 = vor.u32 %v3187_v3, %v3184_v27 }
 0x1e2   : > { %6342 = vmatmul.mubr.bf16.vlgmr.msra.gmra.mrb[0].mxu1 %v7665_v50  ;;  %v3154_v22 = vor.u32 %v3153_v59, %v3150_v13  ;;  %v3162_v48 = vor.u32 %v3161_v49, %v3158_v16  ;;  %v3192_v9 = vrot.slane %v3190_v5, 4  ;;  %v3195_v57 = vrot.slane %v3193_v42, 5 }
 0x1e3   : > { %6374 = vmatpush3.bf16.msra.mxu1 %v7640_v26  ;;  %6345 = vmatprep.mubr.bf16.mxu1 %v7672_v41  ;;  %v3131_v26 = vshrl.u32 %v6964_v47, 16  ;;  %v3199_v47 = vshrl.u32 %v7404_v34, 16  ;;  %v3219_v56 = vshll.u32 %v7434_v53, 16  ;;  %v3227_v14 = vshll.u32 %v3020_v11, 16 }
 0x1e4   : > { %6178 = vmatmul.mubr.bf16.gmra.mrb[60].mxu0 %v1848_v43  ;;  %6375 = vmatprep.subr.bf16.mxu1 %v6911_v35  ;;  %v7719_v46 = vsel %vm3027_vm2, %v3154_v22, %v3162_v48  ;;  %v3241_v39 = vshrl.u32 %v3021_v32, 16  ;;  %v3244_v18 = vshll.u32 %v3021_v32, 16  ;;  %v3226_v13 = vrot.slane %v3224_v58, 4 }
 0x1e5   : > { %v3133_v24 = vrot.slane %v3131_v26, 4  ;;  %v3202_v26 = vshll.u32 %v7404_v34, 16  ;;  %v3201_v34 = vrot.slane %v3199_v47, 4  ;;  %v3221_v37 = vrot.slane %v3219_v56, 5 }
 0x1e6   : > { %v3229_v59 = vrot.slane %v3227_v14, 5  ;;  %v3238_v49 = vrot.slane %v3236_v30, 5  ;;  %v3246_v33 = vrot.slane %v3244_v18, 5  ;;  %v3250_v62 = vshrl.u32 %v7449_v25, 16 }
 0x1e7   : > { %6376 = vmatpush3.bf16.msra.mxu1 %v6911_v35  ;;  %v3137_v43 = vor.u32 %v3136_v8, %v3133_v24  ;;  %v7698_v35 = vsel %vm3027_vm2, %v3120_v45, %v3128_v55  ;;  %v3204_v24 = vrot.slane %v3202_v26, 5  ;;  %v3209_v8 = vrot.slane %v3207_v28, 4 }
 0x1e8   : > { %6377 = vmatprep.subr.bf16.mxu1 %v6912_v44  ;;  %v3196_v45 = vor.u32 %v3195_v57, %v3192_v9  ;;  %v3216_v55 = vshrl.u32 %v7434_v53, 16  ;;  %v3258_v21 = vshrl.u32 %v3022_v19, 16  ;;  %v3261_v5 = vshll.u32 %v3022_v19, 16  ;;  %v6930_v19 = vld [vmem:[%s8305_s7 + $0x20] sm:$0xff]  }
 0x1e9   : > { %v7705_v54 = vsel %vm3027_vm2, %v3137_v43, %v3145_v40  ;;  %v3205_v31 = vor.u32 %v3204_v24, %v3201_v34  ;;  %v3213_v43 = vor.u32 %v3212_v29, %v3209_v8  ;;  %v3230_v10 = vor.u32 %v3229_v59, %v3226_v13  ;;  %v3024_v34 = vld [vmem:[#allocation2 + $0xf8] sm:$0x1f]  ;;  %v6924_v13 = vld [vmem:[%s8302_s4 + $0x230] sm:$0xff]  }
 0x1ea   : > { %6346 = vmatmul.mubr.bf16.gmra.mrb[4].mxu1 %v7683_v23  ;;  %v7736_v40 = vsel %vm3027_vm2, %v3188_v51, %v3196_v45  ;;  %v3218_v53 = vrot.slane %v3216_v55, 4  ;;  %v3267_v48 = vshrl.u32 %v7451_v38, 16  ;;  %v3278_v47 = vshll.u32 %v3023_v60, 16  ;;  %v6925_v59 = vld [vmem:[%s8302_s4 + $0x238] sm:$0xff]  }
 0x1eb   : > { %6349 = vmatprep.mubr.bf16.mxu1 %v7686_v12  ;;  %6378 = vmatpush3.bf16.msra.mxu1 %v6912_v44  ;;  %v6916_v44 = vld [vmem:[%s8302_s4 + $0x170] sm:$0xff]   ;;  %v3252_v26 = vrot.slane %v3250_v62, 4  ;;  %v3255_v28 = vrot.slane %v3253_v61, 5  ;;  %v3260_v1 = vrot.slane %v3258_v21, 4  ;;  %v3263_v27 = vrot.slane %v3261_v5, 5  ;;  %v6931_v62 = vld [vmem:[%s8305_s7 + $0x28] sm:$0xff]  }
 0x1ec   : > { %6379 = vmatprep.subr.bf16.mxu1 %v6913_v4  ;;  %v3222_v42 = vor.u32 %v3221_v37, %v3218_v53  ;;  %v3269_v9 = vrot.slane %v3267_v48, 4  ;;  %v3280_v11 = vrot.slane %v3278_v47, 5  ;;  %v3284_v8 = vshrl.u32 %v7474_v0, 16  ;;  %v6920_v53 = vld [vmem:[%s8302_s4 + $0x210] sm:$0xff]   ;;  %v6923_v37 = vld [vmem:[%s8302_s4 + $0x228] sm:$0xff]  }
 0x1ed   : > { %v3264_v24 = vor.u32 %v3263_v27, %v3260_v1  ;;  %v3287_v29 = vshll.u32 %v7474_v0, 16  ;;  %v3292_v32 = vshrl.u32 %v3024_v34, 16  ;;  %v3295_v51 = vshll.u32 %v3024_v34, 16 }
 0x1ee   : > { %v7749_v3 = vsel %vm3027_vm2, %v3222_v42, %v3230_v10  ;;  %v3286_v58 = vrot.slane %v3284_v8, 4  ;;  %v3575_v61 = vshrl.u32 %v7587_v2, 16  ;;  %v3578_v21 = vshll.u32 %v7587_v2, 16  ;;  %v6932_v10 = vld [vmem:[%s8305_s7 + $0x30] sm:$0xff]  }
 0x1ef   : > { %6380 = vmatpush3.bf16.msra.mxu1 %v6913_v4  ;;  %v7722_v4 = vsel %vm3027_vm2, %v3171_v52, %v3179_v63  ;;  %v3270_v52 = vshll.u32 %v7451_v38, 16  ;;  %v3275_v63 = vshrl.u32 %v3023_v60, 16  ;;  %v3256_v38 = vor.u32 %v3255_v28, %v3252_v26  ;;  %v3025_v60 = vld [vmem:[#allocation2 + $0x108] sm:$0x1f] }
 0x1f0   : > { %6381 = vmatprep.subr.bf16.mxu1 %v6914_v6  ;;  %v3289_v14 = vrot.slane %v3287_v29, 5  ;;  %v3297_v30 = vrot.slane %v3295_v51, 5  ;;  %v3583_v5 = vshrl.u32 %v3025_v60, 16  ;;  %v3586_v42 = vshll.u32 %v3025_v60, 16  ;;  %v7920_v60 = vld [vmem:[%s8304_s6] ss:$0 sm:$0xff] }
 0x1f1   : > { %v3272_v57 = vrot.slane %v3270_v52, 5  ;;  %v7759_v56 = vsel %vm3027_vm2, %v3256_v38, %v3264_v24 }
 0x1f2   : > { %6350 = vmatmul.mubr.bf16.gmra.mrb[8].mxu1 %v7698_v35  ;;  %v3290_v18 = vor.u32 %v3289_v14, %v3286_v58  ;;  %v3585_v48 = vrot.slane %v3583_v5, 4  ;;  %v3588_v52 = vrot.slane %v3586_v42, 5 }
 0x1f3   : > { %6353 = vmatprep.mubr.bf16.mxu1 %v7705_v54  ;;  %6382 = vmatpush3.bf16.msra.mxu1 %v6914_v6  ;;  %v3233_v6 = vshrl.u32 %v7437_v20, 16  ;;  %v7741_v20 = vsel %vm3027_vm2, %v3205_v31, %v3213_v43  ;;  %v3273_v45 = vor.u32 %v3272_v57, %v3269_v9  ;;  %v6919_v43 = vld [vmem:[%s8302_s4 + $0x208] sm:$0xff]  }
 0x1f4   : > { %6383 = vmatprep.subr.bf16.mxu1 %v6915_v36  ;;  %v3589_v2 = vor.u32 %v3588_v52, %v3585_v48 }
 0x1f5   : > { %v3235_v16 = vrot.slane %v3233_v6, 4  ;;  %v3294_v6 = vrot.slane %v3292_v32, 4 }
 0x1f7   : > { %6384 = vmatpush3.bf16.msra.mxu1 %v6915_v36  ;;  %v3243_v36 = vrot.slane %v3241_v39, 4  ;;  %v3298_v0 = vor.u32 %v3297_v30, %v3294_v6 }
 0x1f8   : > { %6385 = vmatprep.subr.bf16.mxu1 %v6916_v44 }
 0x1f9   : > { %v3247_v22 = vor.u32 %v3246_v33, %v3243_v36  ;;  %v7767_v31 = vsel %vm3027_vm2, %v3290_v18, %v3298_v0  ;;  %v6928_v36 = vld [vmem:[%s8305_s7 + $0x10] sm:$0xff]   ;;  %v6929_v33 = vld [vmem:[%s8305_s7 + $0x18] sm:$0xff]  }
 0x1fa   : > { %6354 = vmatmul.mubr.bf16.gmra.mrb[12].mxu1 %v7719_v46 }
 0x1fb   : > { %6357 = vmatprep.mubr.bf16.mxu1 %v7722_v4  ;;  %6386 = vmatpush3.bf16.msra.mxu1 %v6916_v44  ;;  %v3239_v44 = vor.u32 %v3238_v49, %v3235_v16  ;;  %v6926_v16 = vld [vmem:[%s8305_s7] sm:$0xff]   ;;  %v6927_v49 = vld [vmem:[%s8305_s7 + $0x8] sm:$0xff]  }
 0x1fc   : > { %6387 = vmatprep.subr.bf16.mxu1 %v6917_v17  ;;  %6469 = vmatprep.subr.bf16.mxu0 %v6926_v16 }
 0x1fd   : > { %v7752_v25 = vsel %vm3027_vm2, %v3239_v44, %v3247_v22  ;;  %6470 = vmatpush3.bf16.msra.mxu0 %v6926_v16  ;;  %v3577_v44 = vrot.slane %v3575_v61, 4  ;;  %v3580_v22 = vrot.slane %v3578_v21, 5  ;;  %v6934_v16 = vld [vmem:[%s8308_s10] sm:$0xff]  }
 0x1fe   : > { %6471 = vmatprep.subr.bf16.mxu0 %v6927_v49 }
 0x1ff   : > { %6388 = vmatpush3.bf16.msra.mxu1 %v6917_v17  ;;  %v3277_v17 = vrot.slane %v3275_v63, 4  ;;  %v3581_v63 = vor.u32 %v3580_v22, %v3577_v44 }
 0x200   : > { %6421 = vmatprep.subr.bf16.mxu1 %v7731_v15 }
 0x201   : > { %v3281_v55 = vor.u32 %v3280_v11, %v3277_v17  ;;  %6472 = vmatpush3.bf16.msra.mxu0 %v6927_v49  ;;  %v3590_v47 = vsel %vm3027_vm2, %v3581_v63, %v3589_v2 }
 0x202   : > { %6358 = vmatmul.mubr.bf16.gmra.mrb[16].mxu1 %v7736_v40  ;;  %6473 = vmatprep.subr.bf16.mxu0 %v6928_v36 }
 0x203   : > { %6361 = vmatprep.mubr.bf16.mxu1 %v7741_v20  ;;  %v7763_v39 = vsel %vm3027_vm2, %v3273_v45, %v3281_v55 }
 0x205   : > { %6474 = vmatpush3.bf16.msra.mxu0 %v6928_v36  ;;  %v7915_v36 = vld [vmem:[%s8303_s5] ss:$0 sm:$0xff] }
 0x206   : > { %6475 = vmatprep.subr.bf16.mxu0 %v6929_v33 }
 0x209   : > { %6476 = vmatpush3.bf16.msra.mxu0 %v6929_v33 }
 0x20a   : > { %6362 = vmatmul.mubr.bf16.gmra.mrb[20].mxu1 %v7749_v3  ;;  %6477 = vmatprep.subr.bf16.mxu0 %v6930_v19 }
 0x20b   : > { %6365 = vmatprep.mubr.bf16.mxu1 %v7752_v25 }
 0x20d   : > { %6478 = vmatpush3.bf16.msra.mxu0 %v6930_v19 }
 0x20e   : > { %6479 = vmatprep.subr.bf16.mxu0 %v6931_v62 }
 0x211   : > { %6480 = vmatpush3.bf16.msra.mxu0 %v6931_v62 }
 0x212   : > { %6366 = vmatmul.mubr.bf16.gmra.mrb[24].mxu1 %v7759_v56  ;;  %6481 = vmatprep.subr.bf16.mxu0 %v6932_v10 }
 0x213   : > { %6369 = vmatprep.mubr.bf16.mxu1 %v7763_v39 }
 0x215   : > { %6482 = vmatpush3.bf16.msra.mxu0 %v6932_v10 }
 0x21a   : > { %6370 = vmatmul.mubr.bf16.gmra.mrb[28].mxu1 %v7767_v31 }
 0x21b   : > { %6389 = vmatprep.mubr.bf16.mxu1 %v7665_v50  ;;  %v6921_v50 = vld [vmem:[%s8302_s4 + $0x218] sm:$0xff]  }
 0x222   : > { %6390 = vmatmul.mubr.bf16.vlgmr.msra.gmra.mrb[0].mxu1 %v7672_v41 }
 0x223   : > { %6422 = vmatpush3.bf16.msra.mxu1 %v7731_v15  ;;  %6393 = vmatprep.mubr.bf16.mxu1 %v7683_v23  ;;  %v6922_v15 = vld [vmem:[%s8302_s4 + $0x220] sm:$0xff]  }
 0x224   : > { %6423 = vmatprep.subr.bf16.mxu1 %v6919_v43 }
 0x227   : > { %6424 = vmatpush3.bf16.msra.mxu1 %v6919_v43 }
 0x228   : > { %6425 = vmatprep.subr.bf16.mxu1 %v6920_v53 }
 0x22a   : > { %6394 = vmatmul.mubr.bf16.gmra.mrb[4].mxu1 %v7686_v12 }
 0x22b   : > { %6397 = vmatprep.mubr.bf16.mxu1 %v7698_v35  ;;  %6426 = vmatpush3.bf16.msra.mxu1 %v6920_v53 }
 0x22c   : > { %6427 = vmatprep.subr.bf16.mxu1 %v6921_v50 }
 0x22f   : > { %6428 = vmatpush3.bf16.msra.mxu1 %v6921_v50 }
 0x230   : > { %6429 = vmatprep.subr.bf16.mxu1 %v6922_v15 }
 0x232   : > { %6398 = vmatmul.mubr.bf16.gmra.mrb[8].mxu1 %v7705_v54 }
 0x233   : > { %6401 = vmatprep.mubr.bf16.mxu1 %v7719_v46  ;;  %6430 = vmatpush3.bf16.msra.mxu1 %v6922_v15 }
 0x234   : > { %6431 = vmatprep.subr.bf16.mxu1 %v6923_v37 }
 0x237   : > { %6432 = vmatpush3.bf16.msra.mxu1 %v6923_v37 }
 0x238   : > { %6433 = vmatprep.subr.bf16.mxu1 %v6924_v13 }
 0x23a   : > { %6402 = vmatmul.mubr.bf16.gmra.mrb[12].mxu1 %v7722_v4 }
 0x23b   : > { %6405 = vmatprep.mubr.bf16.mxu1 %v7736_v40  ;;  %6434 = vmatpush3.bf16.msra.mxu1 %v6924_v13 }
 0x23c   : > { %6435 = vmatprep.subr.bf16.mxu1 %v6925_v59 }
 0x23f   : > { %6436 = vmatpush3.bf16.msra.mxu1 %v6925_v59  ;;  %v6933_v59 = vld [vmem:[%s8305_s7 + $0x38] sm:$0xff]  }
 0x240   : > { %6483 = vmatprep.subr.bf16.mxu0 %v6933_v59 }
 0x241   : > { %6484 = vmatpush3.bf16.msra.mxu0 %v6933_v59 }
 0x242   : > { %6406 = vmatmul.mubr.bf16.gmra.mrb[16].mxu1 %v7741_v20  ;;  %6517 = vmatprep.subr.bf16.mxu0 %v6934_v16 }
 0x243   : > { %6409 = vmatprep.mubr.bf16.mxu1 %v7749_v3 }
 0x24a   : > { %6410 = vmatmul.mubr.bf16.gmra.mrb[20].mxu1 %v7752_v25 }
 0x24b   : > { %6413 = vmatprep.mubr.bf16.mxu1 %v7759_v56 }
 0x252   : > { %6414 = vmatmul.mubr.bf16.gmra.mrb[24].mxu1 %v7763_v39 }
 0x253   : > { %6417 = vmatprep.mubr.bf16.mxu1 %v7767_v31 }
 0x25a   : > { %6418 = vmatmul.mubr.bf16.gmra.mrb[28].mxu1 %v3590_v47 }
 0x25b   : > { %6437 = vmatprep.mubr.bf16.mxu1 %v7672_v41 }
 0x262   : > { %6438 = vmatmul.mubr.bf16.vlgmr.msra.gmra.mrb[0].mxu1 %v7683_v23 }
 0x263   : > { %6441 = vmatprep.mubr.bf16.mxu1 %v7686_v12 }
 0x26a   : > { %6442 = vmatmul.mubr.bf16.gmra.mrb[4].mxu1 %v7698_v35  ;;  %v3026_v35 = vld [vmem:[#allocation2 + $0x118] sm:$0x1f] }
 0x26b   : > { %6445 = vmatprep.mubr.bf16.mxu1 %v7705_v54  ;;  %v3862_v27 = vshll.u32 %v3026_v35, 16 }
 0x26d   : > { %v3864_v17 = vrot.slane %v3862_v27, 5 }
 0x272   : > { %6446 = vmatmul.mubr.bf16.gmra.mrb[8].mxu1 %v7719_v46 }
 0x273   : > { %6449 = vmatprep.mubr.bf16.mxu1 %v7722_v4  ;;  %v3851_v4 = vshrl.u32 %v7652_v7, 16 }
 0x27a   : > { %6450 = vmatmul.mubr.bf16.gmra.mrb[12].mxu1 %v7736_v40  ;;  %v3854_v40 = vshll.u32 %v7652_v7, 16 }
 0x27b   : > { %6453 = vmatprep.mubr.bf16.mxu1 %v7741_v20  ;;  %v3859_v20 = vshrl.u32 %v3026_v35, 16 }
 0x27c   : > { %v3856_v9 = vrot.slane %v3854_v40, 5 }
 0x27d   : > { %v3861_v57 = vrot.slane %v3859_v20, 4 }
 0x27f   : > { %v6151_v26 = vpop.f32.mrb[32].mxu0  ;;  %v3865_v8 = vor.u32 %v3864_v17, %v3861_v57 }
 0x280   : > { %v1949_v28 = vpop.f32.mrb[33].mxu0 }
 0x281   : > { %v6152_v1 = vpop.f32.mrb[34].mxu0 }
 0x282   : > { %v7840_v41 = vpop.f32.mrb[35].mxu0  ;;  %6454 = vmatmul.mubr.bf16.gmra.mrb[16].mxu1 %v7749_v3 }
 0x283   : > { %6457 = vmatprep.mubr.bf16.mxu1 %v7752_v25  ;;  %v3853_v25 = vrot.slane %v3851_v4, 4 }
 0x285   : > { %v3857_v24 = vor.u32 %v3856_v9, %v3853_v25 }
 0x287   : > { %v7844_v23 = vpop.f32.mrb[36].mxu0  ;;  %v3866_v29 = vsel %vm3027_vm2, %v3857_v24, %v3865_v8 }
 0x288   : > { %v7846_v12 = vpop.f32.mrb[37].mxu0 }
 0x289   : > { %v7848_v54 = vpop.f32.mrb[38].mxu0 }
 0x28a   : > { %v7850_v46 = vpop.f32.mrb[39].mxu0  ;;  %6458 = vmatmul.mubr.bf16.gmra.mrb[20].mxu1 %v7759_v56 }
 0x28b   : > { %6461 = vmatprep.mubr.bf16.mxu1 %v7763_v39 }
 0x28f   : > { %v7856_v3 = vpop.f32.mrb[40].mxu0 }
 0x290   : > { %v7858_v11 = vpop.f32.mrb[41].mxu0 }
 0x291   : > { %v7860_v34 = vpop.f32.mrb[42].mxu0 }
 0x292   : > { %v7862_v38 = vpop.f32.mrb[43].mxu0  ;;  %6462 = vmatmul.mubr.bf16.gmra.mrb[24].mxu1 %v7767_v31 }
 0x293   : > { %6465 = vmatprep.mubr.bf16.mxu1 %v3590_v47 }
 0x297   : > { %v7865_v7 = vpop.f32.mrb[44].mxu0 }
 0x298   : > { %v7868_v32 = vpop.f32.mrb[45].mxu0 }
 0x299   : > { %v7870_v51 = vpop.f32.mrb[46].mxu0 }
 0x29a   : > { %v7872_v45 = vpop.f32.mrb[47].mxu0  ;;  %6466 = vmatmul.mubr.bf16.gmra.mrb[28].mxu1 %v3866_v29 }
 0x29f   : > { %v7874_v55 = vpop.f32.mrb[48].mxu0 }
 0x2a0   : > { %v7876_v56 = vpop.f32.mrb[49].mxu0 }
 0x2a1   : > { %v7878_v58 = vpop.f32.mrb[50].mxu0 }
 0x2a2   : > { %v7880_v14 = vpop.f32.mrb[51].mxu0 }
 0x2a7   : > { %v7882_v6 = vpop.f32.mrb[52].mxu0 }
 0x2a8   : > { %v7884_v30 = vpop.f32.mrb[53].mxu0 }
 0x2a9   : > { %v7886_v39 = vpop.f32.mrb[54].mxu0 }
 0x2aa   : > { %v7888_v18 = vpop.f32.mrb[55].mxu0 }
 0x2af   : > { %v7890_v0 = vpop.f32.mrb[56].mxu0 }
 0x2b0   : > { %v7892_v31 = vpop.f32.mrb[57].mxu0 }
 0x2b1   : > { %v7894_v43 = vpop.f32.mrb[58].mxu0 }
 0x2b2   : > { %v7896_v53 = vpop.f32.mrb[59].mxu0 }
 0x2b7   : > { %v7898_v50 = vpop.f32.mrb[60].mxu0 }
 0x2b8   : > { %v7900_v15 = vpop.f32.mrb[61].mxu0 }
 0x2b9   : > { %v7902_v37 = vpop.f32.mrb[62].mxu0 }
 0x2ba   : > { %v7904_v13 = vpop.f32.mrb[63].mxu0 }
 0x335   : > { %v6439_v49 = vpop.f32.mrb[0].mxu1 }
 0x336   : > { %v6565_v33 = vadd.f32 %v6439_v49, %v6151_v26  ;;  %v3967_v19 = vpop.f32.mrb[1].mxu1 }
 0x337   : > { %v6566_v62 = vadd.f32 %v3967_v19, %v1949_v28  ;;  %v6440_v61 = vpop.f32.mrb[2].mxu1 }
 0x338   : > { %v4135_v21 = vmul.f32 %v6565_v33, %v7915_v36  ;;  %v6567_v5 = vadd.f32 %v6440_v61, %v6152_v1  ;;  %v3970_v42 = vpop.f32.mrb[3].mxu1 }
 0x339   : > { %v4133_v10 = vmul.f32 %v6566_v62, %v7915_v36  ;;  %v6568_v44 = vadd.f32 %v3970_v42, %v7840_v41  ;;  %v6936_v42 = vld [vmem:[%s8308_s10 + $0x10] sm:$0xff]  }
 0x33a   : > { %v4174_v22 = vadd.f32 %v7920_v60, %v4135_v21  ;;  %v4136_v48 = vmul.f32 %v6567_v5, %v7915_v36 }
 0x33b   : > { %v4172_v52 = vadd.f32 %v7920_v60, %v4133_v10  ;;  %v4134_v63 = vmul.f32 %v6568_v44, %v7915_v36 }
 0x33c   : > { %v4175_v2 = vadd.f32 %v7920_v60, %v4136_v48  ;;  %v4206_v28 = vmax.f32 %v4174_v22, 0.0 }
 0x33d   : > { %v4173_v47 = vadd.f32 %v7920_v60, %v4134_v63  ;;  %v6443_v26 = vpop.f32.mrb[4].mxu1  ;;  %v4204_v40 = vmax.f32 %v4172_v52, 0.0 }
 0x33e   : > { %v4207_v1 = vmax.f32 %v4175_v2, 0.0  ;;  %v6569_v35 = vadd.f32 %v6443_v26, %v7844_v23  ;;  %v3983_v4 = vpop.f32.mrb[5].mxu1 }
 0x33f   : > { %v4205_v41 = vmax.f32 %v4173_v47, 0.0  ;;  %v6570_v20 = vadd.f32 %v3983_v4, %v7846_v12  ;;  %v6444_v27 = vpop.f32.mrb[6].mxu1  ;;  %v6935_v12 = vld [vmem:[%s8308_s10 + $0x8] sm:$0xff]  }
 0x340   : > { %v4237_v25 = vpack.c.bf16 %v4207_v1, %v4206_v28  ;;  %v4139_v9 = vmul.f32 %v6569_v35, %v7915_v36  ;;  %v6571_v57 = vadd.f32 %v6444_v27, %v7848_v54  ;;  %v3986_v17 = vpop.f32.mrb[7].mxu1 }
 0x341   : > { %v4137_v24 = vmul.f32 %v6570_v20, %v7915_v36  ;;  %v6572_v8 = vadd.f32 %v3986_v17, %v7850_v46  ;;  %v4236_v29 = vpack.c.bf16 %v4205_v41, %v4204_v40 }
 0x342   : > { %v4178_v59 = vadd.f32 %v7920_v60, %v4139_v9  ;;  %v4140_v23 = vmul.f32 %v6571_v57, %v7915_v36  ;;  %v6938_v9 = vld [vmem:[%s8308_s10 + $0x20] sm:$0xff]  }
 0x343   : > { %v4176_v49 = vadd.f32 %v7920_v60, %v4137_v24  ;;  %v4138_v33 = vmul.f32 %v6572_v8, %v7915_v36  ;;  %6485 = vmatprep.mubr.bf16.mxu0 %v4236_v29 }
 0x344   : > { %v4179_v54 = vadd.f32 %v7920_v60, %v4140_v23  ;;  %6486 = vmatmul.mubr.bf16.vlgmr.msra.gmra.mrb[64].mxu0 %v4237_v25  ;;  %v4210_v62 = vmax.f32 %v4178_v59, 0.0 }
 0x345   : > { %v4177_v19 = vadd.f32 %v7920_v60, %v4138_v33  ;;  %6518 = vmatpush3.bf16.msra.mxu0 %v6934_v16  ;;  %v6447_v46 = vpop.f32.mrb[8].mxu1  ;;  %v4208_v10 = vmax.f32 %v4176_v49, 0.0 }
 0x346   : > { %v4211_v61 = vmax.f32 %v4179_v54, 0.0  ;;  %v6573_v21 = vadd.f32 %v6447_v46, %v7856_v3  ;;  %v3999_v5 = vpop.f32.mrb[9].mxu1  ;;  %6519 = vmatprep.subr.bf16.mxu0 %v6935_v12 }
 0x347   : > { %v4209_v44 = vmax.f32 %v4177_v19, 0.0  ;;  %v6574_v22 = vadd.f32 %v3999_v5, %v7858_v11  ;;  %v6448_v48 = vpop.f32.mrb[10].mxu1  ;;  %v6937_v11 = vld [vmem:[%s8308_s10 + $0x18] sm:$0xff]  }
 0x348   : > { %v4143_v52 = vmul.f32 %v6573_v21, %v7915_v36  ;;  %v6575_v16 = vadd.f32 %v6448_v48, %v7860_v34  ;;  %v4002_v63 = vpop.f32.mrb[11].mxu1  ;;  %v4239_v2 = vpack.c.bf16 %v4211_v61, %v4210_v62 }
 0x349   : > { %v4141_v47 = vmul.f32 %v6574_v22, %v7915_v36  ;;  %v6576_v3 = vadd.f32 %v4002_v63, %v7862_v38  ;;  %v4238_v26 = vpack.c.bf16 %v4209_v44, %v4208_v10  ;;  %6520 = vmatpush3.bf16.msra.mxu0 %v6935_v12  ;;  %v6940_v44 = vld [vmem:[%s8308_s10 + $0x30] sm:$0xff]  }
 0x34a   : > { %v4182_v28 = vadd.f32 %v7920_v60, %v4143_v52  ;;  %v4144_v1 = vmul.f32 %v6575_v16, %v7915_v36  ;;  %6521 = vmatprep.subr.bf16.mxu0 %v6936_v42 }
 0x34b   : > { %v4180_v35 = vadd.f32 %v7920_v60, %v4141_v47  ;;  %v4142_v34 = vmul.f32 %v6576_v3, %v7915_v36  ;;  %6489 = vmatprep.mubr.bf16.mxu0 %v4238_v26 }
 0x34c   : > { %v4183_v4 = vadd.f32 %v7920_v60, %v4144_v1  ;;  %6490 = vmatmul.mubr.bf16.gmra.mrb[68].mxu0 %v4239_v2  ;;  %v4214_v41 = vmax.f32 %v4182_v28, 0.0 }
 0x34d   : > { %v4181_v38 = vadd.f32 %v7920_v60, %v4142_v34  ;;  %v6451_v40 = vpop.f32.mrb[12].mxu1  ;;  %6522 = vmatpush3.bf16.msra.mxu0 %v6936_v42  ;;  %v4212_v57 = vmax.f32 %v4180_v35, 0.0 }
 0x34e   : > { %v4215_v20 = vmax.f32 %v4183_v4, 0.0  ;;  %v6577_v27 = vadd.f32 %v6451_v40, %v7865_v7  ;;  %v4015_v25 = vpop.f32.mrb[13].mxu1  ;;  %6523 = vmatprep.subr.bf16.mxu0 %v6937_v11 }
 0x34f   : > { %v4213_v17 = vmax.f32 %v4181_v38, 0.0  ;;  %v6578_v24 = vadd.f32 %v4015_v25, %v7868_v32  ;;  %v6452_v8 = vpop.f32.mrb[14].mxu1  ;;  %v6939_v32 = vld [vmem:[%s8308_s10 + $0x28] sm:$0xff]  }
 0x350   : > { %v4147_v29 = vmul.f32 %v6577_v27, %v7915_v36  ;;  %v6579_v59 = vadd.f32 %v6452_v8, %v7870_v51  ;;  %v4018_v23 = vpop.f32.mrb[15].mxu1  ;;  %v4241_v12 = vpack.c.bf16 %v4215_v20, %v4214_v41 }
 0x351   : > { %v4145_v49 = vmul.f32 %v6578_v24, %v7915_v36  ;;  %v6580_v7 = vadd.f32 %v4018_v23, %v7872_v45  ;;  %v4240_v33 = vpack.c.bf16 %v4213_v17, %v4212_v57  ;;  %6524 = vmatpush3.bf16.msra.mxu0 %v6937_v11 }
 0x352   : > { %v4186_v54 = vadd.f32 %v7920_v60, %v4147_v29  ;;  %v4148_v19 = vmul.f32 %v6579_v59, %v7915_v36  ;;  %6525 = vmatprep.subr.bf16.mxu0 %v6938_v9 }
 0x353   : > { %v4184_v46 = vadd.f32 %v7920_v60, %v4145_v49  ;;  %v4146_v51 = vmul.f32 %v6580_v7, %v7915_v36  ;;  %6493 = vmatprep.mubr.bf16.mxu0 %v4240_v33 }
 0x354   : > { %v4187_v62 = vadd.f32 %v7920_v60, %v4148_v19  ;;  %6494 = vmatmul.mubr.bf16.gmra.mrb[72].mxu0 %v4241_v12  ;;  %v4218_v21 = vmax.f32 %v4186_v54, 0.0 }
 0x355   : > { %v4185_v45 = vadd.f32 %v7920_v60, %v4146_v51  ;;  %v6455_v61 = vpop.f32.mrb[16].mxu1  ;;  %6526 = vmatpush3.bf16.msra.mxu0 %v6938_v9  ;;  %v4216_v22 = vmax.f32 %v4184_v46, 0.0 }
 0x356   : > { %v4219_v5 = vmax.f32 %v4187_v62, 0.0  ;;  %v6581_v42 = vadd.f32 %v6455_v61, %v7874_v55  ;;  %v4031_v10 = vpop.f32.mrb[17].mxu1  ;;  %6527 = vmatprep.subr.bf16.mxu0 %v6939_v32 }
 0x357   : > { %v4217_v48 = vmax.f32 %v4185_v45, 0.0  ;;  %v6582_v52 = vadd.f32 %v4031_v10, %v7876_v56  ;;  %v6456_v16 = vpop.f32.mrb[18].mxu1  ;;  %v6941_v56 = vld [vmem:[%s8308_s10 + $0x38] sm:$0xff]  }
 0x358   : > { %v4151_v63 = vmul.f32 %v6581_v42, %v7915_v36  ;;  %v6583_v2 = vadd.f32 %v6456_v16, %v7878_v58  ;;  %v4034_v47 = vpop.f32.mrb[19].mxu1  ;;  %v4243_v3 = vpack.c.bf16 %v4219_v5, %v4218_v21 }
 0x359   : > { %v4149_v26 = vmul.f32 %v6582_v52, %v7915_v36  ;;  %v6584_v55 = vadd.f32 %v4034_v47, %v7880_v14  ;;  %v4242_v28 = vpack.c.bf16 %v4217_v48, %v4216_v22  ;;  %6528 = vmatpush3.bf16.msra.mxu0 %v6939_v32 }
 0x35a   : > { %v4190_v1 = vadd.f32 %v7920_v60, %v4151_v63  ;;  %v4152_v11 = vmul.f32 %v6583_v2, %v7915_v36  ;;  %6529 = vmatprep.subr.bf16.mxu0 %v6940_v44 }
 0x35b   : > { %v4188_v35 = vadd.f32 %v7920_v60, %v4149_v26  ;;  %v4150_v58 = vmul.f32 %v6584_v55, %v7915_v36  ;;  %6497 = vmatprep.mubr.bf16.mxu0 %v4242_v28 }
 0x35c   : > { %v4191_v34 = vadd.f32 %v7920_v60, %v4152_v11  ;;  %6498 = vmatmul.mubr.bf16.gmra.mrb[76].mxu0 %v4243_v3  ;;  %v4222_v38 = vmax.f32 %v4190_v1, 0.0 }
 0x35d   : > { %v4189_v14 = vadd.f32 %v7920_v60, %v4150_v58  ;;  %v6459_v4 = vpop.f32.mrb[20].mxu1  ;;  %6530 = vmatpush3.bf16.msra.mxu0 %v6940_v44  ;;  %v4220_v27 = vmax.f32 %v4188_v35, 0.0 }
 0x35e   : > { %v4223_v40 = vmax.f32 %v4191_v34, 0.0  ;;  %v6585_v41 = vadd.f32 %v6459_v4, %v7882_v6  ;;  %v4047_v20 = vpop.f32.mrb[21].mxu1  ;;  %6531 = vmatprep.subr.bf16.mxu0 %v6941_v56 }
 0x35f   : > { %v4221_v25 = vmax.f32 %v4189_v14, 0.0  ;;  %v6586_v9 = vadd.f32 %v4047_v20, %v7884_v30  ;;  %v6460_v57 = vpop.f32.mrb[22].mxu1 }
 0x360   : > { %v4155_v17 = vmul.f32 %v6585_v41, %v7915_v36  ;;  %v6587_v24 = vadd.f32 %v6460_v57, %v7886_v39  ;;  %v4050_v8 = vpop.f32.mrb[23].mxu1  ;;  %v4245_v29 = vpack.c.bf16 %v4223_v40, %v4222_v38 }
 0x361   : > { %v4153_v59 = vmul.f32 %v6586_v9, %v7915_v36  ;;  %v6588_v23 = vadd.f32 %v4050_v8, %v7888_v18  ;;  %v4244_v12 = vpack.c.bf16 %v4221_v25, %v4220_v27  ;;  %6532 = vmatpush3.bf16.msra.mxu0 %v6941_v56  ;;  %v6944_v8 = vld [vmem:[%s7069_s19 + $0x10] sm:$0xff]  }
 0x362   : > { %v4194_v6 = vadd.f32 %v7920_v60, %v4155_v17  ;;  %v4156_v49 = vmul.f32 %v6587_v24, %v7915_v36  ;;  %v6942_v24 = vld [vmem:[%s7069_s19] sm:$0xff]  }
 0x363   : > { %v4192_v7 = vadd.f32 %v7920_v60, %v4153_v59  ;;  %v4154_v30 = vmul.f32 %v6588_v23, %v7915_v36  ;;  %6501 = vmatprep.mubr.bf16.mxu0 %v4244_v12  ;;  %v6947_v59 = vld [vmem:[%s7069_s19 + $0x28] sm:$0xff]   ;;  %v6948_v23 = vld [vmem:[%s7069_s19 + $0x30] sm:$0xff]   ;;  %v6949_v12 = vld [vmem:[%s7069_s19 + $0x38] sm:$0xff]  }
 0x364   : > { %v4195_v33 = vadd.f32 %v7920_v60, %v4156_v49  ;;  %6502 = vmatmul.mubr.bf16.gmra.mrb[80].mxu0 %v4245_v29  ;;  %v4226_v19 = vmax.f32 %v4194_v6, 0.0  ;;  %v6946_v29 = vld [vmem:[%s7069_s19 + $0x20] sm:$0xff]   ;;  %v6951_v49 = vld [vmem:[%s7069_s19 + $0x48] sm:$0xff]  }
 0x365   : > { %v4193_v39 = vadd.f32 %v7920_v60, %v4154_v30  ;;  %v6463_v54 = vpop.f32.mrb[24].mxu1  ;;  %v4224_v51 = vmax.f32 %v4192_v7, 0.0  ;;  %v6950_v6 = vld [vmem:[%s7069_s19 + $0x40] sm:$0xff]   ;;  %v6952_v7 = vld [vmem:[%s7069_s19 + $0x50] sm:$0xff]   ;;  %v6953_v30 = vld [vmem:[%s7069_s19 + $0x58] sm:$0xff]  }
 0x366   : > { %v4227_v32 = vmax.f32 %v4195_v33, 0.0  ;;  %v6589_v18 = vadd.f32 %v6463_v54, %v7890_v0  ;;  %v4063_v46 = vpop.f32.mrb[25].mxu1  ;;  %v6954_v33 = vld [vmem:[%s7069_s19 + $0x60] sm:$0xff]   ;;  %v6956_v54 = vld [vmem:[%s7069_s19 + $0x70] sm:$0xff]  }
 0x367   : > { %v4225_v62 = vmax.f32 %v4193_v39, 0.0  ;;  %v6590_v45 = vadd.f32 %v4063_v46, %v7892_v31  ;;  %v6464_v61 = vpop.f32.mrb[26].mxu1  ;;  %v6955_v39 = vld [vmem:[%s7069_s19 + $0x68] sm:$0xff]  }
 0x368   : > { %v4159_v21 = vmul.f32 %v6589_v18, %v7915_v36  ;;  %v6591_v5 = vadd.f32 %v6464_v61, %v7894_v43  ;;  %v4066_v42 = vpop.f32.mrb[27].mxu1  ;;  %v4247_v10 = vpack.c.bf16 %v4227_v32, %v4226_v19  ;;  %v6957_v19 = vld [vmem:[%s7069_s19 + $0x78] sm:$0xff]  }
 0x369   : > { %v4157_v44 = vmul.f32 %v6590_v45, %v7915_v36  ;;  %v6592_v22 = vadd.f32 %v4066_v42, %v7896_v53  ;;  %v4246_v48 = vpack.c.bf16 %v4225_v62, %v4224_v51 }
 0x36a   : > { %v4198_v52 = vadd.f32 %v7920_v60, %v4159_v21  ;;  %v4160_v0 = vmul.f32 %v6591_v5, %v7915_v36 }
 0x36b   : > { %v4196_v16 = vadd.f32 %v7920_v60, %v4157_v44  ;;  %v4158_v31 = vmul.f32 %v6592_v22, %v7915_v36  ;;  %6505 = vmatprep.mubr.bf16.mxu0 %v4246_v48 }
 0x36c   : > { %v4199_v63 = vadd.f32 %v7920_v60, %v4160_v0  ;;  %6506 = vmatmul.mubr.bf16.gmra.mrb[84].mxu0 %v4247_v10  ;;  %v4230_v47 = vmax.f32 %v4198_v52, 0.0 }
 0x36d   : > { %v4197_v43 = vadd.f32 %v7920_v60, %v4158_v31  ;;  %v6467_v2 = vpop.f32.mrb[28].mxu1  ;;  %v4228_v55 = vmax.f32 %v4196_v16, 0.0 }
 0x36e   : > { %v4231_v3 = vmax.f32 %v4199_v63, 0.0  ;;  %v6593_v53 = vadd.f32 %v6467_v2, %v7898_v50  ;;  %v4079_v26 = vpop.f32.mrb[29].mxu1 }
 0x36f   : > { %v4229_v28 = vmax.f32 %v4197_v43, 0.0  ;;  %v6594_v1 = vadd.f32 %v4079_v26, %v7900_v15  ;;  %v6468_v11 = vpop.f32.mrb[30].mxu1 }
 0x370   : > { %v4163_v56 = vmul.f32 %v6593_v53, %v7915_v36  ;;  %v6595_v35 = vadd.f32 %v6468_v11, %v7902_v37  ;;  %v4082_v58 = vpop.f32.mrb[31].mxu1  ;;  %v4249_v34 = vpack.c.bf16 %v4231_v3, %v4230_v47 }
 0x371   : > { %v4161_v14 = vmul.f32 %v6594_v1, %v7915_v36  ;;  %v6596_v4 = vadd.f32 %v4082_v58, %v7904_v13  ;;  %v4248_v38 = vpack.c.bf16 %v4229_v28, %v4228_v55 }
 0x372   : > { %v4202_v50 = vadd.f32 %v7920_v60, %v4163_v56  ;;  %v4164_v40 = vmul.f32 %v6595_v35, %v7915_v36 }
 0x373   : > { %v4200_v41 = vadd.f32 %v7920_v60, %v4161_v14  ;;  %v4162_v15 = vmul.f32 %v6596_v4, %v7915_v36  ;;  %6509 = vmatprep.mubr.bf16.mxu0 %v4248_v38  ;;  %v6943_v36 = vld [vmem:[%s7069_s19 + $0x8] sm:$0xff]   ;;  %v8108_v14 = vld [vmem:[%s8309_s11] ss:$0 sm:$0xff] }
 0x374   : > { %v4203_v37 = vadd.f32 %v7920_v60, %v4164_v40  ;;  %6510 = vmatmul.mubr.bf16.gmra.mrb[88].mxu0 %v4249_v34  ;;  %v4234_v13 = vmax.f32 %v4202_v50, 0.0  ;;  %v8103_v34 = vld [vmem:[%s8306_s8] ss:$0 sm:$0xff] }
 0x375   : > { %v4201_v20 = vadd.f32 %v7920_v60, %v4162_v15  ;;  %v4232_v25 = vmax.f32 %v4200_v41, 0.0  ;;  %v6945_v60 = vld [vmem:[%s7069_s19 + $0x18] sm:$0xff]   ;;  %v8114_v38 = vld [vmem:[%s8307_s9] ss:$0 sm:$0xff] }
 0x376   : > { %v4235_v27 = vmax.f32 %v4203_v37, 0.0  ;;  %v8120_v41 = vld [vmem:[%s8310_s12] ss:$0 sm:$0xff] }
 0x377   : > { %v4233_v9 = vmax.f32 %v4201_v20, 0.0 }
 0x378   : > { %v4251_v57 = vpack.c.bf16 %v4235_v27, %v4234_v13 }
 0x379   : > { %v4250_v17 = vpack.c.bf16 %v4233_v9, %v4232_v25 }
 0x37b   : > { %6513 = vmatprep.mubr.bf16.mxu0 %v4250_v17 }
 0x37c   : > { %6514 = vmatmul.mubr.bf16.gmra.mrb[92].mxu0 %v4251_v57 }
 0x37d   : > { %6533 = vmatprep.mubr.bf16.mxu0 %v6942_v24 }
 0x384   : > { %6534 = vmatmul.mubr.bf16.vlgmr.msra.gmra.mrb[96].mxu0 %v6943_v36 }
 0x385   : > { %6537 = vmatprep.mubr.bf16.mxu0 %v6944_v8 }
 0x38c   : > { %6538 = vmatmul.mubr.bf16.gmra.mrb[100].mxu0 %v6945_v60 }
 0x38d   : > { %6541 = vmatprep.mubr.bf16.mxu0 %v6946_v29 }
 0x394   : > { %6542 = vmatmul.mubr.bf16.gmra.mrb[104].mxu0 %v6947_v59 }
 0x395   : > { %6545 = vmatprep.mubr.bf16.mxu0 %v6948_v23 }
 0x39c   : > { %6546 = vmatmul.mubr.bf16.gmra.mrb[108].mxu0 %v6949_v12 }
 0x39d   : > { %6549 = vmatprep.mubr.bf16.mxu0 %v6950_v6 }
 0x3a4   : > { %6550 = vmatmul.mubr.bf16.gmra.mrb[112].mxu0 %v6951_v49 }
 0x3a5   : > { %6553 = vmatprep.mubr.bf16.mxu0 %v6952_v7 }
 0x3ac   : > { %6554 = vmatmul.mubr.bf16.gmra.mrb[116].mxu0 %v6953_v30 }
 0x3ad   : > { %6557 = vmatprep.mubr.bf16.mxu0 %v6954_v33 }
 0x3b4   : > { %6558 = vmatmul.mubr.bf16.gmra.mrb[120].mxu0 %v6955_v39 }
 0x3b5   : > { %6561 = vmatprep.mubr.bf16.mxu0 %v6956_v54 }
 0x3bc   : > { %6562 = vmatmul.mubr.bf16.gmra.mrb[124].mxu0 %v6957_v19 }
 0x417   : > { %v6487_v32 = vpop.f32.mrb[64].mxu0 }
 0x418   : > { %v4350_v18 = vpop.f32.mrb[65].mxu0  ;;  %v4486_v4 = vmul.f32 %v6487_v32, %v8103_v34 }
 0x419   : > { %v6488_v46 = vpop.f32.mrb[66].mxu0  ;;  %v4484_v50 = vmul.f32 %v8103_v34, %v4350_v18 }
 0x41a   : > { %v4353_v51 = vpop.f32.mrb[67].mxu0  ;;  %v4487_v15 = vmul.f32 %v6488_v46, %v8103_v34  ;;  %v4525_v9 = vadd.f32 %v8114_v38, %v4486_v4 }
 0x41b   : > { %v4485_v13 = vmul.f32 %v8103_v34, %v4353_v51  ;;  %v4523_v36 = vadd.f32 %v8114_v38, %v4484_v50 }
 0x41c   : > { %v4526_v29 = vadd.f32 %v8114_v38, %v4487_v15 }
 0x41d   : > { %v4524_v12 = vadd.f32 %v8114_v38, %v4485_v13 }
 0x41f   : > { %v6491_v62 = vpop.f32.mrb[68].mxu0 }
 0x420   : > { %v4366_v45 = vpop.f32.mrb[69].mxu0  ;;  %v4490_v7 = vmul.f32 %v6491_v62, %v8103_v34 }
 0x421   : > { %v6492_v61 = vpop.f32.mrb[70].mxu0  ;;  %v4488_v33 = vmul.f32 %v8103_v34, %v4366_v45 }
 0x422   : > { %v4369_v21 = vpop.f32.mrb[71].mxu0  ;;  %v4491_v19 = vmul.f32 %v6492_v61, %v8103_v34 }
 0x423   : > { %v4489_v4 = vmul.f32 %v8103_v34, %v4369_v21  ;;  %v4527_v13 = vadd.f32 %v8114_v38, %v4488_v33 }
 0x427   : > { %v8052_v5 = vpop.f32.mrb[72].mxu0 }
 0x428   : > { %v8054_v42 = vpop.f32.mrb[73].mxu0 }
 0x429   : > { %v8056_v10 = vpop.f32.mrb[74].mxu0 }
 0x42a   : > { %v8058_v44 = vpop.f32.mrb[75].mxu0 }
 0x42f   : > { %v8060_v22 = vpop.f32.mrb[76].mxu0 }
 0x430   : > { %v8062_v48 = vpop.f32.mrb[77].mxu0 }
 0x431   : > { %v8064_v52 = vpop.f32.mrb[78].mxu0 }
 0x432   : > { %v8066_v0 = vpop.f32.mrb[79].mxu0 }
 0x437   : > { %v8068_v16 = vpop.f32.mrb[80].mxu0 }
 0x438   : > { %v8070_v31 = vpop.f32.mrb[81].mxu0 }
 0x439   : > { %v8072_v63 = vpop.f32.mrb[82].mxu0 }
 0x43a   : > { %v8074_v43 = vpop.f32.mrb[83].mxu0 }
 0x43f   : > { %v8076_v2 = vpop.f32.mrb[84].mxu0 }
 0x440   : > { %v8078_v47 = vpop.f32.mrb[85].mxu0 }
 0x441   : > { %v8080_v3 = vpop.f32.mrb[86].mxu0 }
 0x442   : > { %v8082_v53 = vpop.f32.mrb[87].mxu0 }
 0x447   : > { %v8084_v26 = vpop.f32.mrb[88].mxu0 }
 0x448   : > { %v8086_v55 = vpop.f32.mrb[89].mxu0 }
 0x449   : > { %v8088_v28 = vpop.f32.mrb[90].mxu0 }
 0x44a   : > { %v8090_v1 = vpop.f32.mrb[91].mxu0 }
 0x44f   : > { %v8092_v11 = vpop.f32.mrb[92].mxu0 }
 0x450   : > { %v8094_v56 = vpop.f32.mrb[93].mxu0 }
 0x451   : > { %v8096_v35 = vpop.f32.mrb[94].mxu0 }
 0x452   : > { %v8098_v58 = vpop.f32.mrb[95].mxu0 }
 0x457   : > { %v6535_v40 = vpop.f32.mrb[96].mxu0 }
 0x458   : > { %v4917_v37 = vmul.f32 %v6535_v40, %v8108_v14  ;;  %v4781_v20 = vpop.f32.mrb[97].mxu0  ;;  %v4529_v40 = vadd.f32 %v8114_v38, %v4490_v7 }
 0x459   : > { %v4915_v27 = vmul.f32 %v8108_v14, %v4781_v20  ;;  %v6536_v25 = vpop.f32.mrb[98].mxu0 }
 0x45a   : > { %v4956_v57 = vadd.f32 %v8120_v41, %v4917_v37  ;;  %v4918_v17 = vmul.f32 %v6536_v25, %v8108_v14  ;;  %v4784_v24 = vpop.f32.mrb[99].mxu0 }
 0x45b   : > { %v4954_v8 = vadd.f32 %v8120_v41, %v4915_v27  ;;  %v4916_v60 = vmul.f32 %v8108_v14, %v4784_v24 }
 0x45c   : > { %v4988_v59 = vadd.f32 %v4956_v57, %v4525_v9  ;;  %v4957_v23 = vadd.f32 %v8120_v41, %v4918_v17  ;;  %v4530_v57 = vadd.f32 %v8114_v38, %v4491_v19 }
 0x45d   : > { %v4986_v6 = vadd.f32 %v4954_v8, %v4523_v36  ;;  %v4955_v49 = vadd.f32 %v8120_v41, %v4916_v60  ;;  %v4528_v36 = vadd.f32 %v8114_v38, %v4489_v4 }
 0x45e   : > { %v4989_v30 = vadd.f32 %v4957_v23, %v4526_v29  ;;  %v5020_v32 = vmax.f32 %v4988_v59, 0.0  ;;  %v4494_v29 = vmul.f32 %v8052_v5, %v8103_v34  ;;  %v4492_v23 = vmul.f32 %v8103_v34, %v8054_v42 }
 0x45f   : > { %v4987_v39 = vadd.f32 %v4955_v49, %v4524_v12  ;;  %v6539_v54 = vpop.f32.mrb[100].mxu0  ;;  %v5018_v50 = vmax.f32 %v4986_v6, 0.0  ;;  %v4495_v49 = vmul.f32 %v8056_v10, %v8103_v34 }
 0x460   : > { %v5021_v18 = vmax.f32 %v4989_v30, 0.0  ;;  %v4921_v46 = vmul.f32 %v6539_v54, %v8108_v14  ;;  %v4797_v51 = vpop.f32.mrb[101].mxu0  ;;  %v4493_v54 = vmul.f32 %v8103_v34, %v8058_v44 }
 0x461   : > { %v5019_v62 = vmax.f32 %v4987_v39, 0.0  ;;  %v4919_v45 = vmul.f32 %v8108_v14, %v4797_v51  ;;  %v6540_v61 = vpop.f32.mrb[102].mxu0 }
 0x462   : > { %v5614_v15 = vpack.c.bf16 %v5021_v18, %v5020_v32  ;;  %v4960_v37 = vadd.f32 %v8120_v41, %v4921_v46  ;;  %v4922_v21 = vmul.f32 %v6540_v61, %v8108_v14  ;;  %v4800_v20 = vpop.f32.mrb[103].mxu0  ;;  %v4533_v18 = vadd.f32 %v8114_v38, %v4494_v29 }
 0x463   : > { %v5609_v27 = vpack.c.bf16 %v5019_v62, %v5018_v50  ;;  %v4958_v25 = vadd.f32 %v8120_v41, %v4919_v45  ;;  %v4920_v9 = vmul.f32 %v8108_v14, %v4800_v20  ;;  %v4531_v50 = vadd.f32 %v8114_v38, %v4492_v23 }
 0x464   : > { %5686 = vst [vmem:[%s8146_s30 + $0x8] sm:$0xff] %v5614_v15   ;;  %v4992_v17 = vadd.f32 %v4960_v37, %v4529_v40  ;;  %v4961_v24 = vadd.f32 %v8120_v41, %v4922_v21  ;;  %v4534_v61 = vadd.f32 %v8114_v38, %v4495_v49  ;;  %v4532_v37 = vadd.f32 %v8114_v38, %v4493_v54 }
 0x465   : > { %5610 = vst [vmem:[%s8146_s30] sm:$0xff] %v5609_v27   ;;  %v4990_v8 = vadd.f32 %v4958_v25, %v4527_v13  ;;  %v4959_v60 = vadd.f32 %v8120_v41, %v4920_v9  ;;  %v4498_v13 = vmul.f32 %v8060_v22, %v8103_v34  ;;  %v4496_v25 = vmul.f32 %v8103_v34, %v8062_v48 }
 0x466   : > { %v4993_v59 = vadd.f32 %v4961_v24, %v4530_v57  ;;  %v5024_v7 = vmax.f32 %v4992_v17, 0.0  ;;  %v4499_v17 = vmul.f32 %v8064_v52, %v8103_v34  ;;  %v4497_v29 = vmul.f32 %v8103_v34, %v8066_v0 }
 0x467   : > { %v4991_v12 = vadd.f32 %v4959_v60, %v4528_v36  ;;  %v6543_v6 = vpop.f32.mrb[104].mxu0  ;;  %v5022_v19 = vmax.f32 %v4990_v8, 0.0 }
 0x468   : > { %v5025_v30 = vmax.f32 %v4993_v59, 0.0  ;;  %v4925_v33 = vmul.f32 %v6543_v6, %v8108_v14  ;;  %v4813_v39 = vpop.f32.mrb[105].mxu0  ;;  %v4538_v54 = vadd.f32 %v8114_v38, %v4499_v17 }
 0x469   : > { %v5023_v5 = vmax.f32 %v4991_v12, 0.0  ;;  %v4923_v32 = vmul.f32 %v8108_v14, %v4813_v39  ;;  %v6544_v42 = vpop.f32.mrb[106].mxu0  ;;  %v4537_v12 = vadd.f32 %v8114_v38, %v4498_v13 }
 0x46a   : > { %v5624_v46 = vpack.c.bf16 %v5025_v30, %v5024_v7  ;;  %v4964_v10 = vadd.f32 %v8120_v41, %v4925_v33  ;;  %v4926_v51 = vmul.f32 %v6544_v42, %v8108_v14  ;;  %v4816_v4 = vpop.f32.mrb[107].mxu0  ;;  %v4535_v30 = vadd.f32 %v8114_v38, %v4496_v25 }
 0x46b   : > { %v5619_v62 = vpack.c.bf16 %v5023_v5, %v5022_v19  ;;  %v4962_v45 = vadd.f32 %v8120_v41, %v4923_v32  ;;  %v4924_v44 = vmul.f32 %v8108_v14, %v4816_v4  ;;  %v4536_v32 = vadd.f32 %v8114_v38, %v4497_v29 }
 0x46c   : > { %5688 = vst [vmem:[%s8146_s30 + $0x18] sm:$0xff] %v5624_v46   ;;  %v4996_v40 = vadd.f32 %v4964_v10, %v4533_v18  ;;  %v4965_v15 = vadd.f32 %v8120_v41, %v4926_v51  ;;  %v4502_v46 = vmul.f32 %v8068_v16, %v8103_v34  ;;  %v4500_v51 = vmul.f32 %v8103_v34, %v8070_v31 }
 0x46d   : > { %5687 = vst [vmem:[%s8146_s30 + $0x10] sm:$0xff] %v5619_v62   ;;  %v4994_v21 = vadd.f32 %v4962_v45, %v4531_v50  ;;  %v4963_v20 = vadd.f32 %v8120_v41, %v4924_v44  ;;  %v4503_v62 = vmul.f32 %v8072_v63, %v8103_v34 }
 0x46e   : > { %v4997_v27 = vadd.f32 %v4965_v15, %v4534_v61  ;;  %v5028_v24 = vmax.f32 %v4996_v40, 0.0  ;;  %v4501_v15 = vmul.f32 %v8103_v34, %v8074_v43 }
 0x46f   : > { %v4995_v9 = vadd.f32 %v4963_v20, %v4532_v37  ;;  %v6547_v57 = vpop.f32.mrb[108].mxu0  ;;  %v5026_v59 = vmax.f32 %v4994_v21, 0.0  ;;  %v4541_v20 = vadd.f32 %v8114_v38, %v4502_v46 }
 0x470   : > { %v5029_v36 = vmax.f32 %v4997_v27, 0.0  ;;  %v4929_v8 = vmul.f32 %v6547_v57, %v8108_v14  ;;  %v4829_v60 = vpop.f32.mrb[109].mxu0 }
 0x471   : > { %v5027_v22 = vmax.f32 %v4995_v9, 0.0  ;;  %v4927_v23 = vmul.f32 %v8108_v14, %v4829_v60  ;;  %v6548_v48 = vpop.f32.mrb[110].mxu0  ;;  %v4539_v9 = vadd.f32 %v8114_v38, %v4500_v51  ;;  %v4540_v60 = vadd.f32 %v8114_v38, %v4501_v15 }
 0x472   : > { %v5634_v6 = vpack.c.bf16 %v5029_v36, %v5028_v24  ;;  %v4968_v52 = vadd.f32 %v8120_v41, %v4929_v8  ;;  %v4930_v49 = vmul.f32 %v6548_v48, %v8108_v14  ;;  %v4832_v7 = vpop.f32.mrb[111].mxu0  ;;  %v4542_v24 = vadd.f32 %v8114_v38, %v4503_v62 }
 0x473   : > { %v5629_v33 = vpack.c.bf16 %v5027_v22, %v5026_v59  ;;  %v4966_v39 = vadd.f32 %v8120_v41, %v4927_v23  ;;  %v4928_v0 = vmul.f32 %v8108_v14, %v4832_v7  ;;  %v4506_v22 = vmul.f32 %v8076_v2, %v8103_v34 }
 0x474   : > { %5690 = vst [vmem:[%s8146_s30 + $0x28] sm:$0xff] %v5634_v6   ;;  %v5000_v19 = vadd.f32 %v4968_v52, %v4537_v12  ;;  %v4969_v5 = vadd.f32 %v8120_v41, %v4930_v49  ;;  %v4504_v48 = vmul.f32 %v8103_v34, %v8078_v47  ;;  %v4507_v52 = vmul.f32 %v8080_v3, %v8103_v34 }
 0x475   : > { %5689 = vst [vmem:[%s8146_s30 + $0x20] sm:$0xff] %v5629_v33   ;;  %v4998_v42 = vadd.f32 %v4966_v39, %v4535_v30  ;;  %v4967_v18 = vadd.f32 %v8120_v41, %v4928_v0  ;;  %v4505_v39 = vmul.f32 %v8103_v34, %v8082_v53  ;;  %v4508_v15 = vmul.f32 %v8103_v34, %v8086_v55 }
 0x476   : > { %v5001_v10 = vadd.f32 %v4969_v5, %v4538_v54  ;;  %v5032_v45 = vmax.f32 %v5000_v19, 0.0  ;;  %v4545_v19 = vadd.f32 %v8114_v38, %v4506_v22  ;;  %v4546_v51 = vadd.f32 %v8114_v38, %v4507_v52 }
 0x477   : > { %v4999_v4 = vadd.f32 %v4967_v18, %v4536_v32  ;;  %v6551_v50 = vpop.f32.mrb[112].mxu0  ;;  %v5030_v37 = vmax.f32 %v4998_v42, 0.0  ;;  %v4543_v18 = vadd.f32 %v8114_v38, %v4504_v48  ;;  %v4544_v62 = vadd.f32 %v8114_v38, %v4505_v39 }
 0x478   : > { %v5033_v44 = vmax.f32 %v5001_v10, 0.0  ;;  %v4933_v61 = vmul.f32 %v6551_v50, %v8108_v14  ;;  %v4845_v40 = vpop.f32.mrb[113].mxu0 }
 0x479   : > { %v5031_v16 = vmax.f32 %v4999_v4, 0.0  ;;  %v4931_v21 = vmul.f32 %v8108_v14, %v4845_v40  ;;  %v6552_v31 = vpop.f32.mrb[114].mxu0 }
 0x47a   : > { %v5644_v13 = vpack.c.bf16 %v5033_v44, %v5032_v45  ;;  %v4972_v63 = vadd.f32 %v8120_v41, %v4933_v61  ;;  %v4934_v27 = vmul.f32 %v6552_v31, %v8108_v14  ;;  %v4848_v25 = vpop.f32.mrb[115].mxu0  ;;  %v4510_v61 = vmul.f32 %v8084_v26, %v8103_v34 }
 0x47b   : > { %v5639_v57 = vpack.c.bf16 %v5031_v16, %v5030_v37  ;;  %v4970_v17 = vadd.f32 %v8120_v41, %v4931_v21  ;;  %v4932_v43 = vmul.f32 %v8108_v14, %v4848_v25  ;;  %v4511_v21 = vmul.f32 %v8088_v28, %v8103_v34 }
 0x47c   : > { %5692 = vst [vmem:[%s8146_s30 + $0x38] sm:$0xff] %v5644_v13   ;;  %v5004_v36 = vadd.f32 %v4972_v63, %v4541_v20  ;;  %v4973_v8 = vadd.f32 %v8120_v41, %v4934_v27  ;;  %v4509_v27 = vmul.f32 %v8103_v34, %v8090_v1 }
 0x47d   : > { %5691 = vst [vmem:[%s8146_s30 + $0x30] sm:$0xff] %v5639_v57   ;;  %v5002_v29 = vadd.f32 %v4970_v17, %v4539_v9  ;;  %v4971_v59 = vadd.f32 %v8120_v41, %v4932_v43  ;;  %v4549_v57 = vadd.f32 %v8114_v38, %v4510_v61 }
 0x47e   : > { %v5005_v23 = vadd.f32 %v4973_v8, %v4542_v24  ;;  %v5036_v49 = vmax.f32 %v5004_v36, 0.0  ;;  %v4547_v36 = vadd.f32 %v8114_v38, %v4508_v15 }
 0x47f   : > { %v5003_v12 = vadd.f32 %v4971_v59, %v4540_v60  ;;  %v6555_v6 = vpop.f32.mrb[116].mxu0  ;;  %v5034_v0 = vmax.f32 %v5002_v29, 0.0  ;;  %v4550_v29 = vadd.f32 %v8114_v38, %v4511_v21 }
 0x480   : > { %v5037_v7 = vmax.f32 %v5005_v23, 0.0  ;;  %v4937_v30 = vmul.f32 %v6555_v6, %v8108_v14  ;;  %v4861_v33 = vpop.f32.mrb[117].mxu0  ;;  %v4548_v23 = vadd.f32 %v8114_v38, %v4509_v27  ;;  %v4514_v6 = vmul.f32 %v8092_v11, %v8103_v34 }
 0x481   : > { %v5035_v2 = vmax.f32 %v5003_v12, 0.0  ;;  %v4935_v54 = vmul.f32 %v8108_v14, %v4861_v33  ;;  %v6556_v47 = vpop.f32.mrb[118].mxu0  ;;  %v4515_v33 = vmul.f32 %v8096_v35, %v8103_v34 }
 0x482   : > { %v5654_v5 = vpack.c.bf16 %v5037_v7, %v5036_v49  ;;  %v4976_v3 = vadd.f32 %v8120_v41, %v4937_v30  ;;  %v4938_v32 = vmul.f32 %v6556_v47, %v8108_v14  ;;  %v4864_v42 = vpop.f32.mrb[119].mxu0  ;;  %v4512_v49 = vmul.f32 %v8103_v34, %v8094_v56 }
 0x483   : > { %v5649_v46 = vpack.c.bf16 %v5035_v2, %v5034_v0  ;;  %v4974_v10 = vadd.f32 %v8120_v41, %v4935_v54  ;;  %v4936_v53 = vmul.f32 %v8108_v14, %v4864_v42  ;;  %v4513_v47 = vmul.f32 %v8103_v34, %v8098_v58 }
 0x484   : > { %5694 = vst [vmem:[%s8146_s30 + $0x48] sm:$0xff] %v5654_v5   ;;  %v5008_v4 = vadd.f32 %v4976_v3, %v4545_v19  ;;  %v4977_v50 = vadd.f32 %v8120_v41, %v4938_v32  ;;  %v4553_v3 = vadd.f32 %v8114_v38, %v4514_v6  ;;  %v4554_v34 = vadd.f32 %v8114_v38, %v4515_v33 }
 0x485   : > { %5693 = vst [vmem:[%s8146_s30 + $0x40] sm:$0xff] %v5649_v46   ;;  %v5006_v45 = vadd.f32 %v4974_v10, %v4543_v18  ;;  %v4975_v44 = vadd.f32 %v8120_v41, %v4936_v53  ;;  %v4551_v46 = vadd.f32 %v8114_v38, %v4512_v49 }
 0x486   : > { %v5009_v40 = vadd.f32 %v4977_v50, %v4546_v51  ;;  %v5040_v31 = vmax.f32 %v5008_v4, 0.0  ;;  %v4552_v50 = vadd.f32 %v8114_v38, %v4513_v47 }
 0x487   : > { %v5007_v37 = vadd.f32 %v4975_v44, %v4544_v62  ;;  %v6559_v16 = vpop.f32.mrb[120].mxu0  ;;  %v5038_v25 = vmax.f32 %v5006_v45, 0.0 }
 0x488   : > { %v5041_v20 = vmax.f32 %v5009_v40, 0.0  ;;  %v4941_v13 = vmul.f32 %v6559_v16, %v8108_v14  ;;  %v4877_v63 = vpop.f32.mrb[121].mxu0 }
 0x489   : > { %v5039_v26 = vmax.f32 %v5007_v37, 0.0  ;;  %v4939_v9 = vmul.f32 %v8108_v14, %v4877_v63  ;;  %v6560_v55 = vpop.f32.mrb[122].mxu0 }
 0x48a   : > { %v5664_v17 = vpack.c.bf16 %v5041_v20, %v5040_v31  ;;  %v4980_v28 = vadd.f32 %v8120_v41, %v4941_v13  ;;  %v4942_v43 = vmul.f32 %v6560_v55, %v8108_v14  ;;  %v4880_v24 = vpop.f32.mrb[123].mxu0 }
 0x48b   : > { %v5659_v8 = vpack.c.bf16 %v5039_v26, %v5038_v25  ;;  %v4978_v60 = vadd.f32 %v8120_v41, %v4939_v9  ;;  %v4940_v1 = vmul.f32 %v8108_v14, %v4880_v24 }
 0x48c   : > { %5696 = vst [vmem:[%s8146_s30 + $0x58] sm:$0xff] %v5664_v17   ;;  %v5012_v59 = vadd.f32 %v4980_v28, %v4549_v57  ;;  %v4981_v22 = vadd.f32 %v8120_v41, %v4942_v43 }
 0x48d   : > { %5695 = vst [vmem:[%s8146_s30 + $0x50] sm:$0xff] %v5659_v8   ;;  %v5010_v48 = vadd.f32 %v4978_v60, %v4547_v36  ;;  %v4979_v12 = vadd.f32 %v8120_v41, %v4940_v1 }
 0x48e   : > { %v5013_v52 = vadd.f32 %v4981_v22, %v4550_v29  ;;  %v5044_v39 = vmax.f32 %v5012_v59, 0.0 }
 0x48f   : > { %v5011_v7 = vadd.f32 %v4979_v12, %v4548_v23  ;;  %v6563_v30 = vpop.f32.mrb[124].mxu0  ;;  %v5042_v19 = vmax.f32 %v5010_v48, 0.0 }
 0x490   : > { %v5045_v0 = vmax.f32 %v5013_v52, 0.0  ;;  %v4945_v2 = vmul.f32 %v6563_v30, %v8108_v14  ;;  %v4893_v54 = vpop.f32.mrb[125].mxu0 }
 0x491   : > { %v5043_v11 = vmax.f32 %v5011_v7, 0.0  ;;  %v4943_v5 = vmul.f32 %v8108_v14, %v4893_v54  ;;  %v6564_v56 = vpop.f32.mrb[126].mxu0 }
 0x492   : > { %v5674_v32 = vpack.c.bf16 %v5045_v0, %v5044_v39  ;;  %v4984_v35 = vadd.f32 %v8120_v41, %v4945_v2  ;;  %v4946_v42 = vmul.f32 %v6564_v56, %v8108_v14  ;;  %v4896_v18 = vpop.f32.mrb[127].mxu0 }
 0x493   : > { %v5669_v10 = vpack.c.bf16 %v5043_v11, %v5042_v19  ;;  %v4982_v53 = vadd.f32 %v8120_v41, %v4943_v5  ;;  %v4944_v58 = vmul.f32 %v8108_v14, %v4896_v18 }
 0x494   : > { %5698 = vst [vmem:[%s8146_s30 + $0x68] sm:$0xff] %v5674_v32   ;;  %v5016_v51 = vadd.f32 %v4984_v35, %v4553_v3  ;;  %v4985_v4 = vadd.f32 %v8120_v41, %v4946_v42 }
 0x495   : > { %5697 = vst [vmem:[%s8146_s30 + $0x60] sm:$0xff] %v5669_v10   ;;  %v5014_v62 = vadd.f32 %v4982_v53, %v4551_v46  ;;  %v4983_v45 = vadd.f32 %v8120_v41, %v4944_v58 }
 0x496   : > { %v5017_v44 = vadd.f32 %v4985_v4, %v4554_v34  ;;  %v5048_v40 = vmax.f32 %v5016_v51, 0.0 }
 0x497   : > { %v5015_v61 = vadd.f32 %v4983_v45, %v4552_v50  ;;  %v5046_v37 = vmax.f32 %v5014_v62, 0.0 }
 0x498   : > { %v5049_v15 = vmax.f32 %v5017_v44, 0.0 }
 0x499   : > { %v5047_v14 = vmax.f32 %v5015_v61, 0.0 }
 0x49a   : > { %v5684_v16 = vpack.c.bf16 %v5049_v15, %v5048_v40 }
 0x49b   : > { %v5679_v21 = vpack.c.bf16 %v5047_v14, %v5046_v37 }
 0x49c   : > { %5700 = vst [vmem:[%s8146_s30 + $0x78] sm:$0xff] %v5684_v16  }
 0x49d   : > { %5699 = vst [vmem:[%s8146_s30 + $0x70] sm:$0xff] %v5679_v21  }
 0x49e PF: > { %s23_s25 = sadd.s32 1, %s6971_s25  }
 0x49f   : > { %p20_p4 = scmp.ge.s32.totalorder %s23_s25, 4  }
 0x4a1   :  { %22 = sbr.rel (!%p20_p4) target bundleno = 1 (0x1), region = 111 }

</bundles_post_ra>
